<compile_context>
chip_gen: v7x
topology: tpu7x:2x2x1
jax: 0.10.0
libtpu: 0.0.40
codegen_flags: <defaults>
</compile_context>

<pallas_src>
import numpy as np
import jax
import jax.numpy as jnp
from jax import lax
from jax.experimental import pallas as pl
from jax.experimental.pallas import tpu as pltpu


# ----------------------------------------------------------------------------
# Host-side constant builders (data independent, tiny).  The compute that uses
# them runs inside the fused Pallas kernel.
# ----------------------------------------------------------------------------
def adaptive_pool_matrix(in_size, out_size):
    """1-D matrix with torch adaptive_avg_pool semantics, shape (out, in)."""
    R = np.zeros((out_size, in_size), np.float32)
    for i in range(out_size):
        start = (i * in_size) // out_size
        end = -(-((i + 1) * in_size) // out_size)  # ceil
        R[i, start:end] = 1.0 / (end - start)
    return R


def bilinear_matrix(in_size, out_size):
    """1-D matrix for F.interpolate(mode='bilinear', align_corners=False)."""
    R = np.zeros((out_size, in_size), np.float32)
    scale = in_size / out_size
    for i in range(out_size):
        src = (i + 0.5) * scale - 0.5
        src = max(src, 0.0)
        i0 = min(int(np.floor(src)), in_size - 1)
        i1 = min(i0 + 1, in_size - 1)
        lam = src - i0
        R[i, i0] += 1.0 - lam
        R[i, i1] += lam
    return R


def flat_resize_matrices(H, W, Hs, Ws):
    """Separable 2-D resizes composed into flat (H*W <-> Hs*Ws) matmuls."""
    Rh_dn = adaptive_pool_matrix(H, Hs)           # (Hs, H)
    Rw_dn = adaptive_pool_matrix(W, Ws)           # (Ws, W)
    Rh_up = bilinear_matrix(Hs, H)                # (H, Hs)
    Rw_up = bilinear_matrix(Ws, W)                # (W, Ws)
    kdn = np.kron(Rh_dn, Rw_dn).T.astype(np.float32)   # (H*W, Hs*Ws)
    kup = np.kron(Rh_up, Rw_up).T.astype(np.float32)   # (Hs*Ws, H*W)
    return kdn, kup


def dw_col_masks(Wg, HWg, ks):
    """mask[kw, i] = 1 iff column (i % Wg) + (kw - ks//2) stays in its row.

    Row wrap (w out of range) is handled by these masks; out-of-range rows are
    handled by the zero halo of the flattened VMEM scratch.
    """
    P = ks // 2
    col = np.arange(HWg) % Wg
    m = np.zeros((ks, HWg), np.float32)
    for kw in range(ks):
        dw = kw - P
        m[kw] = ((col + dw >= 0) & (col + dw < Wg)).astype(np.float32)
    return m


# ----------------------------------------------------------------------------
# Fused kernel: conv_up -> [per gate: resize-down, dwconv+gate, resize-up]
#               -> conv_out + bias + (fused global-pool + conv_pool) add.
# All arrays inside the kernel are 2-D (channels, pixels) slabs.
# ----------------------------------------------------------------------------
def make_fused_kernel(dim, inter, H, W, ks, gate_cfgs, gate_mult):
    half = inter // 2
    P = ks // 2
    HW = H * W
    n_gates = len(gate_cfgs)
    inv_hw = 1.0 / float(HW)

    def kernel(*refs):
        it = 0
        x_ref = refs[it]; it += 1
        w_up_ref = refs[it]; it += 1
        gate_refs = []
        for cfg in gate_cfgs:
            w_dw_ref = refs[it]; it += 1
            mask_ref = refs[it]; it += 1
            if cfg["scaled"]:
                kdn_ref = refs[it]; it += 1
                kup_ref = refs[it]; it += 1
            else:
                kdn_ref = None
                kup_ref = None
            gate_refs.append((w_dw_ref, mask_ref, kdn_ref, kup_ref))
        w_out_ref = refs[it]; it += 1
        b_out_ref = refs[it]; it += 1
        w_pool_ref = refs[it]; it += 1
        b_pool_ref = refs[it]; it += 1
        o_ref = refs[it]; it += 1
        pad_refs = refs[it:it + n_gates]

        x = x_ref[0]                                             # (dim, HW)

        # fused pool branch: conv_pool(mean_hw(x)) == rowsum(Wpool^T @ x)/HW
        px = jnp.dot(w_pool_ref[...], x, preferred_element_type=jnp.float32)
        pool = jnp.sum(px, axis=1, keepdims=True) * inv_hw + b_pool_ref[...]

        # conv_up (1x1, no bias) -> (inter, HW), lane-dense MXU matmul
        y = jnp.dot(w_up_ref[...], x, preferred_element_type=jnp.float32)

        out = None
        for g in range(n_gates):
            cfg = gate_cfgs[g]
            w_dw_ref, mask_ref, kdn_ref, kup_ref = gate_refs[g]
            pad_ref = pad_refs[g]
            Wg, HWg, Fpad = cfg["Wg"], cfg["HWg"], cfg["Fpad"]

            # optional adaptive-avg-pool downsample (single MXU matmul)
            if cfg["scaled"]:
                yg = jnp.dot(y, kdn_ref[...], preferred_element_type=jnp.float32)
            else:
                yg = y                                           # (inter, HWg)

            # depthwise ks x ks conv on the flattened slab: zero halo kept in
            # VMEM (no HBM pad copy), interior store is lane-aligned.
            pad_ref[...] = jnp.zeros_like(pad_ref)
            pad_ref[:, Fpad:Fpad + HWg] = yg

            wv = w_dw_ref[...]                                   # (inter, ks*ks)
            mv = mask_ref[...]                                   # (ks, HWg)
            acc = None
            for kw in range(ks):
                part = None
                for kh in range(ks):
                    t = kh * ks + kw
                    off = Fpad + (kh - P) * Wg + (kw - P)
                    v = pad_ref[:, off:off + HWg] * wv[:, t:t + 1]
                    part = v if part is None else part + v
                # column-validity mask depends only on kw -> applied once
                contrib = part * mv[kw:kw + 1, :]
                acc = contrib if acc is None else acc + contrib

            # SimpleGate: x1 * (x2 / scale), scale = (inter/2)^(-0.5)
            gated = acc[:half, :] * acc[half:, :] * gate_mult    # (half, HWg)

            # optional bilinear (align_corners=False) upsample back to H*W
            if cfg["scaled"]:
                gated = jnp.dot(gated, kup_ref[...],
                                preferred_element_type=jnp.float32)

            # conv_out contribution of this gate's channel slice
            w_cols = w_out_ref[:, g * half:(g + 1) * half]       # (dim, half)
            c = jnp.dot(w_cols, gated, preferred_element_type=jnp.float32)
            out = c if out is None else out + c

        o_ref[0] = out + b_out_ref[...] + pool                   # (dim, HW)

    return kernel


# ----------------------------------------------------------------------------
# Module forward (NCHW in / NCHW out)
# ----------------------------------------------------------------------------
def conv_block_forward(x_nchw, params, ks=9, scales=(1.0, 0.5)):
    B, dim, H, W = x_nchw.shape
    inter = params["w_up"].shape[1]
    half = inter // 2
    HW = H * W
    P = ks // 2
    gate_mult = float((inter / 2.0) ** 0.5)   # == 1/scale, scale=(inter/2)^(-0.5)

    # NCHW -> (B, C, H*W): free reshape, no transposes
    x3 = x_nchw.reshape(B, dim, HW).astype(jnp.float32)

    # small weight-layout prep (O(params) only)
    w_up_t = jnp.transpose(params["w_up"]).astype(jnp.float32)       # (inter, dim)
    w_out_t = jnp.transpose(params["w_out"]).astype(jnp.float32)     # (dim, n*half)
    b_out = params["b_out"].reshape(dim, 1).astype(jnp.float32)
    w_pool_t = jnp.transpose(params["w_pool"]).astype(jnp.float32)   # (dim, dim)
    b_pool = params["b_pool"].reshape(dim, 1).astype(jnp.float32)

    inputs = [x3, w_up_t]
    in_specs = [
        pl.BlockSpec((1, dim, HW), lambda b: (b, 0, 0)),
        pl.BlockSpec((inter, dim), lambda b: (0, 0)),
    ]
    gate_cfgs = []
    scratch_shapes = []
    for gi, sf in enumerate(scales):
        scaled = (sf != 1.0)
        Hg = int(H * sf) if scaled else H     # matches PyTorch int(H*scale)
        Wg = int(W * sf) if scaled else W
        HWg = Hg * Wg
        # lane-aligned halo: interior write is an aligned store, tap reads are
        # static unaligned lane-offset loads from VMEM.
        Fpad = ((P * Wg + P + 127) // 128) * 128
        gate_cfgs.append(dict(Wg=Wg, HWg=HWg, Fpad=Fpad, scaled=scaled))

        # depthwise weights (ks, ks, inter) -> (inter, ks*ks), index kh*ks+kw
        w_dw = jnp.transpose(params["w_dw"][gi], (2, 0, 1)).reshape(
            inter, ks * ks).astype(jnp.float32)
        inputs.append(w_dw)
        in_specs.append(pl.BlockSpec((inter, ks * ks), lambda b: (0, 0)))

        inputs.append(jnp.asarray(dw_col_masks(Wg, HWg, ks)))
        in_specs.append(pl.BlockSpec((ks, HWg), lambda b: (0, 0)))

        if scaled:
            kdn, kup = flat_resize_matrices(H, W, Hg, Wg)
            inputs.append(jnp.asarray(kdn))
            in_specs.append(pl.BlockSpec((HW, HWg), lambda b: (0, 0)))
            inputs.append(jnp.asarray(kup))
            in_specs.append(pl.BlockSpec((HWg, HW), lambda b: (0, 0)))

        scratch_shapes.append(pltpu.VMEM((inter, HWg + 2 * Fpad), jnp.float32))

    inputs += [w_out_t, b_out, w_pool_t, b_pool]
    in_specs += [
        pl.BlockSpec((dim, len(scales) * half), lambda b: (0, 0)),
        pl.BlockSpec((dim, 1), lambda b: (0, 0)),
        pl.BlockSpec((dim, dim), lambda b: (0, 0)),
        pl.BlockSpec((dim, 1), lambda b: (0, 0)),
    ]

    kernel = make_fused_kernel(dim, inter, H, W, ks, gate_cfgs, gate_mult)

    out = pl.pallas_call(
        kernel,
        out_shape=jax.ShapeDtypeStruct((B, dim, HW), jnp.float32),
        grid=(B,),
        in_specs=in_specs,
        out_specs=pl.BlockSpec((1, dim, HW), lambda b: (b, 0, 0)),
        scratch_shapes=scratch_shapes,
        compiler_params=pltpu.CompilerParams(
            dimension_semantics=("parallel",),     # 2 TCs on v7x
            vmem_limit_bytes=32 * 1024 * 1024,
        ),
    )(*inputs)
    return out.reshape(B, dim, H, W)


# ----------------------------------------------------------------------------
# Plain-JAX reference (validation only)
# ----------------------------------------------------------------------------
def reference_forward(x_nchw, params, ks=9, scales=(1.0, 0.5)):
    B, dim, H, W = x_nchw.shape
    P = ks // 2
    w_up = params["w_up"].astype(jnp.float32)
    inter = w_up.shape[1]
    half = inter // 2
    gate_mult = (inter / 2.0) ** 0.5
    x = x_nchw.astype(jnp.float32)

    xc = jnp.einsum('bihw,io->bohw', x, w_up)
    gate_outs = []
    for gi, sf in enumerate(scales):
        g_in = xc
        if sf != 1.0:
            Hs, Ws = int(H * sf), int(W * sf)
            Rh = jnp.asarray(adaptive_pool_matrix(H, Hs))
            Rw = jnp.asarray(adaptive_pool_matrix(W, Ws))
            g_in = jnp.einsum('ph,bchw->bcpw', Rh, g_in)
            g_in = jnp.einsum('qw,bcpw->bcpq', Rw, g_in)
        wd = jnp.transpose(params["w_dw"][gi], (2, 0, 1))[:, None, :, :]
        conv = lax.conv_general_dilated(
            g_in.astype(jnp.float32), wd.astype(jnp.float32),
            window_strides=(1, 1), padding=((P, P), (P, P)),
            dimension_numbers=('NCHW', 'OIHW', 'NCHW'),
            feature_group_count=inter)
        gate = conv[:, :half] * conv[:, half:] * gate_mult
        if sf != 1.0:
            RhU = jnp.asarray(bilinear_matrix(int(H * sf), H))
            RwU = jnp.asarray(bilinear_matrix(int(W * sf), W))
            gate = jnp.einsum('hp,bcpq->bchq', RhU, gate)
            gate = jnp.einsum('wq,bchq->bchw', RwU, gate)
        gate_outs.append(gate)
    xcat = jnp.concatenate(gate_outs, axis=1)
    out = jnp.einsum('bchw,cd->bdhw', xcat, params["w_out"].astype(jnp.float32))
    out = out + params["b_out"].reshape(1, dim, 1, 1)
    xpool = jnp.mean(x, axis=(2, 3)) @ params["w_pool"].astype(jnp.float32)
    xpool = xpool + params["b_pool"]
    return out + xpool[:, :, None, None]


# ----------------------------------------------------------------------------
if __name__ == "__main__":
    key = jax.random.PRNGKey(0)
    B, dim, H, W = 2, 8, 16, 16
    inter = int(dim * 0.5)
    ks = 9
    scales = (1.0, 0.5)
    keys = jax.random.split(key, 8)
    params = {
        # conv_up: (Cin=dim, Cout=inter), bias=False
        "w_up": 0.1 * jax.random.normal(keys[0], (dim, inter), jnp.float32),
        # depthwise conv_spatial per gate: (ks, ks, inter), bias=False
        "w_dw": [
            0.1 * jax.random.normal(keys[1], (ks, ks, inter), jnp.float32),
            0.1 * jax.random.normal(keys[2], (ks, ks, inter), jnp.float32),
        ],
        # conv_out: (inter//2 * n_gates, dim) + bias
        "w_out": 0.1 * jax.random.normal(
            keys[3], (inter // 2 * len(scales), dim), jnp.float32),
        "b_out": 0.1 * jax.random.normal(keys[4], (dim,), jnp.float32),
        # conv_pool: (dim, dim) + bias
        "w_pool": 0.1 * jax.random.normal(keys[5], (dim, dim), jnp.float32),
        "b_pool": 0.1 * jax.random.normal(keys[6], (dim,), jnp.float32),
    }
    x = jax.random.normal(keys[7], (B, dim, H, W), jnp.float32)

    out = conv_block_forward(x, params, ks=ks, scales=scales)
    out = jax.block_until_ready(out)
    assert out.shape == (B, dim, H, W)

    # cross-check the fused kernel against the plain-JAX reference
    ref = jax.block_until_ready(reference_forward(x, params, ks=ks, scales=scales))
    np.testing.assert_allclose(np.asarray(out), np.asarray(ref),
                               rtol=2e-2, atol=2e-2)

    print("KERNEL_OK")
</pallas_src>

<mosaic_0001>
module attributes {stable_mosaic.version = 11 : i64} {
  func.func @kernel(%arg0: i32, %arg1: memref<1x8x256xf32, #tpu.memory_space<vmem>>, %arg2: memref<4x8xf32, #tpu.memory_space<vmem>>, %arg3: memref<4x81xf32, #tpu.memory_space<vmem>>, %arg4: memref<9x256xf32, #tpu.memory_space<vmem>>, %arg5: memref<4x81xf32, #tpu.memory_space<vmem>>, %arg6: memref<9x64xf32, #tpu.memory_space<vmem>>, %arg7: memref<256x64xf32, #tpu.memory_space<vmem>>, %arg8: memref<64x256xf32, #tpu.memory_space<vmem>>, %arg9: memref<8x4xf32, #tpu.memory_space<vmem>>, %arg10: memref<8x1xf32, #tpu.memory_space<vmem>>, %arg11: memref<8x8xf32, #tpu.memory_space<vmem>>, %arg12: memref<8x1xf32, #tpu.memory_space<vmem>>, %arg13: memref<1x8x256xf32, #tpu.memory_space<vmem>>, %arg14: memref<4x512xf32, #tpu.memory_space<vmem>>, %arg15: memref<4x320xf32, #tpu.memory_space<vmem>>) attributes {dimension_semantics = [#tpu.dimension_semantics<parallel>], iteration_bounds = array<i64: 2>, scalar_prefetch = 0 : i64, scratch_operands = 2 : i64, tpu.core_type = #tpu.core_type<tc>, window_params = [{transform_indices = @transform_0, window_bounds = array<i64: 1, 8, 256>}, {pipeline_mode = #tpu.pipeline_mode<synchronous>, transform_indices = @transform_1, window_bounds = array<i64: 4, 8>}, {pipeline_mode = #tpu.pipeline_mode<synchronous>, transform_indices = @transform_2, window_bounds = array<i64: 4, 81>}, {pipeline_mode = #tpu.pipeline_mode<synchronous>, transform_indices = @transform_3, window_bounds = array<i64: 9, 256>}, {pipeline_mode = #tpu.pipeline_mode<synchronous>, transform_indices = @transform_4, window_bounds = array<i64: 4, 81>}, {pipeline_mode = #tpu.pipeline_mode<synchronous>, transform_indices = @transform_5, window_bounds = array<i64: 9, 64>}, {pipeline_mode = #tpu.pipeline_mode<synchronous>, transform_indices = @transform_6, window_bounds = array<i64: 256, 64>}, {pipeline_mode = #tpu.pipeline_mode<synchronous>, transform_indices = @transform_7, window_bounds = array<i64: 64, 256>}, {pipeline_mode = #tpu.pipeline_mode<synchronous>, transform_indices = @transform_8, window_bounds = array<i64: 8, 4>}, {pipeline_mode = #tpu.pipeline_mode<synchronous>, transform_indices = @transform_9, window_bounds = array<i64: 8, 1>}, {pipeline_mode = #tpu.pipeline_mode<synchronous>, transform_indices = @transform_10, window_bounds = array<i64: 8, 8>}, {pipeline_mode = #tpu.pipeline_mode<synchronous>, transform_indices = @transform_11, window_bounds = array<i64: 8, 1>}, {transform_indices = @transform_12, window_bounds = array<i64: 1, 8, 256>}]} {
    %c0 = arith.constant 0 : index
    %c0_0 = arith.constant 0 : index
    %c0_1 = arith.constant 0 : index
    %0 = vector.load %arg1[%c0, %c0_0, %c0_1] : memref<1x8x256xf32, #tpu.memory_space<vmem>>, vector<1x8x256xf32>
    %1 = vector.shape_cast %0 : vector<1x8x256xf32> to vector<8x256xf32>
    %c0_2 = arith.constant 0 : index
    %c0_3 = arith.constant 0 : index
    %2 = vector.load %arg11[%c0_2, %c0_3] : memref<8x8xf32, #tpu.memory_space<vmem>>, vector<8x8xf32>
    %cst = arith.constant dense<0.000000e+00> : vector<8x256xf32>
    %3 = tpu.matmul %2, %1, %cst {dimension_numbers = #tpu.dot_dimension_numbers<[1], [0], [0], [1], [0, 0, 1, 1], [], []>} : vector<8x8xf32>, vector<8x256xf32>, vector<8x256xf32> -> vector<8x256xf32>
    %cst_4 = arith.constant dense<0.000000e+00> : vector<8xf32>
    %4 = vector.multi_reduction <add>, %3, %cst_4 [1] : vector<8x256xf32> to vector<8xf32>
    %5 = vector.shape_cast %4 : vector<8xf32> to vector<8x1xf32>
    %cst_5 = arith.constant 3.906250e-03 : f32
    %6 = vector.broadcast %cst_5 : f32 to vector<8x1xf32>
    %7 = arith.mulf %5, %6 : vector<8x1xf32>
    %c0_6 = arith.constant 0 : index
    %c0_7 = arith.constant 0 : index
    %8 = vector.load %arg12[%c0_6, %c0_7] : memref<8x1xf32, #tpu.memory_space<vmem>>, vector<8x1xf32>
    %9 = arith.addf %7, %8 : vector<8x1xf32>
    %c0_8 = arith.constant 0 : index
    %c0_9 = arith.constant 0 : index
    %10 = vector.load %arg2[%c0_8, %c0_9] : memref<4x8xf32, #tpu.memory_space<vmem>>, vector<4x8xf32>
    %cst_10 = arith.constant dense<0.000000e+00> : vector<4x256xf32>
    %11 = tpu.matmul %10, %1, %cst_10 {dimension_numbers = #tpu.dot_dimension_numbers<[1], [0], [0], [1], [0, 0, 1, 1], [], []>} : vector<4x8xf32>, vector<8x256xf32>, vector<4x256xf32> -> vector<4x256xf32>
    %cst_11 = arith.constant 0.000000e+00 : f32
    %12 = vector.broadcast %cst_11 : f32 to vector<4x512xf32>
    %c0_12 = arith.constant 0 : index
    %c0_13 = arith.constant 0 : index
    %13 = vector.load %arg14[%c0_12, %c0_13] : memref<4x512xf32, #tpu.memory_space<vmem>>, vector<4x512xf32>
    tpu.vector_store %arg14[%c0_12, %c0_13], %12 {strides = array<i32>} : memref<4x512xf32, #tpu.memory_space<vmem>>, vector<4x512xf32>,
    %c0_14 = arith.constant 0 : index
    %c128 = arith.constant 128 : index
    %14 = vector.load %arg14[%c0_14, %c128] : memref<4x512xf32, #tpu.memory_space<vmem>>, vector<4x256xf32>
    tpu.vector_store %arg14[%c0_14, %c128], %11 {strides = array<i32>} : memref<4x512xf32, #tpu.memory_space<vmem>>, vector<4x256xf32>,
    %c0_15 = arith.constant 0 : index
    %c0_16 = arith.constant 0 : index
    %15 = vector.load %arg3[%c0_15, %c0_16] : memref<4x81xf32, #tpu.memory_space<vmem>>, vector<4x81xf32>
    %c0_17 = arith.constant 0 : index
    %c0_18 = arith.constant 0 : index
    %16 = vector.load %arg4[%c0_17, %c0_18] : memref<9x256xf32, #tpu.memory_space<vmem>>, vector<9x256xf32>
    %c0_19 = arith.constant 0 : index
    %c60 = arith.constant 60 : index
    %17 = vector.load %arg14[%c0_19, %c60] : memref<4x512xf32, #tpu.memory_space<vmem>>, vector<4x256xf32>
    %18 = vector.extract_strided_slice %15 {offsets = [0, 0], sizes = [4, 1], strides = [1, 1]} : vector<4x81xf32> to vector<4x1xf32>
    %19 = vector.broadcast %18 : vector<4x1xf32> to vector<4x256xf32>
    %20 = arith.mulf %17, %19 : vector<4x256xf32>
    %c0_20 = arith.constant 0 : index
    %c76 = arith.constant 76 : index
    %21 = vector.load %arg14[%c0_20, %c76] : memref<4x512xf32, #tpu.memory_space<vmem>>, vector<4x256xf32>
    %22 = vector.extract_strided_slice %15 {offsets = [0, 9], sizes = [4, 1], strides = [1, 1]} : vector<4x81xf32> to vector<4x1xf32>
    %23 = vector.broadcast %22 : vector<4x1xf32> to vector<4x256xf32>
    %24 = arith.mulf %21, %23 : vector<4x256xf32>
    %25 = arith.addf %20, %24 : vector<4x256xf32>
    %c0_21 = arith.constant 0 : index
    %c92 = arith.constant 92 : index
    %26 = vector.load %arg14[%c0_21, %c92] : memref<4x512xf32, #tpu.memory_space<vmem>>, vector<4x256xf32>
    %27 = vector.extract_strided_slice %15 {offsets = [0, 18], sizes = [4, 1], strides = [1, 1]} : vector<4x81xf32> to vector<4x1xf32>
    %28 = vector.broadcast %27 : vector<4x1xf32> to vector<4x256xf32>
    %29 = arith.mulf %26, %28 : vector<4x256xf32>
    %30 = arith.addf %25, %29 : vector<4x256xf32>
    %c0_22 = arith.constant 0 : index
    %c108 = arith.constant 108 : index
    %31 = vector.load %arg14[%c0_22, %c108] : memref<4x512xf32, #tpu.memory_space<vmem>>, vector<4x256xf32>
    %32 = vector.extract_strided_slice %15 {offsets = [0, 27], sizes = [4, 1], strides = [1, 1]} : vector<4x81xf32> to vector<4x1xf32>
    %33 = vector.broadcast %32 : vector<4x1xf32> to vector<4x256xf32>
    %34 = arith.mulf %31, %33 : vector<4x256xf32>
    %35 = arith.addf %30, %34 : vector<4x256xf32>
    %c0_23 = arith.constant 0 : index
    %c124 = arith.constant 124 : index
    %36 = vector.load %arg14[%c0_23, %c124] : memref<4x512xf32, #tpu.memory_space<vmem>>, vector<4x256xf32>
    %37 = vector.extract_strided_slice %15 {offsets = [0, 36], sizes = [4, 1], strides = [1, 1]} : vector<4x81xf32> to vector<4x1xf32>
    %38 = vector.broadcast %37 : vector<4x1xf32> to vector<4x256xf32>
    %39 = arith.mulf %36, %38 : vector<4x256xf32>
    %40 = arith.addf %35, %39 : vector<4x256xf32>
    %c0_24 = arith.constant 0 : index
    %c140 = arith.constant 140 : index
    %41 = vector.load %arg14[%c0_24, %c140] : memref<4x512xf32, #tpu.memory_space<vmem>>, vector<4x256xf32>
    %42 = vector.extract_strided_slice %15 {offsets = [0, 45], sizes = [4, 1], strides = [1, 1]} : vector<4x81xf32> to vector<4x1xf32>
    %43 = vector.broadcast %42 : vector<4x1xf32> to vector<4x256xf32>
    %44 = arith.mulf %41, %43 : vector<4x256xf32>
    %45 = arith.addf %40, %44 : vector<4x256xf32>
    %c0_25 = arith.constant 0 : index
    %c156 = arith.constant 156 : index
    %46 = vector.load %arg14[%c0_25, %c156] : memref<4x512xf32, #tpu.memory_space<vmem>>, vector<4x256xf32>
    %47 = vector.extract_strided_slice %15 {offsets = [0, 54], sizes = [4, 1], strides = [1, 1]} : vector<4x81xf32> to vector<4x1xf32>
    %48 = vector.broadcast %47 : vector<4x1xf32> to vector<4x256xf32>
    %49 = arith.mulf %46, %48 : vector<4x256xf32>
    %50 = arith.addf %45, %49 : vector<4x256xf32>
    %c0_26 = arith.constant 0 : index
    %c172 = arith.constant 172 : index
    %51 = vector.load %arg14[%c0_26, %c172] : memref<4x512xf32, #tpu.memory_space<vmem>>, vector<4x256xf32>
    %52 = vector.extract_strided_slice %15 {offsets = [0, 63], sizes = [4, 1], strides = [1, 1]} : vector<4x81xf32> to vector<4x1xf32>
    %53 = vector.broadcast %52 : vector<4x1xf32> to vector<4x256xf32>
    %54 = arith.mulf %51, %53 : vector<4x256xf32>
    %55 = arith.addf %50, %54 : vector<4x256xf32>
    %c0_27 = arith.constant 0 : index
    %c188 = arith.constant 188 : index
    %56 = vector.load %arg14[%c0_27, %c188] : memref<4x512xf32, #tpu.memory_space<vmem>>, vector<4x256xf32>
    %57 = vector.extract_strided_slice %15 {offsets = [0, 72], sizes = [4, 1], strides = [1, 1]} : vector<4x81xf32> to vector<4x1xf32>
    %58 = vector.broadcast %57 : vector<4x1xf32> to vector<4x256xf32>
    %59 = arith.mulf %56, %58 : vector<4x256xf32>
    %60 = arith.addf %55, %59 : vector<4x256xf32>
    %61 = vector.extract_strided_slice %16 {offsets = [0, 0], sizes = [1, 256], strides = [1, 1]} : vector<9x256xf32> to vector<1x256xf32>
    %62 = vector.broadcast %61 : vector<1x256xf32> to vector<4x256xf32>
    %63 = arith.mulf %60, %62 : vector<4x256xf32>
    %c0_28 = arith.constant 0 : index
    %c61 = arith.constant 61 : index
    %64 = vector.load %arg14[%c0_28, %c61] : memref<4x512xf32, #tpu.memory_space<vmem>>, vector<4x256xf32>
    %65 = vector.extract_strided_slice %15 {offsets = [0, 1], sizes = [4, 1], strides = [1, 1]} : vector<4x81xf32> to vector<4x1xf32>
    %66 = vector.broadcast %65 : vector<4x1xf32> to vector<4x256xf32>
    %67 = arith.mulf %64, %66 : vector<4x256xf32>
    %c0_29 = arith.constant 0 : index
    %c77 = arith.constant 77 : index
    %68 = vector.load %arg14[%c0_29, %c77] : memref<4x512xf32, #tpu.memory_space<vmem>>, vector<4x256xf32>
    %69 = vector.extract_strided_slice %15 {offsets = [0, 10], sizes = [4, 1], strides = [1, 1]} : vector<4x81xf32> to vector<4x1xf32>
    %70 = vector.broadcast %69 : vector<4x1xf32> to vector<4x256xf32>
    %71 = arith.mulf %68, %70 : vector<4x256xf32>
    %72 = arith.addf %67, %71 : vector<4x256xf32>
    %c0_30 = arith.constant 0 : index
    %c93 = arith.constant 93 : index
    %73 = vector.load %arg14[%c0_30, %c93] : memref<4x512xf32, #tpu.memory_space<vmem>>, vector<4x256xf32>
    %74 = vector.extract_strided_slice %15 {offsets = [0, 19], sizes = [4, 1], strides = [1, 1]} : vector<4x81xf32> to vector<4x1xf32>
    %75 = vector.broadcast %74 : vector<4x1xf32> to vector<4x256xf32>
    %76 = arith.mulf %73, %75 : vector<4x256xf32>
    %77 = arith.addf %72, %76 : vector<4x256xf32>
    %c0_31 = arith.constant 0 : index
    %c109 = arith.constant 109 : index
    %78 = vector.load %arg14[%c0_31, %c109] : memref<4x512xf32, #tpu.memory_space<vmem>>, vector<4x256xf32>
    %79 = vector.extract_strided_slice %15 {offsets = [0, 28], sizes = [4, 1], strides = [1, 1]} : vector<4x81xf32> to vector<4x1xf32>
    %80 = vector.broadcast %79 : vector<4x1xf32> to vector<4x256xf32>
    %81 = arith.mulf %78, %80 : vector<4x256xf32>
    %82 = arith.addf %77, %81 : vector<4x256xf32>
    %c0_32 = arith.constant 0 : index
    %c125 = arith.constant 125 : index
    %83 = vector.load %arg14[%c0_32, %c125] : memref<4x512xf32, #tpu.memory_space<vmem>>, vector<4x256xf32>
    %84 = vector.extract_strided_slice %15 {offsets = [0, 37], sizes = [4, 1], strides = [1, 1]} : vector<4x81xf32> to vector<4x1xf32>
    %85 = vector.broadcast %84 : vector<4x1xf32> to vector<4x256xf32>
    %86 = arith.mulf %83, %85 : vector<4x256xf32>
    %87 = arith.addf %82, %86 : vector<4x256xf32>
    %c0_33 = arith.constant 0 : index
    %c141 = arith.constant 141 : index
    %88 = vector.load %arg14[%c0_33, %c141] : memref<4x512xf32, #tpu.memory_space<vmem>>, vector<4x256xf32>
    %89 = vector.extract_strided_slice %15 {offsets = [0, 46], sizes = [4, 1], strides = [1, 1]} : vector<4x81xf32> to vector<4x1xf32>
    %90 = vector.broadcast %89 : vector<4x1xf32> to vector<4x256xf32>
    %91 = arith.mulf %88, %90 : vector<4x256xf32>
    %92 = arith.addf %87, %91 : vector<4x256xf32>
    %c0_34 = arith.constant 0 : index
    %c157 = arith.constant 157 : index
    %93 = vector.load %arg14[%c0_34, %c157] : memref<4x512xf32, #tpu.memory_space<vmem>>, vector<4x256xf32>
    %94 = vector.extract_strided_slice %15 {offsets = [0, 55], sizes = [4, 1], strides = [1, 1]} : vector<4x81xf32> to vector<4x1xf32>
    %95 = vector.broadcast %94 : vector<4x1xf32> to vector<4x256xf32>
    %96 = arith.mulf %93, %95 : vector<4x256xf32>
    %97 = arith.addf %92, %96 : vector<4x256xf32>
    %c0_35 = arith.constant 0 : index
    %c173 = arith.constant 173 : index
    %98 = vector.load %arg14[%c0_35, %c173] : memref<4x512xf32, #tpu.memory_space<vmem>>, vector<4x256xf32>
    %99 = vector.extract_strided_slice %15 {offsets = [0, 64], sizes = [4, 1], strides = [1, 1]} : vector<4x81xf32> to vector<4x1xf32>
    %100 = vector.broadcast %99 : vector<4x1xf32> to vector<4x256xf32>
    %101 = arith.mulf %98, %100 : vector<4x256xf32>
    %102 = arith.addf %97, %101 : vector<4x256xf32>
    %c0_36 = arith.constant 0 : index
    %c189 = arith.constant 189 : index
    %103 = vector.load %arg14[%c0_36, %c189] : memref<4x512xf32, #tpu.memory_space<vmem>>, vector<4x256xf32>
    %104 = vector.extract_strided_slice %15 {offsets = [0, 73], sizes = [4, 1], strides = [1, 1]} : vector<4x81xf32> to vector<4x1xf32>
    %105 = vector.broadcast %104 : vector<4x1xf32> to vector<4x256xf32>
    %106 = arith.mulf %103, %105 : vector<4x256xf32>
    %107 = arith.addf %102, %106 : vector<4x256xf32>
    %108 = vector.extract_strided_slice %16 {offsets = [1, 0], sizes = [1, 256], strides = [1, 1]} : vector<9x256xf32> to vector<1x256xf32>
    %109 = vector.broadcast %108 : vector<1x256xf32> to vector<4x256xf32>
    %110 = arith.mulf %107, %109 : vector<4x256xf32>
    %111 = arith.addf %63, %110 : vector<4x256xf32>
    %c0_37 = arith.constant 0 : index
    %c62 = arith.constant 62 : index
    %112 = vector.load %arg14[%c0_37, %c62] : memref<4x512xf32, #tpu.memory_space<vmem>>, vector<4x256xf32>
    %113 = vector.extract_strided_slice %15 {offsets = [0, 2], sizes = [4, 1], strides = [1, 1]} : vector<4x81xf32> to vector<4x1xf32>
    %114 = vector.broadcast %113 : vector<4x1xf32> to vector<4x256xf32>
    %115 = arith.mulf %112, %114 : vector<4x256xf32>
    %c0_38 = arith.constant 0 : index
    %c78 = arith.constant 78 : index
    %116 = vector.load %arg14[%c0_38, %c78] : memref<4x512xf32, #tpu.memory_space<vmem>>, vector<4x256xf32>
    %117 = vector.extract_strided_slice %15 {offsets = [0, 11], sizes = [4, 1], strides = [1, 1]} : vector<4x81xf32> to vector<4x1xf32>
    %118 = vector.broadcast %117 : vector<4x1xf32> to vector<4x256xf32>
    %119 = arith.mulf %116, %118 : vector<4x256xf32>
    %120 = arith.addf %115, %119 : vector<4x256xf32>
    %c0_39 = arith.constant 0 : index
    %c94 = arith.constant 94 : index
    %121 = vector.load %arg14[%c0_39, %c94] : memref<4x512xf32, #tpu.memory_space<vmem>>, vector<4x256xf32>
    %122 = vector.extract_strided_slice %15 {offsets = [0, 20], sizes = [4, 1], strides = [1, 1]} : vector<4x81xf32> to vector<4x1xf32>
    %123 = vector.broadcast %122 : vector<4x1xf32> to vector<4x256xf32>
    %124 = arith.mulf %121, %123 : vector<4x256xf32>
    %125 = arith.addf %120, %124 : vector<4x256xf32>
    %c0_40 = arith.constant 0 : index
    %c110 = arith.constant 110 : index
    %126 = vector.load %arg14[%c0_40, %c110] : memref<4x512xf32, #tpu.memory_space<vmem>>, vector<4x256xf32>
    %127 = vector.extract_strided_slice %15 {offsets = [0, 29], sizes = [4, 1], strides = [1, 1]} : vector<4x81xf32> to vector<4x1xf32>
    %128 = vector.broadcast %127 : vector<4x1xf32> to vector<4x256xf32>
    %129 = arith.mulf %126, %128 : vector<4x256xf32>
    %130 = arith.addf %125, %129 : vector<4x256xf32>
    %c0_41 = arith.constant 0 : index
    %c126 = arith.constant 126 : index
    %131 = vector.load %arg14[%c0_41, %c126] : memref<4x512xf32, #tpu.memory_space<vmem>>, vector<4x256xf32>
    %132 = vector.extract_strided_slice %15 {offsets = [0, 38], sizes = [4, 1], strides = [1, 1]} : vector<4x81xf32> to vector<4x1xf32>
    %133 = vector.broadcast %132 : vector<4x1xf32> to vector<4x256xf32>
    %134 = arith.mulf %131, %133 : vector<4x256xf32>
    %135 = arith.addf %130, %134 : vector<4x256xf32>
    %c0_42 = arith.constant 0 : index
    %c142 = arith.constant 142 : index
    %136 = vector.load %arg14[%c0_42, %c142] : memref<4x512xf32, #tpu.memory_space<vmem>>, vector<4x256xf32>
    %137 = vector.extract_strided_slice %15 {offsets = [0, 47], sizes = [4, 1], strides = [1, 1]} : vector<4x81xf32> to vector<4x1xf32>
    %138 = vector.broadcast %137 : vector<4x1xf32> to vector<4x256xf32>
    %139 = arith.mulf %136, %138 : vector<4x256xf32>
    %140 = arith.addf %135, %139 : vector<4x256xf32>
    %c0_43 = arith.constant 0 : index
    %c158 = arith.constant 158 : index
    %141 = vector.load %arg14[%c0_43, %c158] : memref<4x512xf32, #tpu.memory_space<vmem>>, vector<4x256xf32>
    %142 = vector.extract_strided_slice %15 {offsets = [0, 56], sizes = [4, 1], strides = [1, 1]} : vector<4x81xf32> to vector<4x1xf32>
    %143 = vector.broadcast %142 : vector<4x1xf32> to vector<4x256xf32>
    %144 = arith.mulf %141, %143 : vector<4x256xf32>
    %145 = arith.addf %140, %144 : vector<4x256xf32>
    %c0_44 = arith.constant 0 : index
    %c174 = arith.constant 174 : index
    %146 = vector.load %arg14[%c0_44, %c174] : memref<4x512xf32, #tpu.memory_space<vmem>>, vector<4x256xf32>
    %147 = vector.extract_strided_slice %15 {offsets = [0, 65], sizes = [4, 1], strides = [1, 1]} : vector<4x81xf32> to vector<4x1xf32>
    %148 = vector.broadcast %147 : vector<4x1xf32> to vector<4x256xf32>
    %149 = arith.mulf %146, %148 : vector<4x256xf32>
    %150 = arith.addf %145, %149 : vector<4x256xf32>
    %c0_45 = arith.constant 0 : index
    %c190 = arith.constant 190 : index
    %151 = vector.load %arg14[%c0_45, %c190] : memref<4x512xf32, #tpu.memory_space<vmem>>, vector<4x256xf32>
    %152 = vector.extract_strided_slice %15 {offsets = [0, 74], sizes = [4, 1], strides = [1, 1]} : vector<4x81xf32> to vector<4x1xf32>
    %153 = vector.broadcast %152 : vector<4x1xf32> to vector<4x256xf32>
    %154 = arith.mulf %151, %153 : vector<4x256xf32>
    %155 = arith.addf %150, %154 : vector<4x256xf32>
    %156 = vector.extract_strided_slice %16 {offsets = [2, 0], sizes = [1, 256], strides = [1, 1]} : vector<9x256xf32> to vector<1x256xf32>
    %157 = vector.broadcast %156 : vector<1x256xf32> to vector<4x256xf32>
    %158 = arith.mulf %155, %157 : vector<4x256xf32>
    %159 = arith.addf %111, %158 : vector<4x256xf32>
    %c0_46 = arith.constant 0 : index
    %c63 = arith.constant 63 : index
    %160 = vector.load %arg14[%c0_46, %c63] : memref<4x512xf32, #tpu.memory_space<vmem>>, vector<4x256xf32>
    %161 = vector.extract_strided_slice %15 {offsets = [0, 3], sizes = [4, 1], strides = [1, 1]} : vector<4x81xf32> to vector<4x1xf32>
    %162 = vector.broadcast %161 : vector<4x1xf32> to vector<4x256xf32>
    %163 = arith.mulf %160, %162 : vector<4x256xf32>
    %c0_47 = arith.constant 0 : index
    %c79 = arith.constant 79 : index
    %164 = vector.load %arg14[%c0_47, %c79] : memref<4x512xf32, #tpu.memory_space<vmem>>, vector<4x256xf32>
    %165 = vector.extract_strided_slice %15 {offsets = [0, 12], sizes = [4, 1], strides = [1, 1]} : vector<4x81xf32> to vector<4x1xf32>
    %166 = vector.broadcast %165 : vector<4x1xf32> to vector<4x256xf32>
    %167 = arith.mulf %164, %166 : vector<4x256xf32>
    %168 = arith.addf %163, %167 : vector<4x256xf32>
    %c0_48 = arith.constant 0 : index
    %c95 = arith.constant 95 : index
    %169 = vector.load %arg14[%c0_48, %c95] : memref<4x512xf32, #tpu.memory_space<vmem>>, vector<4x256xf32>
    %170 = vector.extract_strided_slice %15 {offsets = [0, 21], sizes = [4, 1], strides = [1, 1]} : vector<4x81xf32> to vector<4x1xf32>
    %171 = vector.broadcast %170 : vector<4x1xf32> to vector<4x256xf32>
    %172 = arith.mulf %169, %171 : vector<4x256xf32>
    %173 = arith.addf %168, %172 : vector<4x256xf32>
    %c0_49 = arith.constant 0 : index
    %c111 = arith.constant 111 : index
    %174 = vector.load %arg14[%c0_49, %c111] : memref<4x512xf32, #tpu.memory_space<vmem>>, vector<4x256xf32>
    %175 = vector.extract_strided_slice %15 {offsets = [0, 30], sizes = [4, 1], strides = [1, 1]} : vector<4x81xf32> to vector<4x1xf32>
    %176 = vector.broadcast %175 : vector<4x1xf32> to vector<4x256xf32>
    %177 = arith.mulf %174, %176 : vector<4x256xf32>
    %178 = arith.addf %173, %177 : vector<4x256xf32>
    %c0_50 = arith.constant 0 : index
    %c127 = arith.constant 127 : index
    %179 = vector.load %arg14[%c0_50, %c127] : memref<4x512xf32, #tpu.memory_space<vmem>>, vector<4x256xf32>
    %180 = vector.extract_strided_slice %15 {offsets = [0, 39], sizes = [4, 1], strides = [1, 1]} : vector<4x81xf32> to vector<4x1xf32>
    %181 = vector.broadcast %180 : vector<4x1xf32> to vector<4x256xf32>
    %182 = arith.mulf %179, %181 : vector<4x256xf32>
    %183 = arith.addf %178, %182 : vector<4x256xf32>
    %c0_51 = arith.constant 0 : index
    %c143 = arith.constant 143 : index
    %184 = vector.load %arg14[%c0_51, %c143] : memref<4x512xf32, #tpu.memory_space<vmem>>, vector<4x256xf32>
    %185 = vector.extract_strided_slice %15 {offsets = [0, 48], sizes = [4, 1], strides = [1, 1]} : vector<4x81xf32> to vector<4x1xf32>
    %186 = vector.broadcast %185 : vector<4x1xf32> to vector<4x256xf32>
    %187 = arith.mulf %184, %186 : vector<4x256xf32>
    %188 = arith.addf %183, %187 : vector<4x256xf32>
    %c0_52 = arith.constant 0 : index
    %c159 = arith.constant 159 : index
    %189 = vector.load %arg14[%c0_52, %c159] : memref<4x512xf32, #tpu.memory_space<vmem>>, vector<4x256xf32>
    %190 = vector.extract_strided_slice %15 {offsets = [0, 57], sizes = [4, 1], strides = [1, 1]} : vector<4x81xf32> to vector<4x1xf32>
    %191 = vector.broadcast %190 : vector<4x1xf32> to vector<4x256xf32>
    %192 = arith.mulf %189, %191 : vector<4x256xf32>
    %193 = arith.addf %188, %192 : vector<4x256xf32>
    %c0_53 = arith.constant 0 : index
    %c175 = arith.constant 175 : index
    %194 = vector.load %arg14[%c0_53, %c175] : memref<4x512xf32, #tpu.memory_space<vmem>>, vector<4x256xf32>
    %195 = vector.extract_strided_slice %15 {offsets = [0, 66], sizes = [4, 1], strides = [1, 1]} : vector<4x81xf32> to vector<4x1xf32>
    %196 = vector.broadcast %195 : vector<4x1xf32> to vector<4x256xf32>
    %197 = arith.mulf %194, %196 : vector<4x256xf32>
    %198 = arith.addf %193, %197 : vector<4x256xf32>
    %c0_54 = arith.constant 0 : index
    %c191 = arith.constant 191 : index
    %199 = vector.load %arg14[%c0_54, %c191] : memref<4x512xf32, #tpu.memory_space<vmem>>, vector<4x256xf32>
    %200 = vector.extract_strided_slice %15 {offsets = [0, 75], sizes = [4, 1], strides = [1, 1]} : vector<4x81xf32> to vector<4x1xf32>
    %201 = vector.broadcast %200 : vector<4x1xf32> to vector<4x256xf32>
    %202 = arith.mulf %199, %201 : vector<4x256xf32>
    %203 = arith.addf %198, %202 : vector<4x256xf32>
    %204 = vector.extract_strided_slice %16 {offsets = [3, 0], sizes = [1, 256], strides = [1, 1]} : vector<9x256xf32> to vector<1x256xf32>
    %205 = vector.broadcast %204 : vector<1x256xf32> to vector<4x256xf32>
    %206 = arith.mulf %203, %205 : vector<4x256xf32>
    %207 = arith.addf %159, %206 : vector<4x256xf32>
    %c0_55 = arith.constant 0 : index
    %c64 = arith.constant 64 : index
    %208 = vector.load %arg14[%c0_55, %c64] : memref<4x512xf32, #tpu.memory_space<vmem>>, vector<4x256xf32>
    %209 = vector.extract_strided_slice %15 {offsets = [0, 4], sizes = [4, 1], strides = [1, 1]} : vector<4x81xf32> to vector<4x1xf32>
    %210 = vector.broadcast %209 : vector<4x1xf32> to vector<4x256xf32>
    %211 = arith.mulf %208, %210 : vector<4x256xf32>
    %c0_56 = arith.constant 0 : index
    %c80 = arith.constant 80 : index
    %212 = vector.load %arg14[%c0_56, %c80] : memref<4x512xf32, #tpu.memory_space<vmem>>, vector<4x256xf32>
    %213 = vector.extract_strided_slice %15 {offsets = [0, 13], sizes = [4, 1], strides = [1, 1]} : vector<4x81xf32> to vector<4x1xf32>
    %214 = vector.broadcast %213 : vector<4x1xf32> to vector<4x256xf32>
    %215 = arith.mulf %212, %214 : vector<4x256xf32>
    %216 = arith.addf %211, %215 : vector<4x256xf32>
    %c0_57 = arith.constant 0 : index
    %c96 = arith.constant 96 : index
    %217 = vector.load %arg14[%c0_57, %c96] : memref<4x512xf32, #tpu.memory_space<vmem>>, vector<4x256xf32>
    %218 = vector.extract_strided_slice %15 {offsets = [0, 22], sizes = [4, 1], strides = [1, 1]} : vector<4x81xf32> to vector<4x1xf32>
    %219 = vector.broadcast %218 : vector<4x1xf32> to vector<4x256xf32>
    %220 = arith.mulf %217, %219 : vector<4x256xf32>
    %221 = arith.addf %216, %220 : vector<4x256xf32>
    %c0_58 = arith.constant 0 : index
    %c112 = arith.constant 112 : index
    %222 = vector.load %arg14[%c0_58, %c112] : memref<4x512xf32, #tpu.memory_space<vmem>>, vector<4x256xf32>
    %223 = vector.extract_strided_slice %15 {offsets = [0, 31], sizes = [4, 1], strides = [1, 1]} : vector<4x81xf32> to vector<4x1xf32>
    %224 = vector.broadcast %223 : vector<4x1xf32> to vector<4x256xf32>
    %225 = arith.mulf %222, %224 : vector<4x256xf32>
    %226 = arith.addf %221, %225 : vector<4x256xf32>
    %c0_59 = arith.constant 0 : index
    %c128_60 = arith.constant 128 : index
    %227 = vector.load %arg14[%c0_59, %c128_60] : memref<4x512xf32, #tpu.memory_space<vmem>>, vector<4x256xf32>
    %228 = vector.extract_strided_slice %15 {offsets = [0, 40], sizes = [4, 1], strides = [1, 1]} : vector<4x81xf32> to vector<4x1xf32>
    %229 = vector.broadcast %228 : vector<4x1xf32> to vector<4x256xf32>
    %230 = arith.mulf %227, %229 : vector<4x256xf32>
    %231 = arith.addf %226, %230 : vector<4x256xf32>
    %c0_61 = arith.constant 0 : index
    %c144 = arith.constant 144 : index
    %232 = vector.load %arg14[%c0_61, %c144] : memref<4x512xf32, #tpu.memory_space<vmem>>, vector<4x256xf32>
    %233 = vector.extract_strided_slice %15 {offsets = [0, 49], sizes = [4, 1], strides = [1, 1]} : vector<4x81xf32> to vector<4x1xf32>
    %234 = vector.broadcast %233 : vector<4x1xf32> to vector<4x256xf32>
    %235 = arith.mulf %232, %234 : vector<4x256xf32>
    %236 = arith.addf %231, %235 : vector<4x256xf32>
    %c0_62 = arith.constant 0 : index
    %c160 = arith.constant 160 : index
    %237 = vector.load %arg14[%c0_62, %c160] : memref<4x512xf32, #tpu.memory_space<vmem>>, vector<4x256xf32>
    %238 = vector.extract_strided_slice %15 {offsets = [0, 58], sizes = [4, 1], strides = [1, 1]} : vector<4x81xf32> to vector<4x1xf32>
    %239 = vector.broadcast %238 : vector<4x1xf32> to vector<4x256xf32>
    %240 = arith.mulf %237, %239 : vector<4x256xf32>
    %241 = arith.addf %236, %240 : vector<4x256xf32>
    %c0_63 = arith.constant 0 : index
    %c176 = arith.constant 176 : index
    %242 = vector.load %arg14[%c0_63, %c176] : memref<4x512xf32, #tpu.memory_space<vmem>>, vector<4x256xf32>
    %243 = vector.extract_strided_slice %15 {offsets = [0, 67], sizes = [4, 1], strides = [1, 1]} : vector<4x81xf32> to vector<4x1xf32>
    %244 = vector.broadcast %243 : vector<4x1xf32> to vector<4x256xf32>
    %245 = arith.mulf %242, %244 : vector<4x256xf32>
    %246 = arith.addf %241, %245 : vector<4x256xf32>
    %c0_64 = arith.constant 0 : index
    %c192 = arith.constant 192 : index
    %247 = vector.load %arg14[%c0_64, %c192] : memref<4x512xf32, #tpu.memory_space<vmem>>, vector<4x256xf32>
    %248 = vector.extract_strided_slice %15 {offsets = [0, 76], sizes = [4, 1], strides = [1, 1]} : vector<4x81xf32> to vector<4x1xf32>
    %249 = vector.broadcast %248 : vector<4x1xf32> to vector<4x256xf32>
    %250 = arith.mulf %247, %249 : vector<4x256xf32>
    %251 = arith.addf %246, %250 : vector<4x256xf32>
    %252 = vector.extract_strided_slice %16 {offsets = [4, 0], sizes = [1, 256], strides = [1, 1]} : vector<9x256xf32> to vector<1x256xf32>
    %253 = vector.broadcast %252 : vector<1x256xf32> to vector<4x256xf32>
    %254 = arith.mulf %251, %253 : vector<4x256xf32>
    %255 = arith.addf %207, %254 : vector<4x256xf32>
    %c0_65 = arith.constant 0 : index
    %c65 = arith.constant 65 : index
    %256 = vector.load %arg14[%c0_65, %c65] : memref<4x512xf32, #tpu.memory_space<vmem>>, vector<4x256xf32>
    %257 = vector.extract_strided_slice %15 {offsets = [0, 5], sizes = [4, 1], strides = [1, 1]} : vector<4x81xf32> to vector<4x1xf32>
    %258 = vector.broadcast %257 : vector<4x1xf32> to vector<4x256xf32>
    %259 = arith.mulf %256, %258 : vector<4x256xf32>
    %c0_66 = arith.constant 0 : index
    %c81 = arith.constant 81 : index
    %260 = vector.load %arg14[%c0_66, %c81] : memref<4x512xf32, #tpu.memory_space<vmem>>, vector<4x256xf32>
    %261 = vector.extract_strided_slice %15 {offsets = [0, 14], sizes = [4, 1], strides = [1, 1]} : vector<4x81xf32> to vector<4x1xf32>
    %262 = vector.broadcast %261 : vector<4x1xf32> to vector<4x256xf32>
    %263 = arith.mulf %260, %262 : vector<4x256xf32>
    %264 = arith.addf %259, %263 : vector<4x256xf32>
    %c0_67 = arith.constant 0 : index
    %c97 = arith.constant 97 : index
    %265 = vector.load %arg14[%c0_67, %c97] : memref<4x512xf32, #tpu.memory_space<vmem>>, vector<4x256xf32>
    %266 = vector.extract_strided_slice %15 {offsets = [0, 23], sizes = [4, 1], strides = [1, 1]} : vector<4x81xf32> to vector<4x1xf32>
    %267 = vector.broadcast %266 : vector<4x1xf32> to vector<4x256xf32>
    %268 = arith.mulf %265, %267 : vector<4x256xf32>
    %269 = arith.addf %264, %268 : vector<4x256xf32>
    %c0_68 = arith.constant 0 : index
    %c113 = arith.constant 113 : index
    %270 = vector.load %arg14[%c0_68, %c113] : memref<4x512xf32, #tpu.memory_space<vmem>>, vector<4x256xf32>
    %271 = vector.extract_strided_slice %15 {offsets = [0, 32], sizes = [4, 1], strides = [1, 1]} : vector<4x81xf32> to vector<4x1xf32>
    %272 = vector.broadcast %271 : vector<4x1xf32> to vector<4x256xf32>
    %273 = arith.mulf %270, %272 : vector<4x256xf32>
    %274 = arith.addf %269, %273 : vector<4x256xf32>
    %c0_69 = arith.constant 0 : index
    %c129 = arith.constant 129 : index
    %275 = vector.load %arg14[%c0_69, %c129] : memref<4x512xf32, #tpu.memory_space<vmem>>, vector<4x256xf32>
    %276 = vector.extract_strided_slice %15 {offsets = [0, 41], sizes = [4, 1], strides = [1, 1]} : vector<4x81xf32> to vector<4x1xf32>
    %277 = vector.broadcast %276 : vector<4x1xf32> to vector<4x256xf32>
    %278 = arith.mulf %275, %277 : vector<4x256xf32>
    %279 = arith.addf %274, %278 : vector<4x256xf32>
    %c0_70 = arith.constant 0 : index
    %c145 = arith.constant 145 : index
    %280 = vector.load %arg14[%c0_70, %c145] : memref<4x512xf32, #tpu.memory_space<vmem>>, vector<4x256xf32>
    %281 = vector.extract_strided_slice %15 {offsets = [0, 50], sizes = [4, 1], strides = [1, 1]} : vector<4x81xf32> to vector<4x1xf32>
    %282 = vector.broadcast %281 : vector<4x1xf32> to vector<4x256xf32>
    %283 = arith.mulf %280, %282 : vector<4x256xf32>
    %284 = arith.addf %279, %283 : vector<4x256xf32>
    %c0_71 = arith.constant 0 : index
    %c161 = arith.constant 161 : index
    %285 = vector.load %arg14[%c0_71, %c161] : memref<4x512xf32, #tpu.memory_space<vmem>>, vector<4x256xf32>
    %286 = vector.extract_strided_slice %15 {offsets = [0, 59], sizes = [4, 1], strides = [1, 1]} : vector<4x81xf32> to vector<4x1xf32>
    %287 = vector.broadcast %286 : vector<4x1xf32> to vector<4x256xf32>
    %288 = arith.mulf %285, %287 : vector<4x256xf32>
    %289 = arith.addf %284, %288 : vector<4x256xf32>
    %c0_72 = arith.constant 0 : index
    %c177 = arith.constant 177 : index
    %290 = vector.load %arg14[%c0_72, %c177] : memref<4x512xf32, #tpu.memory_space<vmem>>, vector<4x256xf32>
    %291 = vector.extract_strided_slice %15 {offsets = [0, 68], sizes = [4, 1], strides = [1, 1]} : vector<4x81xf32> to vector<4x1xf32>
    %292 = vector.broadcast %291 : vector<4x1xf32> to vector<4x256xf32>
    %293 = arith.mulf %290, %292 : vector<4x256xf32>
    %294 = arith.addf %289, %293 : vector<4x256xf32>
    %c0_73 = arith.constant 0 : index
    %c193 = arith.constant 193 : index
    %295 = vector.load %arg14[%c0_73, %c193] : memref<4x512xf32, #tpu.memory_space<vmem>>, vector<4x256xf32>
    %296 = vector.extract_strided_slice %15 {offsets = [0, 77], sizes = [4, 1], strides = [1, 1]} : vector<4x81xf32> to vector<4x1xf32>
    %297 = vector.broadcast %296 : vector<4x1xf32> to vector<4x256xf32>
    %298 = arith.mulf %295, %297 : vector<4x256xf32>
    %299 = arith.addf %294, %298 : vector<4x256xf32>
    %300 = vector.extract_strided_slice %16 {offsets = [5, 0], sizes = [1, 256], strides = [1, 1]} : vector<9x256xf32> to vector<1x256xf32>
    %301 = vector.broadcast %300 : vector<1x256xf32> to vector<4x256xf32>
    %302 = arith.mulf %299, %301 : vector<4x256xf32>
    %303 = arith.addf %255, %302 : vector<4x256xf32>
    %c0_74 = arith.constant 0 : index
    %c66 = arith.constant 66 : index
    %304 = vector.load %arg14[%c0_74, %c66] : memref<4x512xf32, #tpu.memory_space<vmem>>, vector<4x256xf32>
    %305 = vector.extract_strided_slice %15 {offsets = [0, 6], sizes = [4, 1], strides = [1, 1]} : vector<4x81xf32> to vector<4x1xf32>
    %306 = vector.broadcast %305 : vector<4x1xf32> to vector<4x256xf32>
    %307 = arith.mulf %304, %306 : vector<4x256xf32>
    %c0_75 = arith.constant 0 : index
    %c82 = arith.constant 82 : index
    %308 = vector.load %arg14[%c0_75, %c82] : memref<4x512xf32, #tpu.memory_space<vmem>>, vector<4x256xf32>
    %309 = vector.extract_strided_slice %15 {offsets = [0, 15], sizes = [4, 1], strides = [1, 1]} : vector<4x81xf32> to vector<4x1xf32>
    %310 = vector.broadcast %309 : vector<4x1xf32> to vector<4x256xf32>
    %311 = arith.mulf %308, %310 : vector<4x256xf32>
    %312 = arith.addf %307, %311 : vector<4x256xf32>
    %c0_76 = arith.constant 0 : index
    %c98 = arith.constant 98 : index
    %313 = vector.load %arg14[%c0_76, %c98] : memref<4x512xf32, #tpu.memory_space<vmem>>, vector<4x256xf32>
    %314 = vector.extract_strided_slice %15 {offsets = [0, 24], sizes = [4, 1], strides = [1, 1]} : vector<4x81xf32> to vector<4x1xf32>
    %315 = vector.broadcast %314 : vector<4x1xf32> to vector<4x256xf32>
    %316 = arith.mulf %313, %315 : vector<4x256xf32>
    %317 = arith.addf %312, %316 : vector<4x256xf32>
    %c0_77 = arith.constant 0 : index
    %c114 = arith.constant 114 : index
    %318 = vector.load %arg14[%c0_77, %c114] : memref<4x512xf32, #tpu.memory_space<vmem>>, vector<4x256xf32>
    %319 = vector.extract_strided_slice %15 {offsets = [0, 33], sizes = [4, 1], strides = [1, 1]} : vector<4x81xf32> to vector<4x1xf32>
    %320 = vector.broadcast %319 : vector<4x1xf32> to vector<4x256xf32>
    %321 = arith.mulf %318, %320 : vector<4x256xf32>
    %322 = arith.addf %317, %321 : vector<4x256xf32>
    %c0_78 = arith.constant 0 : index
    %c130 = arith.constant 130 : index
    %323 = vector.load %arg14[%c0_78, %c130] : memref<4x512xf32, #tpu.memory_space<vmem>>, vector<4x256xf32>
    %324 = vector.extract_strided_slice %15 {offsets = [0, 42], sizes = [4, 1], strides = [1, 1]} : vector<4x81xf32> to vector<4x1xf32>
    %325 = vector.broadcast %324 : vector<4x1xf32> to vector<4x256xf32>
    %326 = arith.mulf %323, %325 : vector<4x256xf32>
    %327 = arith.addf %322, %326 : vector<4x256xf32>
    %c0_79 = arith.constant 0 : index
    %c146 = arith.constant 146 : index
    %328 = vector.load %arg14[%c0_79, %c146] : memref<4x512xf32, #tpu.memory_space<vmem>>, vector<4x256xf32>
    %329 = vector.extract_strided_slice %15 {offsets = [0, 51], sizes = [4, 1], strides = [1, 1]} : vector<4x81xf32> to vector<4x1xf32>
    %330 = vector.broadcast %329 : vector<4x1xf32> to vector<4x256xf32>
    %331 = arith.mulf %328, %330 : vector<4x256xf32>
    %332 = arith.addf %327, %331 : vector<4x256xf32>
    %c0_80 = arith.constant 0 : index
    %c162 = arith.constant 162 : index
    %333 = vector.load %arg14[%c0_80, %c162] : memref<4x512xf32, #tpu.memory_space<vmem>>, vector<4x256xf32>
    %334 = vector.extract_strided_slice %15 {offsets = [0, 60], sizes = [4, 1], strides = [1, 1]} : vector<4x81xf32> to vector<4x1xf32>
    %335 = vector.broadcast %334 : vector<4x1xf32> to vector<4x256xf32>
    %336 = arith.mulf %333, %335 : vector<4x256xf32>
    %337 = arith.addf %332, %336 : vector<4x256xf32>
    %c0_81 = arith.constant 0 : index
    %c178 = arith.constant 178 : index
    %338 = vector.load %arg14[%c0_81, %c178] : memref<4x512xf32, #tpu.memory_space<vmem>>, vector<4x256xf32>
    %339 = vector.extract_strided_slice %15 {offsets = [0, 69], sizes = [4, 1], strides = [1, 1]} : vector<4x81xf32> to vector<4x1xf32>
    %340 = vector.broadcast %339 : vector<4x1xf32> to vector<4x256xf32>
    %341 = arith.mulf %338, %340 : vector<4x256xf32>
    %342 = arith.addf %337, %341 : vector<4x256xf32>
    %c0_82 = arith.constant 0 : index
    %c194 = arith.constant 194 : index
    %343 = vector.load %arg14[%c0_82, %c194] : memref<4x512xf32, #tpu.memory_space<vmem>>, vector<4x256xf32>
    %344 = vector.extract_strided_slice %15 {offsets = [0, 78], sizes = [4, 1], strides = [1, 1]} : vector<4x81xf32> to vector<4x1xf32>
    %345 = vector.broadcast %344 : vector<4x1xf32> to vector<4x256xf32>
    %346 = arith.mulf %343, %345 : vector<4x256xf32>
    %347 = arith.addf %342, %346 : vector<4x256xf32>
    %348 = vector.extract_strided_slice %16 {offsets = [6, 0], sizes = [1, 256], strides = [1, 1]} : vector<9x256xf32> to vector<1x256xf32>
    %349 = vector.broadcast %348 : vector<1x256xf32> to vector<4x256xf32>
    %350 = arith.mulf %347, %349 : vector<4x256xf32>
    %351 = arith.addf %303, %350 : vector<4x256xf32>
    %c0_83 = arith.constant 0 : index
    %c67 = arith.constant 67 : index
    %352 = vector.load %arg14[%c0_83, %c67] : memref<4x512xf32, #tpu.memory_space<vmem>>, vector<4x256xf32>
    %353 = vector.extract_strided_slice %15 {offsets = [0, 7], sizes = [4, 1], strides = [1, 1]} : vector<4x81xf32> to vector<4x1xf32>
    %354 = vector.broadcast %353 : vector<4x1xf32> to vector<4x256xf32>
    %355 = arith.mulf %352, %354 : vector<4x256xf32>
    %c0_84 = arith.constant 0 : index
    %c83 = arith.constant 83 : index
    %356 = vector.load %arg14[%c0_84, %c83] : memref<4x512xf32, #tpu.memory_space<vmem>>, vector<4x256xf32>
    %357 = vector.extract_strided_slice %15 {offsets = [0, 16], sizes = [4, 1], strides = [1, 1]} : vector<4x81xf32> to vector<4x1xf32>
    %358 = vector.broadcast %357 : vector<4x1xf32> to vector<4x256xf32>
    %359 = arith.mulf %356, %358 : vector<4x256xf32>
    %360 = arith.addf %355, %359 : vector<4x256xf32>
    %c0_85 = arith.constant 0 : index
    %c99 = arith.constant 99 : index
    %361 = vector.load %arg14[%c0_85, %c99] : memref<4x512xf32, #tpu.memory_space<vmem>>, vector<4x256xf32>
    %362 = vector.extract_strided_slice %15 {offsets = [0, 25], sizes = [4, 1], strides = [1, 1]} : vector<4x81xf32> to vector<4x1xf32>
    %363 = vector.broadcast %362 : vector<4x1xf32> to vector<4x256xf32>
    %364 = arith.mulf %361, %363 : vector<4x256xf32>
    %365 = arith.addf %360, %364 : vector<4x256xf32>
    %c0_86 = arith.constant 0 : index
    %c115 = arith.constant 115 : index
    %366 = vector.load %arg14[%c0_86, %c115] : memref<4x512xf32, #tpu.memory_space<vmem>>, vector<4x256xf32>
    %367 = vector.extract_strided_slice %15 {offsets = [0, 34], sizes = [4, 1], strides = [1, 1]} : vector<4x81xf32> to vector<4x1xf32>
    %368 = vector.broadcast %367 : vector<4x1xf32> to vector<4x256xf32>
    %369 = arith.mulf %366, %368 : vector<4x256xf32>
    %370 = arith.addf %365, %369 : vector<4x256xf32>
    %c0_87 = arith.constant 0 : index
    %c131 = arith.constant 131 : index
    %371 = vector.load %arg14[%c0_87, %c131] : memref<4x512xf32, #tpu.memory_space<vmem>>, vector<4x256xf32>
    %372 = vector.extract_strided_slice %15 {offsets = [0, 43], sizes = [4, 1], strides = [1, 1]} : vector<4x81xf32> to vector<4x1xf32>
    %373 = vector.broadcast %372 : vector<4x1xf32> to vector<4x256xf32>
    %374 = arith.mulf %371, %373 : vector<4x256xf32>
    %375 = arith.addf %370, %374 : vector<4x256xf32>
    %c0_88 = arith.constant 0 : index
    %c147 = arith.constant 147 : index
    %376 = vector.load %arg14[%c0_88, %c147] : memref<4x512xf32, #tpu.memory_space<vmem>>, vector<4x256xf32>
    %377 = vector.extract_strided_slice %15 {offsets = [0, 52], sizes = [4, 1], strides = [1, 1]} : vector<4x81xf32> to vector<4x1xf32>
    %378 = vector.broadcast %377 : vector<4x1xf32> to vector<4x256xf32>
    %379 = arith.mulf %376, %378 : vector<4x256xf32>
    %380 = arith.addf %375, %379 : vector<4x256xf32>
    %c0_89 = arith.constant 0 : index
    %c163 = arith.constant 163 : index
    %381 = vector.load %arg14[%c0_89, %c163] : memref<4x512xf32, #tpu.memory_space<vmem>>, vector<4x256xf32>
    %382 = vector.extract_strided_slice %15 {offsets = [0, 61], sizes = [4, 1], strides = [1, 1]} : vector<4x81xf32> to vector<4x1xf32>
    %383 = vector.broadcast %382 : vector<4x1xf32> to vector<4x256xf32>
    %384 = arith.mulf %381, %383 : vector<4x256xf32>
    %385 = arith.addf %380, %384 : vector<4x256xf32>
    %c0_90 = arith.constant 0 : index
    %c179 = arith.constant 179 : index
    %386 = vector.load %arg14[%c0_90, %c179] : memref<4x512xf32, #tpu.memory_space<vmem>>, vector<4x256xf32>
    %387 = vector.extract_strided_slice %15 {offsets = [0, 70], sizes = [4, 1], strides = [1, 1]} : vector<4x81xf32> to vector<4x1xf32>
    %388 = vector.broadcast %387 : vector<4x1xf32> to vector<4x256xf32>
    %389 = arith.mulf %386, %388 : vector<4x256xf32>
    %390 = arith.addf %385, %389 : vector<4x256xf32>
    %c0_91 = arith.constant 0 : index
    %c195 = arith.constant 195 : index
    %391 = vector.load %arg14[%c0_91, %c195] : memref<4x512xf32, #tpu.memory_space<vmem>>, vector<4x256xf32>
    %392 = vector.extract_strided_slice %15 {offsets = [0, 79], sizes = [4, 1], strides = [1, 1]} : vector<4x81xf32> to vector<4x1xf32>
    %393 = vector.broadcast %392 : vector<4x1xf32> to vector<4x256xf32>
    %394 = arith.mulf %391, %393 : vector<4x256xf32>
    %395 = arith.addf %390, %394 : vector<4x256xf32>
    %396 = vector.extract_strided_slice %16 {offsets = [7, 0], sizes = [1, 256], strides = [1, 1]} : vector<9x256xf32> to vector<1x256xf32>
    %397 = vector.broadcast %396 : vector<1x256xf32> to vector<4x256xf32>
    %398 = arith.mulf %395, %397 : vector<4x256xf32>
    %399 = arith.addf %351, %398 : vector<4x256xf32>
    %c0_92 = arith.constant 0 : index
    %c68 = arith.constant 68 : index
    %400 = vector.load %arg14[%c0_92, %c68] : memref<4x512xf32, #tpu.memory_space<vmem>>, vector<4x256xf32>
    %401 = vector.extract_strided_slice %15 {offsets = [0, 8], sizes = [4, 1], strides = [1, 1]} : vector<4x81xf32> to vector<4x1xf32>
    %402 = vector.broadcast %401 : vector<4x1xf32> to vector<4x256xf32>
    %403 = arith.mulf %400, %402 : vector<4x256xf32>
    %c0_93 = arith.constant 0 : index
    %c84 = arith.constant 84 : index
    %404 = vector.load %arg14[%c0_93, %c84] : memref<4x512xf32, #tpu.memory_space<vmem>>, vector<4x256xf32>
    %405 = vector.extract_strided_slice %15 {offsets = [0, 17], sizes = [4, 1], strides = [1, 1]} : vector<4x81xf32> to vector<4x1xf32>
    %406 = vector.broadcast %405 : vector<4x1xf32> to vector<4x256xf32>
    %407 = arith.mulf %404, %406 : vector<4x256xf32>
    %408 = arith.addf %403, %407 : vector<4x256xf32>
    %c0_94 = arith.constant 0 : index
    %c100 = arith.constant 100 : index
    %409 = vector.load %arg14[%c0_94, %c100] : memref<4x512xf32, #tpu.memory_space<vmem>>, vector<4x256xf32>
    %410 = vector.extract_strided_slice %15 {offsets = [0, 26], sizes = [4, 1], strides = [1, 1]} : vector<4x81xf32> to vector<4x1xf32>
    %411 = vector.broadcast %410 : vector<4x1xf32> to vector<4x256xf32>
    %412 = arith.mulf %409, %411 : vector<4x256xf32>
    %413 = arith.addf %408, %412 : vector<4x256xf32>
    %c0_95 = arith.constant 0 : index
    %c116 = arith.constant 116 : index
    %414 = vector.load %arg14[%c0_95, %c116] : memref<4x512xf32, #tpu.memory_space<vmem>>, vector<4x256xf32>
    %415 = vector.extract_strided_slice %15 {offsets = [0, 35], sizes = [4, 1], strides = [1, 1]} : vector<4x81xf32> to vector<4x1xf32>
    %416 = vector.broadcast %415 : vector<4x1xf32> to vector<4x256xf32>
    %417 = arith.mulf %414, %416 : vector<4x256xf32>
    %418 = arith.addf %413, %417 : vector<4x256xf32>
    %c0_96 = arith.constant 0 : index
    %c132 = arith.constant 132 : index
    %419 = vector.load %arg14[%c0_96, %c132] : memref<4x512xf32, #tpu.memory_space<vmem>>, vector<4x256xf32>
    %420 = vector.extract_strided_slice %15 {offsets = [0, 44], sizes = [4, 1], strides = [1, 1]} : vector<4x81xf32> to vector<4x1xf32>
    %421 = vector.broadcast %420 : vector<4x1xf32> to vector<4x256xf32>
    %422 = arith.mulf %419, %421 : vector<4x256xf32>
    %423 = arith.addf %418, %422 : vector<4x256xf32>
    %c0_97 = arith.constant 0 : index
    %c148 = arith.constant 148 : index
    %424 = vector.load %arg14[%c0_97, %c148] : memref<4x512xf32, #tpu.memory_space<vmem>>, vector<4x256xf32>
    %425 = vector.extract_strided_slice %15 {offsets = [0, 53], sizes = [4, 1], strides = [1, 1]} : vector<4x81xf32> to vector<4x1xf32>
    %426 = vector.broadcast %425 : vector<4x1xf32> to vector<4x256xf32>
    %427 = arith.mulf %424, %426 : vector<4x256xf32>
    %428 = arith.addf %423, %427 : vector<4x256xf32>
    %c0_98 = arith.constant 0 : index
    %c164 = arith.constant 164 : index
    %429 = vector.load %arg14[%c0_98, %c164] : memref<4x512xf32, #tpu.memory_space<vmem>>, vector<4x256xf32>
    %430 = vector.extract_strided_slice %15 {offsets = [0, 62], sizes = [4, 1], strides = [1, 1]} : vector<4x81xf32> to vector<4x1xf32>
    %431 = vector.broadcast %430 : vector<4x1xf32> to vector<4x256xf32>
    %432 = arith.mulf %429, %431 : vector<4x256xf32>
    %433 = arith.addf %428, %432 : vector<4x256xf32>
    %c0_99 = arith.constant 0 : index
    %c180 = arith.constant 180 : index
    %434 = vector.load %arg14[%c0_99, %c180] : memref<4x512xf32, #tpu.memory_space<vmem>>, vector<4x256xf32>
    %435 = vector.extract_strided_slice %15 {offsets = [0, 71], sizes = [4, 1], strides = [1, 1]} : vector<4x81xf32> to vector<4x1xf32>
    %436 = vector.broadcast %435 : vector<4x1xf32> to vector<4x256xf32>
    %437 = arith.mulf %434, %436 : vector<4x256xf32>
    %438 = arith.addf %433, %437 : vector<4x256xf32>
    %c0_100 = arith.constant 0 : index
    %c196 = arith.constant 196 : index
    %439 = vector.load %arg14[%c0_100, %c196] : memref<4x512xf32, #tpu.memory_space<vmem>>, vector<4x256xf32>
    %440 = vector.extract_strided_slice %15 {offsets = [0, 80], sizes = [4, 1], strides = [1, 1]} : vector<4x81xf32> to vector<4x1xf32>
    %441 = vector.broadcast %440 : vector<4x1xf32> to vector<4x256xf32>
    %442 = arith.mulf %439, %441 : vector<4x256xf32>
    %443 = arith.addf %438, %442 : vector<4x256xf32>
    %444 = vector.extract_strided_slice %16 {offsets = [8, 0], sizes = [1, 256], strides = [1, 1]} : vector<9x256xf32> to vector<1x256xf32>
    %445 = vector.broadcast %444 : vector<1x256xf32> to vector<4x256xf32>
    %446 = arith.mulf %443, %445 : vector<4x256xf32>
    %447 = arith.addf %399, %446 : vector<4x256xf32>
    %448 = vector.extract_strided_slice %447 {offsets = [0, 0], sizes = [2, 256], strides = [1, 1]} : vector<4x256xf32> to vector<2x256xf32>
    %449 = vector.extract_strided_slice %447 {offsets = [2, 0], sizes = [2, 256], strides = [1, 1]} : vector<4x256xf32> to vector<2x256xf32>
    %450 = arith.mulf %448, %449 : vector<2x256xf32>
    %cst_101 = arith.constant 1.41421354 : f32
    %451 = vector.broadcast %cst_101 : f32 to vector<2x256xf32>
    %452 = arith.mulf %450, %451 : vector<2x256xf32>
    %c0_102 = arith.constant 0 : index
    %c0_103 = arith.constant 0 : index
    %453 = vector.load %arg9[%c0_102, %c0_103] : memref<8x4xf32, #tpu.memory_space<vmem>>, vector<8x2xf32>
    %cst_104 = arith.constant dense<0.000000e+00> : vector<8x256xf32>
    %454 = tpu.matmul %453, %452, %cst_104 {dimension_numbers = #tpu.dot_dimension_numbers<[1], [0], [0], [1], [0, 0, 1, 1], [], []>} : vector<8x2xf32>, vector<2x256xf32>, vector<8x256xf32> -> vector<8x256xf32>
    %c0_105 = arith.constant 0 : index
    %c0_106 = arith.constant 0 : index
    %455 = vector.load %arg7[%c0_105, %c0_106] : memref<256x64xf32, #tpu.memory_space<vmem>>, vector<256x64xf32>
    %cst_107 = arith.constant dense<0.000000e+00> : vector<4x64xf32>
    %456 = tpu.matmul %11, %455, %cst_107 {dimension_numbers = #tpu.dot_dimension_numbers<[1], [0], [0], [1], [0, 0, 1, 1], [], []>} : vector<4x256xf32>, vector<256x64xf32>, vector<4x64xf32> -> vector<4x64xf32>
    %cst_108 = arith.constant 0.000000e+00 : f32
    %457 = vector.broadcast %cst_108 : f32 to vector<4x320xf32>
    %c0_109 = arith.constant 0 : index
    %c0_110 = arith.constant 0 : index
    %458 = vector.load %arg15[%c0_109, %c0_110] : memref<4x320xf32, #tpu.memory_space<vmem>>, vector<4x320xf32>
    tpu.vector_store %arg15[%c0_109, %c0_110], %457 {strides = array<i32>} : memref<4x320xf32, #tpu.memory_space<vmem>>, vector<4x320xf32>,
    %c0_111 = arith.constant 0 : index
    %c128_112 = arith.constant 128 : index
    %459 = vector.load %arg15[%c0_111, %c128_112] : memref<4x320xf32, #tpu.memory_space<vmem>>, vector<4x64xf32>
    tpu.vector_store %arg15[%c0_111, %c128_112], %456 {strides = array<i32>} : memref<4x320xf32, #tpu.memory_space<vmem>>, vector<4x64xf32>,
    %c0_113 = arith.constant 0 : index
    %c0_114 = arith.constant 0 : index
    %460 = vector.load %arg5[%c0_113, %c0_114] : memref<4x81xf32, #tpu.memory_space<vmem>>, vector<4x81xf32>
    %c0_115 = arith.constant 0 : index
    %c0_116 = arith.constant 0 : index
    %461 = vector.load %arg6[%c0_115, %c0_116] : memref<9x64xf32, #tpu.memory_space<vmem>>, vector<9x64xf32>
    %c0_117 = arith.constant 0 : index
    %c92_118 = arith.constant 92 : index
    %462 = vector.load %arg15[%c0_117, %c92_118] : memref<4x320xf32, #tpu.memory_space<vmem>>, vector<4x64xf32>
    %463 = vector.extract_strided_slice %460 {offsets = [0, 0], sizes = [4, 1], strides = [1, 1]} : vector<4x81xf32> to vector<4x1xf32>
    %464 = vector.broadcast %463 : vector<4x1xf32> to vector<4x64xf32>
    %465 = arith.mulf %462, %464 : vector<4x64xf32>
    %c0_119 = arith.constant 0 : index
    %c100_120 = arith.constant 100 : index
    %466 = vector.load %arg15[%c0_119, %c100_120] : memref<4x320xf32, #tpu.memory_space<vmem>>, vector<4x64xf32>
    %467 = vector.extract_strided_slice %460 {offsets = [0, 9], sizes = [4, 1], strides = [1, 1]} : vector<4x81xf32> to vector<4x1xf32>
    %468 = vector.broadcast %467 : vector<4x1xf32> to vector<4x64xf32>
    %469 = arith.mulf %466, %468 : vector<4x64xf32>
    %470 = arith.addf %465, %469 : vector<4x64xf32>
    %c0_121 = arith.constant 0 : index
    %c108_122 = arith.constant 108 : index
    %471 = vector.load %arg15[%c0_121, %c108_122] : memref<4x320xf32, #tpu.memory_space<vmem>>, vector<4x64xf32>
    %472 = vector.extract_strided_slice %460 {offsets = [0, 18], sizes = [4, 1], strides = [1, 1]} : vector<4x81xf32> to vector<4x1xf32>
    %473 = vector.broadcast %472 : vector<4x1xf32> to vector<4x64xf32>
    %474 = arith.mulf %471, %473 : vector<4x64xf32>
    %475 = arith.addf %470, %474 : vector<4x64xf32>
    %c0_123 = arith.constant 0 : index
    %c116_124 = arith.constant 116 : index
    %476 = vector.load %arg15[%c0_123, %c116_124] : memref<4x320xf32, #tpu.memory_space<vmem>>, vector<4x64xf32>
    %477 = vector.extract_strided_slice %460 {offsets = [0, 27], sizes = [4, 1], strides = [1, 1]} : vector<4x81xf32> to vector<4x1xf32>
    %478 = vector.broadcast %477 : vector<4x1xf32> to vector<4x64xf32>
    %479 = arith.mulf %476, %478 : vector<4x64xf32>
    %480 = arith.addf %475, %479 : vector<4x64xf32>
    %c0_125 = arith.constant 0 : index
    %c124_126 = arith.constant 124 : index
    %481 = vector.load %arg15[%c0_125, %c124_126] : memref<4x320xf32, #tpu.memory_space<vmem>>, vector<4x64xf32>
    %482 = vector.extract_strided_slice %460 {offsets = [0, 36], sizes = [4, 1], strides = [1, 1]} : vector<4x81xf32> to vector<4x1xf32>
    %483 = vector.broadcast %482 : vector<4x1xf32> to vector<4x64xf32>
    %484 = arith.mulf %481, %483 : vector<4x64xf32>
    %485 = arith.addf %480, %484 : vector<4x64xf32>
    %c0_127 = arith.constant 0 : index
    %c132_128 = arith.constant 132 : index
    %486 = vector.load %arg15[%c0_127, %c132_128] : memref<4x320xf32, #tpu.memory_space<vmem>>, vector<4x64xf32>
    %487 = vector.extract_strided_slice %460 {offsets = [0, 45], sizes = [4, 1], strides = [1, 1]} : vector<4x81xf32> to vector<4x1xf32>
    %488 = vector.broadcast %487 : vector<4x1xf32> to vector<4x64xf32>
    %489 = arith.mulf %486, %488 : vector<4x64xf32>
    %490 = arith.addf %485, %489 : vector<4x64xf32>
    %c0_129 = arith.constant 0 : index
    %c140_130 = arith.constant 140 : index
    %491 = vector.load %arg15[%c0_129, %c140_130] : memref<4x320xf32, #tpu.memory_space<vmem>>, vector<4x64xf32>
    %492 = vector.extract_strided_slice %460 {offsets = [0, 54], sizes = [4, 1], strides = [1, 1]} : vector<4x81xf32> to vector<4x1xf32>
    %493 = vector.broadcast %492 : vector<4x1xf32> to vector<4x64xf32>
    %494 = arith.mulf %491, %493 : vector<4x64xf32>
    %495 = arith.addf %490, %494 : vector<4x64xf32>
    %c0_131 = arith.constant 0 : index
    %c148_132 = arith.constant 148 : index
    %496 = vector.load %arg15[%c0_131, %c148_132] : memref<4x320xf32, #tpu.memory_space<vmem>>, vector<4x64xf32>
    %497 = vector.extract_strided_slice %460 {offsets = [0, 63], sizes = [4, 1], strides = [1, 1]} : vector<4x81xf32> to vector<4x1xf32>
    %498 = vector.broadcast %497 : vector<4x1xf32> to vector<4x64xf32>
    %499 = arith.mulf %496, %498 : vector<4x64xf32>
    %500 = arith.addf %495, %499 : vector<4x64xf32>
    %c0_133 = arith.constant 0 : index
    %c156_134 = arith.constant 156 : index
    %501 = vector.load %arg15[%c0_133, %c156_134] : memref<4x320xf32, #tpu.memory_space<vmem>>, vector<4x64xf32>
    %502 = vector.extract_strided_slice %460 {offsets = [0, 72], sizes = [4, 1], strides = [1, 1]} : vector<4x81xf32> to vector<4x1xf32>
    %503 = vector.broadcast %502 : vector<4x1xf32> to vector<4x64xf32>
    %504 = arith.mulf %501, %503 : vector<4x64xf32>
    %505 = arith.addf %500, %504 : vector<4x64xf32>
    %506 = vector.extract_strided_slice %461 {offsets = [0, 0], sizes = [1, 64], strides = [1, 1]} : vector<9x64xf32> to vector<1x64xf32>
    %507 = vector.broadcast %506 : vector<1x64xf32> to vector<4x64xf32>
    %508 = arith.mulf %505, %507 : vector<4x64xf32>
    %c0_135 = arith.constant 0 : index
    %c93_136 = arith.constant 93 : index
    %509 = vector.load %arg15[%c0_135, %c93_136] : memref<4x320xf32, #tpu.memory_space<vmem>>, vector<4x64xf32>
    %510 = vector.extract_strided_slice %460 {offsets = [0, 1], sizes = [4, 1], strides = [1, 1]} : vector<4x81xf32> to vector<4x1xf32>
    %511 = vector.broadcast %510 : vector<4x1xf32> to vector<4x64xf32>
    %512 = arith.mulf %509, %511 : vector<4x64xf32>
    %c0_137 = arith.constant 0 : index
    %c101 = arith.constant 101 : index
    %513 = vector.load %arg15[%c0_137, %c101] : memref<4x320xf32, #tpu.memory_space<vmem>>, vector<4x64xf32>
    %514 = vector.extract_strided_slice %460 {offsets = [0, 10], sizes = [4, 1], strides = [1, 1]} : vector<4x81xf32> to vector<4x1xf32>
    %515 = vector.broadcast %514 : vector<4x1xf32> to vector<4x64xf32>
    %516 = arith.mulf %513, %515 : vector<4x64xf32>
    %517 = arith.addf %512, %516 : vector<4x64xf32>
    %c0_138 = arith.constant 0 : index
    %c109_139 = arith.constant 109 : index
    %518 = vector.load %arg15[%c0_138, %c109_139] : memref<4x320xf32, #tpu.memory_space<vmem>>, vector<4x64xf32>
    %519 = vector.extract_strided_slice %460 {offsets = [0, 19], sizes = [4, 1], strides = [1, 1]} : vector<4x81xf32> to vector<4x1xf32>
    %520 = vector.broadcast %519 : vector<4x1xf32> to vector<4x64xf32>
    %521 = arith.mulf %518, %520 : vector<4x64xf32>
    %522 = arith.addf %517, %521 : vector<4x64xf32>
    %c0_140 = arith.constant 0 : index
    %c117 = arith.constant 117 : index
    %523 = vector.load %arg15[%c0_140, %c117] : memref<4x320xf32, #tpu.memory_space<vmem>>, vector<4x64xf32>
    %524 = vector.extract_strided_slice %460 {offsets = [0, 28], sizes = [4, 1], strides = [1, 1]} : vector<4x81xf32> to vector<4x1xf32>
    %525 = vector.broadcast %524 : vector<4x1xf32> to vector<4x64xf32>
    %526 = arith.mulf %523, %525 : vector<4x64xf32>
    %527 = arith.addf %522, %526 : vector<4x64xf32>
    %c0_141 = arith.constant 0 : index
    %c125_142 = arith.constant 125 : index
    %528 = vector.load %arg15[%c0_141, %c125_142] : memref<4x320xf32, #tpu.memory_space<vmem>>, vector<4x64xf32>
    %529 = vector.extract_strided_slice %460 {offsets = [0, 37], sizes = [4, 1], strides = [1, 1]} : vector<4x81xf32> to vector<4x1xf32>
    %530 = vector.broadcast %529 : vector<4x1xf32> to vector<4x64xf32>
    %531 = arith.mulf %528, %530 : vector<4x64xf32>
    %532 = arith.addf %527, %531 : vector<4x64xf32>
    %c0_143 = arith.constant 0 : index
    %c133 = arith.constant 133 : index
    %533 = vector.load %arg15[%c0_143, %c133] : memref<4x320xf32, #tpu.memory_space<vmem>>, vector<4x64xf32>
    %534 = vector.extract_strided_slice %460 {offsets = [0, 46], sizes = [4, 1], strides = [1, 1]} : vector<4x81xf32> to vector<4x1xf32>
    %535 = vector.broadcast %534 : vector<4x1xf32> to vector<4x64xf32>
    %536 = arith.mulf %533, %535 : vector<4x64xf32>
    %537 = arith.addf %532, %536 : vector<4x64xf32>
    %c0_144 = arith.constant 0 : index
    %c141_145 = arith.constant 141 : index
    %538 = vector.load %arg15[%c0_144, %c141_145] : memref<4x320xf32, #tpu.memory_space<vmem>>, vector<4x64xf32>
    %539 = vector.extract_strided_slice %460 {offsets = [0, 55], sizes = [4, 1], strides = [1, 1]} : vector<4x81xf32> to vector<4x1xf32>
    %540 = vector.broadcast %539 : vector<4x1xf32> to vector<4x64xf32>
    %541 = arith.mulf %538, %540 : vector<4x64xf32>
    %542 = arith.addf %537, %541 : vector<4x64xf32>
    %c0_146 = arith.constant 0 : index
    %c149 = arith.constant 149 : index
    %543 = vector.load %arg15[%c0_146, %c149] : memref<4x320xf32, #tpu.memory_space<vmem>>, vector<4x64xf32>
    %544 = vector.extract_strided_slice %460 {offsets = [0, 64], sizes = [4, 1], strides = [1, 1]} : vector<4x81xf32> to vector<4x1xf32>
    %545 = vector.broadcast %544 : vector<4x1xf32> to vector<4x64xf32>
    %546 = arith.mulf %543, %545 : vector<4x64xf32>
    %547 = arith.addf %542, %546 : vector<4x64xf32>
    %c0_147 = arith.constant 0 : index
    %c157_148 = arith.constant 157 : index
    %548 = vector.load %arg15[%c0_147, %c157_148] : memref<4x320xf32, #tpu.memory_space<vmem>>, vector<4x64xf32>
    %549 = vector.extract_strided_slice %460 {offsets = [0, 73], sizes = [4, 1], strides = [1, 1]} : vector<4x81xf32> to vector<4x1xf32>
    %550 = vector.broadcast %549 : vector<4x1xf32> to vector<4x64xf32>
    %551 = arith.mulf %548, %550 : vector<4x64xf32>
    %552 = arith.addf %547, %551 : vector<4x64xf32>
    %553 = vector.extract_strided_slice %461 {offsets = [1, 0], sizes = [1, 64], strides = [1, 1]} : vector<9x64xf32> to vector<1x64xf32>
    %554 = vector.broadcast %553 : vector<1x64xf32> to vector<4x64xf32>
    %555 = arith.mulf %552, %554 : vector<4x64xf32>
    %556 = arith.addf %508, %555 : vector<4x64xf32>
    %c0_149 = arith.constant 0 : index
    %c94_150 = arith.constant 94 : index
    %557 = vector.load %arg15[%c0_149, %c94_150] : memref<4x320xf32, #tpu.memory_space<vmem>>, vector<4x64xf32>
    %558 = vector.extract_strided_slice %460 {offsets = [0, 2], sizes = [4, 1], strides = [1, 1]} : vector<4x81xf32> to vector<4x1xf32>
    %559 = vector.broadcast %558 : vector<4x1xf32> to vector<4x64xf32>
    %560 = arith.mulf %557, %559 : vector<4x64xf32>
    %c0_151 = arith.constant 0 : index
    %c102 = arith.constant 102 : index
    %561 = vector.load %arg15[%c0_151, %c102] : memref<4x320xf32, #tpu.memory_space<vmem>>, vector<4x64xf32>
    %562 = vector.extract_strided_slice %460 {offsets = [0, 11], sizes = [4, 1], strides = [1, 1]} : vector<4x81xf32> to vector<4x1xf32>
    %563 = vector.broadcast %562 : vector<4x1xf32> to vector<4x64xf32>
    %564 = arith.mulf %561, %563 : vector<4x64xf32>
    %565 = arith.addf %560, %564 : vector<4x64xf32>
    %c0_152 = arith.constant 0 : index
    %c110_153 = arith.constant 110 : index
    %566 = vector.load %arg15[%c0_152, %c110_153] : memref<4x320xf32, #tpu.memory_space<vmem>>, vector<4x64xf32>
    %567 = vector.extract_strided_slice %460 {offsets = [0, 20], sizes = [4, 1], strides = [1, 1]} : vector<4x81xf32> to vector<4x1xf32>
    %568 = vector.broadcast %567 : vector<4x1xf32> to vector<4x64xf32>
    %569 = arith.mulf %566, %568 : vector<4x64xf32>
    %570 = arith.addf %565, %569 : vector<4x64xf32>
    %c0_154 = arith.constant 0 : index
    %c118 = arith.constant 118 : index
    %571 = vector.load %arg15[%c0_154, %c118] : memref<4x320xf32, #tpu.memory_space<vmem>>, vector<4x64xf32>
    %572 = vector.extract_strided_slice %460 {offsets = [0, 29], sizes = [4, 1], strides = [1, 1]} : vector<4x81xf32> to vector<4x1xf32>
    %573 = vector.broadcast %572 : vector<4x1xf32> to vector<4x64xf32>
    %574 = arith.mulf %571, %573 : vector<4x64xf32>
    %575 = arith.addf %570, %574 : vector<4x64xf32>
    %c0_155 = arith.constant 0 : index
    %c126_156 = arith.constant 126 : index
    %576 = vector.load %arg15[%c0_155, %c126_156] : memref<4x320xf32, #tpu.memory_space<vmem>>, vector<4x64xf32>
    %577 = vector.extract_strided_slice %460 {offsets = [0, 38], sizes = [4, 1], strides = [1, 1]} : vector<4x81xf32> to vector<4x1xf32>
    %578 = vector.broadcast %577 : vector<4x1xf32> to vector<4x64xf32>
    %579 = arith.mulf %576, %578 : vector<4x64xf32>
    %580 = arith.addf %575, %579 : vector<4x64xf32>
    %c0_157 = arith.constant 0 : index
    %c134 = arith.constant 134 : index
    %581 = vector.load %arg15[%c0_157, %c134] : memref<4x320xf32, #tpu.memory_space<vmem>>, vector<4x64xf32>
    %582 = vector.extract_strided_slice %460 {offsets = [0, 47], sizes = [4, 1], strides = [1, 1]} : vector<4x81xf32> to vector<4x1xf32>
    %583 = vector.broadcast %582 : vector<4x1xf32> to vector<4x64xf32>
    %584 = arith.mulf %581, %583 : vector<4x64xf32>
    %585 = arith.addf %580, %584 : vector<4x64xf32>
    %c0_158 = arith.constant 0 : index
    %c142_159 = arith.constant 142 : index
    %586 = vector.load %arg15[%c0_158, %c142_159] : memref<4x320xf32, #tpu.memory_space<vmem>>, vector<4x64xf32>
    %587 = vector.extract_strided_slice %460 {offsets = [0, 56], sizes = [4, 1], strides = [1, 1]} : vector<4x81xf32> to vector<4x1xf32>
    %588 = vector.broadcast %587 : vector<4x1xf32> to vector<4x64xf32>
    %589 = arith.mulf %586, %588 : vector<4x64xf32>
    %590 = arith.addf %585, %589 : vector<4x64xf32>
    %c0_160 = arith.constant 0 : index
    %c150 = arith.constant 150 : index
    %591 = vector.load %arg15[%c0_160, %c150] : memref<4x320xf32, #tpu.memory_space<vmem>>, vector<4x64xf32>
    %592 = vector.extract_strided_slice %460 {offsets = [0, 65], sizes = [4, 1], strides = [1, 1]} : vector<4x81xf32> to vector<4x1xf32>
    %593 = vector.broadcast %592 : vector<4x1xf32> to vector<4x64xf32>
    %594 = arith.mulf %591, %593 : vector<4x64xf32>
    %595 = arith.addf %590, %594 : vector<4x64xf32>
    %c0_161 = arith.constant 0 : index
    %c158_162 = arith.constant 158 : index
    %596 = vector.load %arg15[%c0_161, %c158_162] : memref<4x320xf32, #tpu.memory_space<vmem>>, vector<4x64xf32>
    %597 = vector.extract_strided_slice %460 {offsets = [0, 74], sizes = [4, 1], strides = [1, 1]} : vector<4x81xf32> to vector<4x1xf32>
    %598 = vector.broadcast %597 : vector<4x1xf32> to vector<4x64xf32>
    %599 = arith.mulf %596, %598 : vector<4x64xf32>
    %600 = arith.addf %595, %599 : vector<4x64xf32>
    %601 = vector.extract_strided_slice %461 {offsets = [2, 0], sizes = [1, 64], strides = [1, 1]} : vector<9x64xf32> to vector<1x64xf32>
    %602 = vector.broadcast %601 : vector<1x64xf32> to vector<4x64xf32>
    %603 = arith.mulf %600, %602 : vector<4x64xf32>
    %604 = arith.addf %556, %603 : vector<4x64xf32>
    %c0_163 = arith.constant 0 : index
    %c95_164 = arith.constant 95 : index
    %605 = vector.load %arg15[%c0_163, %c95_164] : memref<4x320xf32, #tpu.memory_space<vmem>>, vector<4x64xf32>
    %606 = vector.extract_strided_slice %460 {offsets = [0, 3], sizes = [4, 1], strides = [1, 1]} : vector<4x81xf32> to vector<4x1xf32>
    %607 = vector.broadcast %606 : vector<4x1xf32> to vector<4x64xf32>
    %608 = arith.mulf %605, %607 : vector<4x64xf32>
    %c0_165 = arith.constant 0 : index
    %c103 = arith.constant 103 : index
    %609 = vector.load %arg15[%c0_165, %c103] : memref<4x320xf32, #tpu.memory_space<vmem>>, vector<4x64xf32>
    %610 = vector.extract_strided_slice %460 {offsets = [0, 12], sizes = [4, 1], strides = [1, 1]} : vector<4x81xf32> to vector<4x1xf32>
    %611 = vector.broadcast %610 : vector<4x1xf32> to vector<4x64xf32>
    %612 = arith.mulf %609, %611 : vector<4x64xf32>
    %613 = arith.addf %608, %612 : vector<4x64xf32>
    %c0_166 = arith.constant 0 : index
    %c111_167 = arith.constant 111 : index
    %614 = vector.load %arg15[%c0_166, %c111_167] : memref<4x320xf32, #tpu.memory_space<vmem>>, vector<4x64xf32>
    %615 = vector.extract_strided_slice %460 {offsets = [0, 21], sizes = [4, 1], strides = [1, 1]} : vector<4x81xf32> to vector<4x1xf32>
    %616 = vector.broadcast %615 : vector<4x1xf32> to vector<4x64xf32>
    %617 = arith.mulf %614, %616 : vector<4x64xf32>
    %618 = arith.addf %613, %617 : vector<4x64xf32>
    %c0_168 = arith.constant 0 : index
    %c119 = arith.constant 119 : index
    %619 = vector.load %arg15[%c0_168, %c119] : memref<4x320xf32, #tpu.memory_space<vmem>>, vector<4x64xf32>
    %620 = vector.extract_strided_slice %460 {offsets = [0, 30], sizes = [4, 1], strides = [1, 1]} : vector<4x81xf32> to vector<4x1xf32>
    %621 = vector.broadcast %620 : vector<4x1xf32> to vector<4x64xf32>
    %622 = arith.mulf %619, %621 : vector<4x64xf32>
    %623 = arith.addf %618, %622 : vector<4x64xf32>
    %c0_169 = arith.constant 0 : index
    %c127_170 = arith.constant 127 : index
    %624 = vector.load %arg15[%c0_169, %c127_170] : memref<4x320xf32, #tpu.memory_space<vmem>>, vector<4x64xf32>
    %625 = vector.extract_strided_slice %460 {offsets = [0, 39], sizes = [4, 1], strides = [1, 1]} : vector<4x81xf32> to vector<4x1xf32>
    %626 = vector.broadcast %625 : vector<4x1xf32> to vector<4x64xf32>
    %627 = arith.mulf %624, %626 : vector<4x64xf32>
    %628 = arith.addf %623, %627 : vector<4x64xf32>
    %c0_171 = arith.constant 0 : index
    %c135 = arith.constant 135 : index
    %629 = vector.load %arg15[%c0_171, %c135] : memref<4x320xf32, #tpu.memory_space<vmem>>, vector<4x64xf32>
    %630 = vector.extract_strided_slice %460 {offsets = [0, 48], sizes = [4, 1], strides = [1, 1]} : vector<4x81xf32> to vector<4x1xf32>
    %631 = vector.broadcast %630 : vector<4x1xf32> to vector<4x64xf32>
    %632 = arith.mulf %629, %631 : vector<4x64xf32>
    %633 = arith.addf %628, %632 : vector<4x64xf32>
    %c0_172 = arith.constant 0 : index
    %c143_173 = arith.constant 143 : index
    %634 = vector.load %arg15[%c0_172, %c143_173] : memref<4x320xf32, #tpu.memory_space<vmem>>, vector<4x64xf32>
    %635 = vector.extract_strided_slice %460 {offsets = [0, 57], sizes = [4, 1], strides = [1, 1]} : vector<4x81xf32> to vector<4x1xf32>
    %636 = vector.broadcast %635 : vector<4x1xf32> to vector<4x64xf32>
    %637 = arith.mulf %634, %636 : vector<4x64xf32>
    %638 = arith.addf %633, %637 : vector<4x64xf32>
    %c0_174 = arith.constant 0 : index
    %c151 = arith.constant 151 : index
    %639 = vector.load %arg15[%c0_174, %c151] : memref<4x320xf32, #tpu.memory_space<vmem>>, vector<4x64xf32>
    %640 = vector.extract_strided_slice %460 {offsets = [0, 66], sizes = [4, 1], strides = [1, 1]} : vector<4x81xf32> to vector<4x1xf32>
    %641 = vector.broadcast %640 : vector<4x1xf32> to vector<4x64xf32>
    %642 = arith.mulf %639, %641 : vector<4x64xf32>
    %643 = arith.addf %638, %642 : vector<4x64xf32>
    %c0_175 = arith.constant 0 : index
    %c159_176 = arith.constant 159 : index
    %644 = vector.load %arg15[%c0_175, %c159_176] : memref<4x320xf32, #tpu.memory_space<vmem>>, vector<4x64xf32>
    %645 = vector.extract_strided_slice %460 {offsets = [0, 75], sizes = [4, 1], strides = [1, 1]} : vector<4x81xf32> to vector<4x1xf32>
    %646 = vector.broadcast %645 : vector<4x1xf32> to vector<4x64xf32>
    %647 = arith.mulf %644, %646 : vector<4x64xf32>
    %648 = arith.addf %643, %647 : vector<4x64xf32>
    %649 = vector.extract_strided_slice %461 {offsets = [3, 0], sizes = [1, 64], strides = [1, 1]} : vector<9x64xf32> to vector<1x64xf32>
    %650 = vector.broadcast %649 : vector<1x64xf32> to vector<4x64xf32>
    %651 = arith.mulf %648, %650 : vector<4x64xf32>
    %652 = arith.addf %604, %651 : vector<4x64xf32>
    %c0_177 = arith.constant 0 : index
    %c96_178 = arith.constant 96 : index
    %653 = vector.load %arg15[%c0_177, %c96_178] : memref<4x320xf32, #tpu.memory_space<vmem>>, vector<4x64xf32>
    %654 = vector.extract_strided_slice %460 {offsets = [0, 4], sizes = [4, 1], strides = [1, 1]} : vector<4x81xf32> to vector<4x1xf32>
    %655 = vector.broadcast %654 : vector<4x1xf32> to vector<4x64xf32>
    %656 = arith.mulf %653, %655 : vector<4x64xf32>
    %c0_179 = arith.constant 0 : index
    %c104 = arith.constant 104 : index
    %657 = vector.load %arg15[%c0_179, %c104] : memref<4x320xf32, #tpu.memory_space<vmem>>, vector<4x64xf32>
    %658 = vector.extract_strided_slice %460 {offsets = [0, 13], sizes = [4, 1], strides = [1, 1]} : vector<4x81xf32> to vector<4x1xf32>
    %659 = vector.broadcast %658 : vector<4x1xf32> to vector<4x64xf32>
    %660 = arith.mulf %657, %659 : vector<4x64xf32>
    %661 = arith.addf %656, %660 : vector<4x64xf32>
    %c0_180 = arith.constant 0 : index
    %c112_181 = arith.constant 112 : index
    %662 = vector.load %arg15[%c0_180, %c112_181] : memref<4x320xf32, #tpu.memory_space<vmem>>, vector<4x64xf32>
    %663 = vector.extract_strided_slice %460 {offsets = [0, 22], sizes = [4, 1], strides = [1, 1]} : vector<4x81xf32> to vector<4x1xf32>
    %664 = vector.broadcast %663 : vector<4x1xf32> to vector<4x64xf32>
    %665 = arith.mulf %662, %664 : vector<4x64xf32>
    %666 = arith.addf %661, %665 : vector<4x64xf32>
    %c0_182 = arith.constant 0 : index
    %c120 = arith.constant 120 : index
    %667 = vector.load %arg15[%c0_182, %c120] : memref<4x320xf32, #tpu.memory_space<vmem>>, vector<4x64xf32>
    %668 = vector.extract_strided_slice %460 {offsets = [0, 31], sizes = [4, 1], strides = [1, 1]} : vector<4x81xf32> to vector<4x1xf32>
    %669 = vector.broadcast %668 : vector<4x1xf32> to vector<4x64xf32>
    %670 = arith.mulf %667, %669 : vector<4x64xf32>
    %671 = arith.addf %666, %670 : vector<4x64xf32>
    %c0_183 = arith.constant 0 : index
    %c128_184 = arith.constant 128 : index
    %672 = vector.load %arg15[%c0_183, %c128_184] : memref<4x320xf32, #tpu.memory_space<vmem>>, vector<4x64xf32>
    %673 = vector.extract_strided_slice %460 {offsets = [0, 40], sizes = [4, 1], strides = [1, 1]} : vector<4x81xf32> to vector<4x1xf32>
    %674 = vector.broadcast %673 : vector<4x1xf32> to vector<4x64xf32>
    %675 = arith.mulf %672, %674 : vector<4x64xf32>
    %676 = arith.addf %671, %675 : vector<4x64xf32>
    %c0_185 = arith.constant 0 : index
    %c136 = arith.constant 136 : index
    %677 = vector.load %arg15[%c0_185, %c136] : memref<4x320xf32, #tpu.memory_space<vmem>>, vector<4x64xf32>
    %678 = vector.extract_strided_slice %460 {offsets = [0, 49], sizes = [4, 1], strides = [1, 1]} : vector<4x81xf32> to vector<4x1xf32>
    %679 = vector.broadcast %678 : vector<4x1xf32> to vector<4x64xf32>
    %680 = arith.mulf %677, %679 : vector<4x64xf32>
    %681 = arith.addf %676, %680 : vector<4x64xf32>
    %c0_186 = arith.constant 0 : index
    %c144_187 = arith.constant 144 : index
    %682 = vector.load %arg15[%c0_186, %c144_187] : memref<4x320xf32, #tpu.memory_space<vmem>>, vector<4x64xf32>
    %683 = vector.extract_strided_slice %460 {offsets = [0, 58], sizes = [4, 1], strides = [1, 1]} : vector<4x81xf32> to vector<4x1xf32>
    %684 = vector.broadcast %683 : vector<4x1xf32> to vector<4x64xf32>
    %685 = arith.mulf %682, %684 : vector<4x64xf32>
    %686 = arith.addf %681, %685 : vector<4x64xf32>
    %c0_188 = arith.constant 0 : index
    %c152 = arith.constant 152 : index
    %687 = vector.load %arg15[%c0_188, %c152] : memref<4x320xf32, #tpu.memory_space<vmem>>, vector<4x64xf32>
    %688 = vector.extract_strided_slice %460 {offsets = [0, 67], sizes = [4, 1], strides = [1, 1]} : vector<4x81xf32> to vector<4x1xf32>
    %689 = vector.broadcast %688 : vector<4x1xf32> to vector<4x64xf32>
    %690 = arith.mulf %687, %689 : vector<4x64xf32>
    %691 = arith.addf %686, %690 : vector<4x64xf32>
    %c0_189 = arith.constant 0 : index
    %c160_190 = arith.constant 160 : index
    %692 = vector.load %arg15[%c0_189, %c160_190] : memref<4x320xf32, #tpu.memory_space<vmem>>, vector<4x64xf32>
    %693 = vector.extract_strided_slice %460 {offsets = [0, 76], sizes = [4, 1], strides = [1, 1]} : vector<4x81xf32> to vector<4x1xf32>
    %694 = vector.broadcast %693 : vector<4x1xf32> to vector<4x64xf32>
    %695 = arith.mulf %692, %694 : vector<4x64xf32>
    %696 = arith.addf %691, %695 : vector<4x64xf32>
    %697 = vector.extract_strided_slice %461 {offsets = [4, 0], sizes = [1, 64], strides = [1, 1]} : vector<9x64xf32> to vector<1x64xf32>
    %698 = vector.broadcast %697 : vector<1x64xf32> to vector<4x64xf32>
    %699 = arith.mulf %696, %698 : vector<4x64xf32>
    %700 = arith.addf %652, %699 : vector<4x64xf32>
    %c0_191 = arith.constant 0 : index
    %c97_192 = arith.constant 97 : index
    %701 = vector.load %arg15[%c0_191, %c97_192] : memref<4x320xf32, #tpu.memory_space<vmem>>, vector<4x64xf32>
    %702 = vector.extract_strided_slice %460 {offsets = [0, 5], sizes = [4, 1], strides = [1, 1]} : vector<4x81xf32> to vector<4x1xf32>
    %703 = vector.broadcast %702 : vector<4x1xf32> to vector<4x64xf32>
    %704 = arith.mulf %701, %703 : vector<4x64xf32>
    %c0_193 = arith.constant 0 : index
    %c105 = arith.constant 105 : index
    %705 = vector.load %arg15[%c0_193, %c105] : memref<4x320xf32, #tpu.memory_space<vmem>>, vector<4x64xf32>
    %706 = vector.extract_strided_slice %460 {offsets = [0, 14], sizes = [4, 1], strides = [1, 1]} : vector<4x81xf32> to vector<4x1xf32>
    %707 = vector.broadcast %706 : vector<4x1xf32> to vector<4x64xf32>
    %708 = arith.mulf %705, %707 : vector<4x64xf32>
    %709 = arith.addf %704, %708 : vector<4x64xf32>
    %c0_194 = arith.constant 0 : index
    %c113_195 = arith.constant 113 : index
    %710 = vector.load %arg15[%c0_194, %c113_195] : memref<4x320xf32, #tpu.memory_space<vmem>>, vector<4x64xf32>
    %711 = vector.extract_strided_slice %460 {offsets = [0, 23], sizes = [4, 1], strides = [1, 1]} : vector<4x81xf32> to vector<4x1xf32>
    %712 = vector.broadcast %711 : vector<4x1xf32> to vector<4x64xf32>
    %713 = arith.mulf %710, %712 : vector<4x64xf32>
    %714 = arith.addf %709, %713 : vector<4x64xf32>
    %c0_196 = arith.constant 0 : index
    %c121 = arith.constant 121 : index
    %715 = vector.load %arg15[%c0_196, %c121] : memref<4x320xf32, #tpu.memory_space<vmem>>, vector<4x64xf32>
    %716 = vector.extract_strided_slice %460 {offsets = [0, 32], sizes = [4, 1], strides = [1, 1]} : vector<4x81xf32> to vector<4x1xf32>
    %717 = vector.broadcast %716 : vector<4x1xf32> to vector<4x64xf32>
    %718 = arith.mulf %715, %717 : vector<4x64xf32>
    %719 = arith.addf %714, %718 : vector<4x64xf32>
    %c0_197 = arith.constant 0 : index
    %c129_198 = arith.constant 129 : index
    %720 = vector.load %arg15[%c0_197, %c129_198] : memref<4x320xf32, #tpu.memory_space<vmem>>, vector<4x64xf32>
    %721 = vector.extract_strided_slice %460 {offsets = [0, 41], sizes = [4, 1], strides = [1, 1]} : vector<4x81xf32> to vector<4x1xf32>
    %722 = vector.broadcast %721 : vector<4x1xf32> to vector<4x64xf32>
    %723 = arith.mulf %720, %722 : vector<4x64xf32>
    %724 = arith.addf %719, %723 : vector<4x64xf32>
    %c0_199 = arith.constant 0 : index
    %c137 = arith.constant 137 : index
    %725 = vector.load %arg15[%c0_199, %c137] : memref<4x320xf32, #tpu.memory_space<vmem>>, vector<4x64xf32>
    %726 = vector.extract_strided_slice %460 {offsets = [0, 50], sizes = [4, 1], strides = [1, 1]} : vector<4x81xf32> to vector<4x1xf32>
    %727 = vector.broadcast %726 : vector<4x1xf32> to vector<4x64xf32>
    %728 = arith.mulf %725, %727 : vector<4x64xf32>
    %729 = arith.addf %724, %728 : vector<4x64xf32>
    %c0_200 = arith.constant 0 : index
    %c145_201 = arith.constant 145 : index
    %730 = vector.load %arg15[%c0_200, %c145_201] : memref<4x320xf32, #tpu.memory_space<vmem>>, vector<4x64xf32>
    %731 = vector.extract_strided_slice %460 {offsets = [0, 59], sizes = [4, 1], strides = [1, 1]} : vector<4x81xf32> to vector<4x1xf32>
    %732 = vector.broadcast %731 : vector<4x1xf32> to vector<4x64xf32>
    %733 = arith.mulf %730, %732 : vector<4x64xf32>
    %734 = arith.addf %729, %733 : vector<4x64xf32>
    %c0_202 = arith.constant 0 : index
    %c153 = arith.constant 153 : index
    %735 = vector.load %arg15[%c0_202, %c153] : memref<4x320xf32, #tpu.memory_space<vmem>>, vector<4x64xf32>
    %736 = vector.extract_strided_slice %460 {offsets = [0, 68], sizes = [4, 1], strides = [1, 1]} : vector<4x81xf32> to vector<4x1xf32>
    %737 = vector.broadcast %736 : vector<4x1xf32> to vector<4x64xf32>
    %738 = arith.mulf %735, %737 : vector<4x64xf32>
    %739 = arith.addf %734, %738 : vector<4x64xf32>
    %c0_203 = arith.constant 0 : index
    %c161_204 = arith.constant 161 : index
    %740 = vector.load %arg15[%c0_203, %c161_204] : memref<4x320xf32, #tpu.memory_space<vmem>>, vector<4x64xf32>
    %741 = vector.extract_strided_slice %460 {offsets = [0, 77], sizes = [4, 1], strides = [1, 1]} : vector<4x81xf32> to vector<4x1xf32>
    %742 = vector.broadcast %741 : vector<4x1xf32> to vector<4x64xf32>
    %743 = arith.mulf %740, %742 : vector<4x64xf32>
    %744 = arith.addf %739, %743 : vector<4x64xf32>
    %745 = vector.extract_strided_slice %461 {offsets = [5, 0], sizes = [1, 64], strides = [1, 1]} : vector<9x64xf32> to vector<1x64xf32>
    %746 = vector.broadcast %745 : vector<1x64xf32> to vector<4x64xf32>
    %747 = arith.mulf %744, %746 : vector<4x64xf32>
    %748 = arith.addf %700, %747 : vector<4x64xf32>
    %c0_205 = arith.constant 0 : index
    %c98_206 = arith.constant 98 : index
    %749 = vector.load %arg15[%c0_205, %c98_206] : memref<4x320xf32, #tpu.memory_space<vmem>>, vector<4x64xf32>
    %750 = vector.extract_strided_slice %460 {offsets = [0, 6], sizes = [4, 1], strides = [1, 1]} : vector<4x81xf32> to vector<4x1xf32>
    %751 = vector.broadcast %750 : vector<4x1xf32> to vector<4x64xf32>
    %752 = arith.mulf %749, %751 : vector<4x64xf32>
    %c0_207 = arith.constant 0 : index
    %c106 = arith.constant 106 : index
    %753 = vector.load %arg15[%c0_207, %c106] : memref<4x320xf32, #tpu.memory_space<vmem>>, vector<4x64xf32>
    %754 = vector.extract_strided_slice %460 {offsets = [0, 15], sizes = [4, 1], strides = [1, 1]} : vector<4x81xf32> to vector<4x1xf32>
    %755 = vector.broadcast %754 : vector<4x1xf32> to vector<4x64xf32>
    %756 = arith.mulf %753, %755 : vector<4x64xf32>
    %757 = arith.addf %752, %756 : vector<4x64xf32>
    %c0_208 = arith.constant 0 : index
    %c114_209 = arith.constant 114 : index
    %758 = vector.load %arg15[%c0_208, %c114_209] : memref<4x320xf32, #tpu.memory_space<vmem>>, vector<4x64xf32>
    %759 = vector.extract_strided_slice %460 {offsets = [0, 24], sizes = [4, 1], strides = [1, 1]} : vector<4x81xf32> to vector<4x1xf32>
    %760 = vector.broadcast %759 : vector<4x1xf32> to vector<4x64xf32>
    %761 = arith.mulf %758, %760 : vector<4x64xf32>
    %762 = arith.addf %757, %761 : vector<4x64xf32>
    %c0_210 = arith.constant 0 : index
    %c122 = arith.constant 122 : index
    %763 = vector.load %arg15[%c0_210, %c122] : memref<4x320xf32, #tpu.memory_space<vmem>>, vector<4x64xf32>
    %764 = vector.extract_strided_slice %460 {offsets = [0, 33], sizes = [4, 1], strides = [1, 1]} : vector<4x81xf32> to vector<4x1xf32>
    %765 = vector.broadcast %764 : vector<4x1xf32> to vector<4x64xf32>
    %766 = arith.mulf %763, %765 : vector<4x64xf32>
    %767 = arith.addf %762, %766 : vector<4x64xf32>
    %c0_211 = arith.constant 0 : index
    %c130_212 = arith.constant 130 : index
    %768 = vector.load %arg15[%c0_211, %c130_212] : memref<4x320xf32, #tpu.memory_space<vmem>>, vector<4x64xf32>
    %769 = vector.extract_strided_slice %460 {offsets = [0, 42], sizes = [4, 1], strides = [1, 1]} : vector<4x81xf32> to vector<4x1xf32>
    %770 = vector.broadcast %769 : vector<4x1xf32> to vector<4x64xf32>
    %771 = arith.mulf %768, %770 : vector<4x64xf32>
    %772 = arith.addf %767, %771 : vector<4x64xf32>
    %c0_213 = arith.constant 0 : index
    %c138 = arith.constant 138 : index
    %773 = vector.load %arg15[%c0_213, %c138] : memref<4x320xf32, #tpu.memory_space<vmem>>, vector<4x64xf32>
    %774 = vector.extract_strided_slice %460 {offsets = [0, 51], sizes = [4, 1], strides = [1, 1]} : vector<4x81xf32> to vector<4x1xf32>
    %775 = vector.broadcast %774 : vector<4x1xf32> to vector<4x64xf32>
    %776 = arith.mulf %773, %775 : vector<4x64xf32>
    %777 = arith.addf %772, %776 : vector<4x64xf32>
    %c0_214 = arith.constant 0 : index
    %c146_215 = arith.constant 146 : index
    %778 = vector.load %arg15[%c0_214, %c146_215] : memref<4x320xf32, #tpu.memory_space<vmem>>, vector<4x64xf32>
    %779 = vector.extract_strided_slice %460 {offsets = [0, 60], sizes = [4, 1], strides = [1, 1]} : vector<4x81xf32> to vector<4x1xf32>
    %780 = vector.broadcast %779 : vector<4x1xf32> to vector<4x64xf32>
    %781 = arith.mulf %778, %780 : vector<4x64xf32>
    %782 = arith.addf %777, %781 : vector<4x64xf32>
    %c0_216 = arith.constant 0 : index
    %c154 = arith.constant 154 : index
    %783 = vector.load %arg15[%c0_216, %c154] : memref<4x320xf32, #tpu.memory_space<vmem>>, vector<4x64xf32>
    %784 = vector.extract_strided_slice %460 {offsets = [0, 69], sizes = [4, 1], strides = [1, 1]} : vector<4x81xf32> to vector<4x1xf32>
    %785 = vector.broadcast %784 : vector<4x1xf32> to vector<4x64xf32>
    %786 = arith.mulf %783, %785 : vector<4x64xf32>
    %787 = arith.addf %782, %786 : vector<4x64xf32>
    %c0_217 = arith.constant 0 : index
    %c162_218 = arith.constant 162 : index
    %788 = vector.load %arg15[%c0_217, %c162_218] : memref<4x320xf32, #tpu.memory_space<vmem>>, vector<4x64xf32>
    %789 = vector.extract_strided_slice %460 {offsets = [0, 78], sizes = [4, 1], strides = [1, 1]} : vector<4x81xf32> to vector<4x1xf32>
    %790 = vector.broadcast %789 : vector<4x1xf32> to vector<4x64xf32>
    %791 = arith.mulf %788, %790 : vector<4x64xf32>
    %792 = arith.addf %787, %791 : vector<4x64xf32>
    %793 = vector.extract_strided_slice %461 {offsets = [6, 0], sizes = [1, 64], strides = [1, 1]} : vector<9x64xf32> to vector<1x64xf32>
    %794 = vector.broadcast %793 : vector<1x64xf32> to vector<4x64xf32>
    %795 = arith.mulf %792, %794 : vector<4x64xf32>
    %796 = arith.addf %748, %795 : vector<4x64xf32>
    %c0_219 = arith.constant 0 : index
    %c99_220 = arith.constant 99 : index
    %797 = vector.load %arg15[%c0_219, %c99_220] : memref<4x320xf32, #tpu.memory_space<vmem>>, vector<4x64xf32>
    %798 = vector.extract_strided_slice %460 {offsets = [0, 7], sizes = [4, 1], strides = [1, 1]} : vector<4x81xf32> to vector<4x1xf32>
    %799 = vector.broadcast %798 : vector<4x1xf32> to vector<4x64xf32>
    %800 = arith.mulf %797, %799 : vector<4x64xf32>
    %c0_221 = arith.constant 0 : index
    %c107 = arith.constant 107 : index
    %801 = vector.load %arg15[%c0_221, %c107] : memref<4x320xf32, #tpu.memory_space<vmem>>, vector<4x64xf32>
    %802 = vector.extract_strided_slice %460 {offsets = [0, 16], sizes = [4, 1], strides = [1, 1]} : vector<4x81xf32> to vector<4x1xf32>
    %803 = vector.broadcast %802 : vector<4x1xf32> to vector<4x64xf32>
    %804 = arith.mulf %801, %803 : vector<4x64xf32>
    %805 = arith.addf %800, %804 : vector<4x64xf32>
    %c0_222 = arith.constant 0 : index
    %c115_223 = arith.constant 115 : index
    %806 = vector.load %arg15[%c0_222, %c115_223] : memref<4x320xf32, #tpu.memory_space<vmem>>, vector<4x64xf32>
    %807 = vector.extract_strided_slice %460 {offsets = [0, 25], sizes = [4, 1], strides = [1, 1]} : vector<4x81xf32> to vector<4x1xf32>
    %808 = vector.broadcast %807 : vector<4x1xf32> to vector<4x64xf32>
    %809 = arith.mulf %806, %808 : vector<4x64xf32>
    %810 = arith.addf %805, %809 : vector<4x64xf32>
    %c0_224 = arith.constant 0 : index
    %c123 = arith.constant 123 : index
    %811 = vector.load %arg15[%c0_224, %c123] : memref<4x320xf32, #tpu.memory_space<vmem>>, vector<4x64xf32>
    %812 = vector.extract_strided_slice %460 {offsets = [0, 34], sizes = [4, 1], strides = [1, 1]} : vector<4x81xf32> to vector<4x1xf32>
    %813 = vector.broadcast %812 : vector<4x1xf32> to vector<4x64xf32>
    %814 = arith.mulf %811, %813 : vector<4x64xf32>
    %815 = arith.addf %810, %814 : vector<4x64xf32>
    %c0_225 = arith.constant 0 : index
    %c131_226 = arith.constant 131 : index
    %816 = vector.load %arg15[%c0_225, %c131_226] : memref<4x320xf32, #tpu.memory_space<vmem>>, vector<4x64xf32>
    %817 = vector.extract_strided_slice %460 {offsets = [0, 43], sizes = [4, 1], strides = [1, 1]} : vector<4x81xf32> to vector<4x1xf32>
    %818 = vector.broadcast %817 : vector<4x1xf32> to vector<4x64xf32>
    %819 = arith.mulf %816, %818 : vector<4x64xf32>
    %820 = arith.addf %815, %819 : vector<4x64xf32>
    %c0_227 = arith.constant 0 : index
    %c139 = arith.constant 139 : index
    %821 = vector.load %arg15[%c0_227, %c139] : memref<4x320xf32, #tpu.memory_space<vmem>>, vector<4x64xf32>
    %822 = vector.extract_strided_slice %460 {offsets = [0, 52], sizes = [4, 1], strides = [1, 1]} : vector<4x81xf32> to vector<4x1xf32>
    %823 = vector.broadcast %822 : vector<4x1xf32> to vector<4x64xf32>
    %824 = arith.mulf %821, %823 : vector<4x64xf32>
    %825 = arith.addf %820, %824 : vector<4x64xf32>
    %c0_228 = arith.constant 0 : index
    %c147_229 = arith.constant 147 : index
    %826 = vector.load %arg15[%c0_228, %c147_229] : memref<4x320xf32, #tpu.memory_space<vmem>>, vector<4x64xf32>
    %827 = vector.extract_strided_slice %460 {offsets = [0, 61], sizes = [4, 1], strides = [1, 1]} : vector<4x81xf32> to vector<4x1xf32>
    %828 = vector.broadcast %827 : vector<4x1xf32> to vector<4x64xf32>
    %829 = arith.mulf %826, %828 : vector<4x64xf32>
    %830 = arith.addf %825, %829 : vector<4x64xf32>
    %c0_230 = arith.constant 0 : index
    %c155 = arith.constant 155 : index
    %831 = vector.load %arg15[%c0_230, %c155] : memref<4x320xf32, #tpu.memory_space<vmem>>, vector<4x64xf32>
    %832 = vector.extract_strided_slice %460 {offsets = [0, 70], sizes = [4, 1], strides = [1, 1]} : vector<4x81xf32> to vector<4x1xf32>
    %833 = vector.broadcast %832 : vector<4x1xf32> to vector<4x64xf32>
    %834 = arith.mulf %831, %833 : vector<4x64xf32>
    %835 = arith.addf %830, %834 : vector<4x64xf32>
    %c0_231 = arith.constant 0 : index
    %c163_232 = arith.constant 163 : index
    %836 = vector.load %arg15[%c0_231, %c163_232] : memref<4x320xf32, #tpu.memory_space<vmem>>, vector<4x64xf32>
    %837 = vector.extract_strided_slice %460 {offsets = [0, 79], sizes = [4, 1], strides = [1, 1]} : vector<4x81xf32> to vector<4x1xf32>
    %838 = vector.broadcast %837 : vector<4x1xf32> to vector<4x64xf32>
    %839 = arith.mulf %836, %838 : vector<4x64xf32>
    %840 = arith.addf %835, %839 : vector<4x64xf32>
    %841 = vector.extract_strided_slice %461 {offsets = [7, 0], sizes = [1, 64], strides = [1, 1]} : vector<9x64xf32> to vector<1x64xf32>
    %842 = vector.broadcast %841 : vector<1x64xf32> to vector<4x64xf32>
    %843 = arith.mulf %840, %842 : vector<4x64xf32>
    %844 = arith.addf %796, %843 : vector<4x64xf32>
    %c0_233 = arith.constant 0 : index
    %c100_234 = arith.constant 100 : index
    %845 = vector.load %arg15[%c0_233, %c100_234] : memref<4x320xf32, #tpu.memory_space<vmem>>, vector<4x64xf32>
    %846 = vector.extract_strided_slice %460 {offsets = [0, 8], sizes = [4, 1], strides = [1, 1]} : vector<4x81xf32> to vector<4x1xf32>
    %847 = vector.broadcast %846 : vector<4x1xf32> to vector<4x64xf32>
    %848 = arith.mulf %845, %847 : vector<4x64xf32>
    %c0_235 = arith.constant 0 : index
    %c108_236 = arith.constant 108 : index
    %849 = vector.load %arg15[%c0_235, %c108_236] : memref<4x320xf32, #tpu.memory_space<vmem>>, vector<4x64xf32>
    %850 = vector.extract_strided_slice %460 {offsets = [0, 17], sizes = [4, 1], strides = [1, 1]} : vector<4x81xf32> to vector<4x1xf32>
    %851 = vector.broadcast %850 : vector<4x1xf32> to vector<4x64xf32>
    %852 = arith.mulf %849, %851 : vector<4x64xf32>
    %853 = arith.addf %848, %852 : vector<4x64xf32>
    %c0_237 = arith.constant 0 : index
    %c116_238 = arith.constant 116 : index
    %854 = vector.load %arg15[%c0_237, %c116_238] : memref<4x320xf32, #tpu.memory_space<vmem>>, vector<4x64xf32>
    %855 = vector.extract_strided_slice %460 {offsets = [0, 26], sizes = [4, 1], strides = [1, 1]} : vector<4x81xf32> to vector<4x1xf32>
    %856 = vector.broadcast %855 : vector<4x1xf32> to vector<4x64xf32>
    %857 = arith.mulf %854, %856 : vector<4x64xf32>
    %858 = arith.addf %853, %857 : vector<4x64xf32>
    %c0_239 = arith.constant 0 : index
    %c124_240 = arith.constant 124 : index
    %859 = vector.load %arg15[%c0_239, %c124_240] : memref<4x320xf32, #tpu.memory_space<vmem>>, vector<4x64xf32>
    %860 = vector.extract_strided_slice %460 {offsets = [0, 35], sizes = [4, 1], strides = [1, 1]} : vector<4x81xf32> to vector<4x1xf32>
    %861 = vector.broadcast %860 : vector<4x1xf32> to vector<4x64xf32>
    %862 = arith.mulf %859, %861 : vector<4x64xf32>
    %863 = arith.addf %858, %862 : vector<4x64xf32>
    %c0_241 = arith.constant 0 : index
    %c132_242 = arith.constant 132 : index
    %864 = vector.load %arg15[%c0_241, %c132_242] : memref<4x320xf32, #tpu.memory_space<vmem>>, vector<4x64xf32>
    %865 = vector.extract_strided_slice %460 {offsets = [0, 44], sizes = [4, 1], strides = [1, 1]} : vector<4x81xf32> to vector<4x1xf32>
    %866 = vector.broadcast %865 : vector<4x1xf32> to vector<4x64xf32>
    %867 = arith.mulf %864, %866 : vector<4x64xf32>
    %868 = arith.addf %863, %867 : vector<4x64xf32>
    %c0_243 = arith.constant 0 : index
    %c140_244 = arith.constant 140 : index
    %869 = vector.load %arg15[%c0_243, %c140_244] : memref<4x320xf32, #tpu.memory_space<vmem>>, vector<4x64xf32>
    %870 = vector.extract_strided_slice %460 {offsets = [0, 53], sizes = [4, 1], strides = [1, 1]} : vector<4x81xf32> to vector<4x1xf32>
    %871 = vector.broadcast %870 : vector<4x1xf32> to vector<4x64xf32>
    %872 = arith.mulf %869, %871 : vector<4x64xf32>
    %873 = arith.addf %868, %872 : vector<4x64xf32>
    %c0_245 = arith.constant 0 : index
    %c148_246 = arith.constant 148 : index
    %874 = vector.load %arg15[%c0_245, %c148_246] : memref<4x320xf32, #tpu.memory_space<vmem>>, vector<4x64xf32>
    %875 = vector.extract_strided_slice %460 {offsets = [0, 62], sizes = [4, 1], strides = [1, 1]} : vector<4x81xf32> to vector<4x1xf32>
    %876 = vector.broadcast %875 : vector<4x1xf32> to vector<4x64xf32>
    %877 = arith.mulf %874, %876 : vector<4x64xf32>
    %878 = arith.addf %873, %877 : vector<4x64xf32>
    %c0_247 = arith.constant 0 : index
    %c156_248 = arith.constant 156 : index
    %879 = vector.load %arg15[%c0_247, %c156_248] : memref<4x320xf32, #tpu.memory_space<vmem>>, vector<4x64xf32>
    %880 = vector.extract_strided_slice %460 {offsets = [0, 71], sizes = [4, 1], strides = [1, 1]} : vector<4x81xf32> to vector<4x1xf32>
    %881 = vector.broadcast %880 : vector<4x1xf32> to vector<4x64xf32>
    %882 = arith.mulf %879, %881 : vector<4x64xf32>
    %883 = arith.addf %878, %882 : vector<4x64xf32>
    %c0_249 = arith.constant 0 : index
    %c164_250 = arith.constant 164 : index
    %884 = vector.load %arg15[%c0_249, %c164_250] : memref<4x320xf32, #tpu.memory_space<vmem>>, vector<4x64xf32>
    %885 = vector.extract_strided_slice %460 {offsets = [0, 80], sizes = [4, 1], strides = [1, 1]} : vector<4x81xf32> to vector<4x1xf32>
    %886 = vector.broadcast %885 : vector<4x1xf32> to vector<4x64xf32>
    %887 = arith.mulf %884, %886 : vector<4x64xf32>
    %888 = arith.addf %883, %887 : vector<4x64xf32>
    %889 = vector.extract_strided_slice %461 {offsets = [8, 0], sizes = [1, 64], strides = [1, 1]} : vector<9x64xf32> to vector<1x64xf32>
    %890 = vector.broadcast %889 : vector<1x64xf32> to vector<4x64xf32>
    %891 = arith.mulf %888, %890 : vector<4x64xf32>
    %892 = arith.addf %844, %891 : vector<4x64xf32>
    %893 = vector.extract_strided_slice %892 {offsets = [0, 0], sizes = [2, 64], strides = [1, 1]} : vector<4x64xf32> to vector<2x64xf32>
    %894 = vector.extract_strided_slice %892 {offsets = [2, 0], sizes = [2, 64], strides = [1, 1]} : vector<4x64xf32> to vector<2x64xf32>
    %895 = arith.mulf %893, %894 : vector<2x64xf32>
    %cst_251 = arith.constant 1.41421354 : f32
    %896 = vector.broadcast %cst_251 : f32 to vector<2x64xf32>
    %897 = arith.mulf %895, %896 : vector<2x64xf32>
    %c0_252 = arith.constant 0 : index
    %c0_253 = arith.constant 0 : index
    %898 = vector.load %arg8[%c0_252, %c0_253] : memref<64x256xf32, #tpu.memory_space<vmem>>, vector<64x256xf32>
    %cst_254 = arith.constant dense<0.000000e+00> : vector<2x256xf32>
    %899 = tpu.matmul %897, %898, %cst_254 {dimension_numbers = #tpu.dot_dimension_numbers<[1], [0], [0], [1], [0, 0, 1, 1], [], []>} : vector<2x64xf32>, vector<64x256xf32>, vector<2x256xf32> -> vector<2x256xf32>
    %c0_255 = arith.constant 0 : index
    %c2 = arith.constant 2 : index
    %900 = vector.load %arg9[%c0_255, %c2] : memref<8x4xf32, #tpu.memory_space<vmem>>, vector<8x2xf32>
    %cst_256 = arith.constant dense<0.000000e+00> : vector<8x256xf32>
    %901 = tpu.matmul %900, %899, %cst_256 {dimension_numbers = #tpu.dot_dimension_numbers<[1], [0], [0], [1], [0, 0, 1, 1], [], []>} : vector<8x2xf32>, vector<2x256xf32>, vector<8x256xf32> -> vector<8x256xf32>
    %902 = arith.addf %454, %901 : vector<8x256xf32>
    %c0_257 = arith.constant 0 : index
    %c0_258 = arith.constant 0 : index
    %903 = vector.load %arg10[%c0_257, %c0_258] : memref<8x1xf32, #tpu.memory_space<vmem>>, vector<8x1xf32>
    %904 = vector.broadcast %903 : vector<8x1xf32> to vector<8x256xf32>
    %905 = arith.addf %902, %904 : vector<8x256xf32>
    %906 = vector.broadcast %9 : vector<8x1xf32> to vector<8x256xf32>
    %907 = arith.addf %905, %906 : vector<8x256xf32>
    %c0_259 = arith.constant 0 : index
    %c0_260 = arith.constant 0 : index
    %c0_261 = arith.constant 0 : index
    %908 = vector.load %arg13[%c0_259, %c0_260, %c0_261] : memref<1x8x256xf32, #tpu.memory_space<vmem>>, vector<1x8x256xf32>
    %909 = vector.shape_cast %908 : vector<1x8x256xf32> to vector<8x256xf32>
    %910 = vector.shape_cast %907 : vector<8x256xf32> to vector<1x8x256xf32>
    tpu.vector_store %arg13[%c0_259, %c0_260, %c0_261], %910 {strides = array<i32>} : memref<1x8x256xf32, #tpu.memory_space<vmem>>, vector<1x8x256xf32>,
    return
  }
  func.func @transform_0(%arg0: i32) -> (i32, i32, i32) {
    %c0_i32 = arith.constant 0 : i32
    %c0_i32_0 = arith.constant 0 : i32
    %c0_i32_1 = arith.constant 0 : i32
    return %arg0, %c0_i32, %c0_i32_0 : i32, i32, i32
  }
  func.func @transform_1(%arg0: i32) -> (i32, i32) {
    %c0_i32 = arith.constant 0 : i32
    %c0_i32_0 = arith.constant 0 : i32
    %c0_i32_1 = arith.constant 0 : i32
    return %c0_i32, %c0_i32_0 : i32, i32
  }
  func.func @transform_2(%arg0: i32) -> (i32, i32) {
    %c0_i32 = arith.constant 0 : i32
    %c0_i32_0 = arith.constant 0 : i32
    %c0_i32_1 = arith.constant 0 : i32
    return %c0_i32, %c0_i32_0 : i32, i32
  }
  func.func @transform_3(%arg0: i32) -> (i32, i32) {
    %c0_i32 = arith.constant 0 : i32
    %c0_i32_0 = arith.constant 0 : i32
    %c0_i32_1 = arith.constant 0 : i32
    return %c0_i32, %c0_i32_0 : i32, i32
  }
  func.func @transform_4(%arg0: i32) -> (i32, i32) {
    %c0_i32 = arith.constant 0 : i32
    %c0_i32_0 = arith.constant 0 : i32
    %c0_i32_1 = arith.constant 0 : i32
    return %c0_i32, %c0_i32_0 : i32, i32
  }
  func.func @transform_5(%arg0: i32) -> (i32, i32) {
    %c0_i32 = arith.constant 0 : i32
    %c0_i32_0 = arith.constant 0 : i32
    %c0_i32_1 = arith.constant 0 : i32
    return %c0_i32, %c0_i32_0 : i32, i32
  }
  func.func @transform_6(%arg0: i32) -> (i32, i32) {
    %c0_i32 = arith.constant 0 : i32
    %c0_i32_0 = arith.constant 0 : i32
    %c0_i32_1 = arith.constant 0 : i32
    return %c0_i32, %c0_i32_0 : i32, i32
  }
  func.func @transform_7(%arg0: i32) -> (i32, i32) {
    %c0_i32 = arith.constant 0 : i32
    %c0_i32_0 = arith.constant 0 : i32
    %c0_i32_1 = arith.constant 0 : i32
    return %c0_i32, %c0_i32_0 : i32, i32
  }
  func.func @transform_8(%arg0: i32) -> (i32, i32) {
    %c0_i32 = arith.constant 0 : i32
    %c0_i32_0 = arith.constant 0 : i32
    %c0_i32_1 = arith.constant 0 : i32
    return %c0_i32, %c0_i32_0 : i32, i32
  }
  func.func @transform_9(%arg0: i32) -> (i32, i32) {
    %c0_i32 = arith.constant 0 : i32
    %c0_i32_0 = arith.constant 0 : i32
    %c0_i32_1 = arith.constant 0 : i32
    return %c0_i32, %c0_i32_0 : i32, i32
  }
  func.func @transform_10(%arg0: i32) -> (i32, i32) {
    %c0_i32 = arith.constant 0 : i32
    %c0_i32_0 = arith.constant 0 : i32
    %c0_i32_1 = arith.constant 0 : i32
    return %c0_i32, %c0_i32_0 : i32, i32
  }
  func.func @transform_11(%arg0: i32) -> (i32, i32) {
    %c0_i32 = arith.constant 0 : i32
    %c0_i32_0 = arith.constant 0 : i32
    %c0_i32_1 = arith.constant 0 : i32
    return %c0_i32, %c0_i32_0 : i32, i32
  }
  func.func @transform_12(%arg0: i32) -> (i32, i32, i32) {
    %c0_i32 = arith.constant 0 : i32
    %c0_i32_0 = arith.constant 0 : i32
    %c0_i32_1 = arith.constant 0 : i32
    return %arg0, %c0_i32, %c0_i32_0 : i32, i32, i32
  }
}

</mosaic_0001>

<bundles_post_ra>
// kernel: tpu_custom_call.1
= control target key start
LH: loop header
LB: loop body
LE: loop exit
PB: predicated region body
PF: predicated region fallthrough
CT: control target
= control target key end

     0   :  { %s7427_s0 = inlined_call_operand.vmem [shape: f32[2,8,256], index: 0, kind: input, shape index: {}]   ;;  %s7428_s1 = inlined_call_operand.vmem [shape: f32[4,8], index: 1, kind: input, shape index: {}]   ;;  %s7429_s2 = inlined_call_operand.vmem [shape: f32[4,81], index: 2, kind: input, shape index: {}]   ;;  %s7430_s3 = inlined_call_operand.vmem [shape: f32[9,256], index: 3, kind: input, shape index: {}]   ;;  %s7431_s4 = inlined_call_operand.vmem [shape: f32[4,81], index: 4, kind: input, shape index: {}]   ;;  %s7432_s5 = inlined_call_operand.vmem [shape: f32[9,64], index: 5, kind: input, shape index: {}]   ;;  %s7433_s6 = inlined_call_operand.vmem [shape: f32[256,64], index: 6, kind: input, shape index: {}]   ;;  %s7434_s7 = inlined_call_operand.vmem [shape: f32[64,256], index: 7, kind: input, shape index: {}]   ;;  %s7435_s8 = inlined_call_operand.vmem [shape: f32[8,4], index: 8, kind: input, shape index: {}]   ;;  %s7436_s9 = inlined_call_operand.vmem [shape: f32[8,1], index: 9, kind: input, shape index: {}]   ;;  %s7437_s10 = inlined_call_operand.vmem [shape: f32[8,8], index: 10, kind: input, shape index: {}]   ;;  %s7438_s11 = inlined_call_operand.vmem [shape: f32[8,1], index: 11, kind: input, shape index: {}]   ;;  %s7439_s12 = inlined_call_operand.hbm [shape: f32[2,8,256], index: 12, kind: output, shape index: {}]  }
   0x1   :  { %7591 = sst [smem:[#allocation38_spill]] %s7427_s0 }
   0x2   :  { %7592 = sst [smem:[#allocation39_spill]] %s7428_s1 }
   0x3   :  { %7593 = sst [smem:[#allocation40_spill]] %s7431_s4 }
   0x4   :  { %7594 = sst [smem:[#allocation41_spill]] %s7433_s6 }
   0x5   :  { %7595 = sst [smem:[#allocation42_spill]] %s7437_s10 }
   0x6   :  { %17 = vsyncpa [#allocation5], 0 }
   0x7   :  { %19 = vsyncpa [#allocation5 + $0x1], 0  ;;  %s5122_s21 = smov 0   ;;  %s5124_s22 = smov 0  }
   0x8   :  { %s5126_s23 = smov 0   ;;  %s5128_s24 = smov 0  }
   0x9 LB: > { %7596 = sst [smem:[#allocation7_spill]] %s4932_s23  ;;  %s5143_s25 = sadd.s32 4294967295, %s4936_s24   ;;  %s4936_s24 = sphi %s5128_s24, %s7773_s24   ;;  %s4932_s23 = sphi %s5126_s23, %s7775_s23   ;;  %s4928_s22 = sphi %s5124_s22, %s7777_s22   ;;  %s4924_s21 = sphi %s5122_s21, %s7776_s21  }
   0xa   : > { %s4427_s26 = sadd.s32 4294967294, %s4936_s24   ;;  %s5147_s27 = sadd.s32 1, %s4936_s24  }
   0xb   : > { %7597 = sst [smem:[#allocation8_spill]] %s5147_s27  ;;  %s289_s28 = sadd.s32 1, %s4932_s23 }
   0xc   : > { %s286_s29 = ssub.s32 %s4936_s24, %s5147_s27  ;;  %p299_p0 = scmp.ne.s32.totalorder %s4932_s23, %s4928_s22 }
   0xd   : > { %p287_p1 = scmp.eq.s32.totalorder %s286_s29, 0  ;;  %p300_p2 = scmp.eq.s32.totalorder %s5143_s25, 1 }
   0xe   : > { %p305_p3 = scmp.ne.s32.totalorder %s4928_s22, %s4924_s21  ;;  %p306_p4 = scmp.eq.s32.totalorder %s4427_s26, 1 }
   0xf   : > { %s5158_s30 = scalar_select %p287_p1, %s4932_s23, %s289_s28  }
  0x10   : > { %p5160_p5 = por %p300_p2, %p299_p0  ;;  %p5164_p6 = por %p306_p4, %p305_p3 }
  0x11   : > { %7598 = sst [smem:[#allocation9_spill]] %s5158_s30  ;;  %p4430_p7 = scmp.ge.s32.totalorder %s4936_s24, 1 }
  0x12   : > { %p365_p8 = scmp.lt.s32.totalorder %s4936_s24, 3 }
  0x14   : > { %p366_p9 = pnand %p4430_p7, %p365_p8 }
  0x16   : > { %369 = sbr.rel (%p366_p9) target bundleno = 2666 (0xa6a), region = 68 }
  0x1d   : > { %v5173_v0 = vld [vmem:[%s7429_s2] sm:$0xf]  ;;  %p407_p10 = scmp.lt.s32.totalorder %s5143_s25, 1  ;;  %v7443_v1 = vmov 45   ;;  %v7440_v2 = vmov 0.0   ;;  %vm2960_vm0 = vcmask 519168   ;;  %v592_v8 = vlaneseq }
  0x1e   : > { %4702 = vset.pattern.permute.xlu0 %v7443_v1  ;;  %483 = vmatprep.mubr.f32.mxu1 %v7440_v2  ;;  %571 = vst [vmem:[#allocation2] sm:$0xff] %v7440_v2  ;;  %572 = vst [vmem:[#allocation2 + $0x8] sm:$0xff] %v7440_v2  ;;  %s7601_s0 = sld [smem:[#allocation38_spill]]  ;;  %v7448_v3 = vmov 9   ;;  %v7450_v4 = vmov 54   ;;  %s7602_s10 = sld [smem:[#allocation42_spill]] }
  0x1f   : > { %2959 = vst [vmem:[#allocation3] sm:$0xff] %v7440_v2  ;;  %715 = vperm.xlu0 %4702, %v5173_v0   ;;  %s408_s17 = scalar_select %p407_p10, %s5143_s25, 1  ;;  %4698 = vset.pattern.permute.xlu1 %v7448_v3  ;;  %vm415_vm1 = vcmask 64512   ;;  %v5198_v10 = vshrl.u32 %v592_v8, 7  ;;  %v7449_v11 = vmov 63   ;;  %v7452_v12 = vmov 18  }
  0x20   : > { %600 = vperm.xlu1 %4698, %v5173_v0   ;;  %s7603_s1 = sld [smem:[#allocation39_spill]]  ;;  %v5212_v14 = vld [vmem:[%s7430_s3] sm:$0xff]  ;;  %v5217_v15 = vld [vmem:[%s7430_s3 + $0x8] sm:$0xff]  ;;  %v7442_v16 = vmov 72   ;;  %v7445_v17 = vmov 27   ;;  %v7481_v20 = vmov 10  }
  0x21   : > { %s4454_s18 = sshll.u32 %s408_s17, 4  ;;  %v5206_v13 = vsub.s32 0, %v5198_v10  ;;  %v7444_v21 = vmov 36   ;;  %v5232_v23 = vsub.s32 1, %v5198_v10  ;;  %v7479_v24 = vmov 19   ;;  %s4952_s28 = smov 61  }
  0x22   : > { %v7447_v27 = vmov 1   ;;  %v5243_v29 = vsub.s32 2, %v5198_v10  ;;  %v7480_v30 = vmov 28   ;;  %v7446_v33 = vmov 2   ;;  %s4956_s29 = smov 62   ;;  %s7604_s6 = sld [smem:[#allocation41_spill]] }
  0x23   : > { %4703 = vset.pattern.permute.xlu0 %v7450_v4  ;;  %v813_v18 = vrot.slane %v5212_v14, %v5206_v13  ;;  %v817_v19 = vrot.slane %v5217_v15, %v5206_v13  ;;  %v1051_v25 = vrot.slane %v5212_v14, %v5232_v23  ;;  %v1055_v26 = vrot.slane %v5217_v15, %v5232_v23  ;;  %s7487_s16 = smov 48   ;;  %s7500_s17 = smov 32  }
  0x24   : > { %s411_s26 = scalar_lea.vmem %s7601_s0, %s4454_s18  ;;  %v414_v7 = vld [vmem:[%s7602_s10] sm:$0xff]  ;;  %742 = vperm.xlu0 %4703, %v5173_v0   ;;  %4699 = vset.pattern.permute.xlu1 %v7452_v12  ;;  %v1304_v31 = vrot.slane %v5212_v14, %v5243_v29  ;;  %v1308_v32 = vrot.slane %v5217_v15, %v5243_v29  ;;  %v7478_v34 = vmov 37   ;;  %v7467_v36 = vmov 46   ;;  %s7513_s18 = smov 16  }
  0x25   : > { %v413_v5 = vld [vmem:[%s411_s26 + $0x8] sm:$0xff]  ;;  %v412_v6 = vld [vmem:[%s411_s26] sm:$0xff]  ;;  %629 = vperm.xlu1 %4699, %v5173_v0   ;;  %v820_v22 = vcombine.low %v813_v18, %v817_v19  ;;  %s4949_s26 = smov 60   ;;  %v1058_v28 = vcombine.low %v1051_v25, %v1055_v26  ;;  %v7451_v37 = vmov 3   ;;  %v7472_v38 = vmov 55   ;;  %s7531_s19 = smov 112  }
  0x26   : > { %419 = vmatprep.subr.mxu1 %v413_v5  ;;  %v496_v9 = vld [vmem:[%s7603_s1] sm:$0xf]  ;;  %v1311_v35 = vcombine.low %v1304_v31, %v1308_v32  ;;  %v7468_v39 = vmov 64   ;;  %v7456_v40 = vmov 73   ;;  %v7477_v46 = vmov 11   ;;  %s7497_s20 = smov 96  }
  0x27   : > { %420 = vmatpush1.msra.mxu1 %v412_v6  ;;  %v7475_v54 = vmov 20   ;;  %v7471_v61 = vmov 29   ;;  %v7462_v31 = vmov 47   ;;  %v7454_v12 = vmov 66   ;;  %s7493_s15 = smov 127   ;;  %s7634_s4 = sld [smem:[#allocation40_spill]] }
  0x28   : > { %4434 = vmatmul.mubr.msk.f32.vlgmr.msra.gmra.mrb[0].mxu1 %vm415_vm1, %v414_v7  ;;  %500 = vmatprep.subr.mxu1 %v413_v5  ;;  %v2873_v41 = vld [vmem:[%s7604_s6 + $0x80] sm:$0xff]  ;;  %v2874_v42 = vld [vmem:[%s7604_s6 + $0x88] sm:$0xff]  ;;  %v2875_v48 = vld [vmem:[%s7604_s6 + $0x90] sm:$0xff]  ;;  %vm620_vm2 = vcmask 1043456   ;;  %vm622_vm3 = vcmask 916480   ;;  %vm650_vm4 = vcmask 785408  }
  0x29   : > { %501 = vmatpush1.msra.mxu1 %v412_v6  ;;  %564 = vmatprep.mubr.f32.mxu1 %v7440_v2  ;;  %v2857_v43 = vld [vmem:[%s7604_s6] sm:$0xff]  ;;  %v4491_v44 = vpack.c.bf16 %v2874_v42, %v2873_v41  ;;  %v2858_v45 = vld [vmem:[%s7604_s6 + $0x8] sm:$0xff]  ;;  %v2876_v49 = vld [vmem:[%s7604_s6 + $0x98] sm:$0xff]  ;;  %vm678_vm5 = vcmask 654336   ;;  %vm706_vm6 = vcmask 523264   ;;  %vm734_vm7 = vcmask 392192  }
  0x2a   : > { %4704 = vset.pattern.permute.xlu0 %v7449_v11  ;;  %4700 = vset.pattern.permute.xlu1 %v7445_v17  ;;  %v4493_v47 = vpack.c.bf16 %v2858_v45, %v2857_v43  ;;  %v2859_v50 = vld [vmem:[%s7604_s6 + $0x10] sm:$0xff]  ;;  %v4495_v51 = vpack.c.bf16 %v2876_v49, %v2875_v48  ;;  %v2860_v52 = vld [vmem:[%s7604_s6 + $0x18] sm:$0xff]  ;;  %v2877_v55 = vld [vmem:[%s7604_s6 + $0xa0] sm:$0xff]  ;;  %vm761_vm8 = vcmask 261120   ;;  %vm788_vm9 = vcmask 130048   ;;  %s7686_s0 = smov 104  }
  0x2b   : > { %769 = vperm.xlu0 %4704, %v5173_v0   ;;  %657 = vperm.xlu1 %4700, %v5173_v0   ;;  %v4497_v53 = vpack.c.bf16 %v2860_v52, %v2859_v50  ;;  %v2878_v56 = vld [vmem:[%s7604_s6 + $0xa8] sm:$0xff]  ;;  %v2861_v57 = vld [vmem:[%s7604_s6 + $0x20] sm:$0xff]  ;;  %v2879_v62 = vld [vmem:[%s7604_s6 + $0xb0] sm:$0xff]  ;;  %vm1568_vm10 = vcmask 515072   ;;  %vm1062_vm11 = vcmask 498688   ;;  %vm1315_vm12 = vcmask 506880  }
  0x2c   : > { %4435 = vmatmul.mubr.msk.f32.vlgmr.msra.gmra.mrb[2].mxu1 %vm415_vm1, %v496_v9  ;;  %4492 = vmatprep.subr.bf16.mxu0 %v4491_v44  ;;  %v4499_v58 = vpack.c.bf16 %v2878_v56, %v2877_v55  ;;  %v2862_v59 = vld [vmem:[%s7604_s6 + $0x28] sm:$0xff]  ;;  %v2880_v63 = vld [vmem:[%s7604_s6 + $0xb8] sm:$0xff]  ;;  %v2863_v5 = vld [vmem:[%s7604_s6 + $0x30] sm:$0xff]  ;;  %v7465_v9 = vmov 38   ;;  %v7459_v44 = vmov 56   ;;  %vm2067_vm13 = vcmask 531456  }
  0x2d   : > { %4155 = vmatprep.mubr.f32.mxu1 %v7440_v2  ;;  %4494 = vmatpush3.bf16.msra.mxu0 %v4493_v47  ;;  %v4501_v60 = vpack.c.bf16 %v2862_v59, %v2861_v57  ;;  %v4503_v6 = vpack.c.bf16 %v2880_v63, %v2879_v62  ;;  %v2864_v7 = vld [vmem:[%s7604_s6 + $0x38] sm:$0xff]  ;;  %v2881_v18 = vld [vmem:[%s7604_s6 + $0xc0] sm:$0xff]  ;;  %v2882_v19 = vld [vmem:[%s7604_s6 + $0xc8] sm:$0xff]  ;;  %v7461_v62 = vmov 74   ;;  %v7473_v63 = vmov 12   ;;  %s7690_s1 = smov 64  }
  0x2e   : > { %4496 = vmatprep.subr.bf16.mxu0 %v4495_v51  ;;  %v4505_v8 = vpack.c.bf16 %v2864_v7, %v2863_v5  ;;  %v4507_v25 = vpack.c.bf16 %v2882_v19, %v2881_v18  ;;  %v2866_v26 = vld [vmem:[%s7604_s6 + $0x48] sm:$0xff]  ;;  %v2883_v32 = vld [vmem:[%s7604_s6 + $0xd0] sm:$0xff]  ;;  %v2868_v43 = vld [vmem:[%s7604_s6 + $0x58] sm:$0xff]  ;;  %v7469_v5 = vmov 21   ;;  %v7460_v7 = vmov 39   ;;  %s7694_s10 = smov 120  }
  0x2f   : > { %4705 = vset.pattern.permute.xlu0 %v7442_v16  ;;  %4701 = vset.pattern.permute.xlu1 %v7444_v21  ;;  %v2867_v41 = vld [vmem:[%s7604_s6 + $0x50] sm:$0xff]  ;;  %v2885_v47 = vld [vmem:[%s7604_s6 + $0xe0] sm:$0xff]  ;;  %v2886_v48 = vld [vmem:[%s7604_s6 + $0xe8] sm:$0xff]  ;;  %v7457_v19 = vmov 48   ;;  %s5045_s27 = smov 100   ;;  %s5046_s23 = smov 94  }
  0x30   : > { %796 = vperm.xlu0 %4705, %v5173_v0   ;;  %685 = vperm.xlu1 %4701, %v5173_v0   ;;  %v4513_v45 = vpack.c.bf16 %v2868_v43, %v2867_v41  ;;  %v4515_v49 = vpack.c.bf16 %v2886_v48, %v2885_v47  ;;  %v2869_v50 = vld [vmem:[%s7604_s6 + $0x60] sm:$0xff]  ;;  %v2870_v51 = vld [vmem:[%s7604_s6 + $0x68] sm:$0xff]  ;;  %v2887_v55 = vld [vmem:[%s7604_s6 + $0xf0] sm:$0xff]  ;;  %vm7581_vm14 = vcmask 982016   ;;  %vm3006_vm15 = vcmask 850944   ;;  %s7698_s30 = smov 124  }
  0x31   : > { %4498 = vmatpush3.bf16.msra.mxu0 %v4497_v53  ;;  %v4517_v52 = vpack.c.bf16 %v2870_v51, %v2869_v50  ;;  %v7455_v53 = vmov 65   ;;  %v2888_v56 = vld [vmem:[%s7604_s6 + $0xf8] sm:$0xff]  ;;  %vm3057_vm1 = vcmask 588800  }
  0x32   : > { %4500 = vmatprep.subr.bf16.mxu0 %v4499_v58  ;;  %v4519_v57 = vpack.c.bf16 %v2888_v56, %v2887_v55  ;;  %v2871_v58 = vld [vmem:[%s7604_s6 + $0x70] sm:$0xff]  ;;  %v2872_v59 = vld [vmem:[%s7604_s6 + $0x78] sm:$0xff] }
  0x34   : > { %4707 = vset.pattern.permute.xlu0 %v7481_v20  ;;  %821 = vrot.lane.b32.xlu1 %v820_v22, %s4949_s26  ;;  %v2865_v22 = vld [vmem:[%s7604_s6 + $0x40] sm:$0xff]  ;;  %s7495_s26 = smov 80  }
  0x35   : > { %846 = vperm.xlu0 %4707, %v5173_v0   ;;  %4706 = vset.pattern.permute.xlu1 %v7447_v27 }
  0x36   : > { %4502 = vmatpush3.bf16.msra.mxu0 %v4501_v60  ;;  %v4521_v60 = vpack.c.bf16 %v2872_v59, %v2871_v58  ;;  %v5416_v58 = vld [vmem:[#allocation2 + $0xc] sm:$0xf] }
  0x37   : > { %4504 = vmatprep.subr.bf16.mxu0 %v4503_v6  ;;  %v7474_v6 = vmov 30  }
  0x38   : > { %833 = vperm.xlu1 %4706, %v5173_v0  }
  0x39   : > { %4708 = vset.pattern.permute.xlu0 %v7479_v24 }
  0x3a   : > { %873 = vperm.xlu0 %4708, %v5173_v0   ;;  %4506 = vmatpush3.bf16.msra.mxu0 %v4505_v8  ;;  %v4973_v8 = vmov 839922192  }
  0x3b   : > { %4508 = vmatprep.subr.bf16.mxu0 %v4507_v25  ;;  %v590_v18 = vunpack.c.l.s4 %v4973_v8 }
  0x3c   : > { %1059 = vrot.lane.b32.xlu1 %v1058_v28, %s4952_s28  ;;  %v4509_v28 = vpack.c.bf16 %v2866_v26, %v2865_v22  ;;  %v7463_v26 = vmov 57   ;;  %s7515_s28 = smov 64  }
  0x3d   : > { %4715 = vset.pattern.permute.xlu1 %v7446_v33  ;;  %v591_v22 = vunpack.c.0.s8 %v590_v18 }
  0x3e   : > { %4709 = vset.pattern.permute.xlu0 %v7480_v30  ;;  %4510 = vmatpush3.bf16.msra.mxu0 %v4509_v28 }
  0x3f   : > { %900 = vperm.xlu0 %4709, %v5173_v0   ;;  %v5388_v25 = vsub.s32 %v591_v22, %v5198_v10 }
  0x40   : > { %1086 = vperm.xlu1 %4715, %v5173_v0  }
  0x43   : > { %4710 = vset.pattern.permute.xlu0 %v7478_v34 }
  0x44   : > { %927 = vperm.xlu0 %4710, %v5173_v0   ;;  %1312 = vrot.lane.b32.xlu1 %v1311_v35, %s4956_s29  ;;  %v2884_v35 = vld [vmem:[%s7604_s6 + $0xd8] sm:$0xff]  ;;  %s4990_s29 = smov 63   ;;  %s5042_s6 = smov 95  }
  0x45   : > { %4724 = vset.pattern.permute.xlu1 %v7451_v37  ;;  %v4511_v42 = vpack.c.bf16 %v2884_v35, %v2883_v32  ;;  %v713_v32 = vld [vmem:[#allocation2 + $0xc] sm:$0xf] }
  0x47   : > { %4512 = vmatprep.subr.bf16.mxu0 %v4511_v42 }
  0x48   : > { %4711 = vset.pattern.permute.xlu0 %v7467_v36  ;;  %1339 = vperm.xlu1 %4724, %v5173_v0  }
  0x49   : > { %956 = vperm.xlu0 %4711, %v5173_v0   ;;  %4514 = vmatpush3.bf16.msra.mxu0 %v4513_v45 }
  0x4a   : > { %4516 = vmatprep.subr.bf16.mxu0 %v4515_v49 }
  0x4d   : > { %4712 = vset.pattern.permute.xlu0 %v7472_v38  ;;  %4518 = vmatpush3.bf16.msra.mxu0 %v4517_v52 }
  0x4e   : > { %982 = vperm.xlu0 %4712, %v5173_v0   ;;  %4520 = vmatprep.subr.bf16.mxu0 %v4519_v57 }
  0x51   : > { %4522 = vmatpush3.bf16.msra.mxu0 %v4521_v60 }
  0x52   : > { %4713 = vset.pattern.permute.xlu0 %v7468_v39 }
  0x53   : > { %1008 = vperm.xlu0 %4713, %v5173_v0  }
  0x57   : > { %4714 = vset.pattern.permute.xlu0 %v7456_v40 }
  0x58   : > { %1034 = vperm.xlu0 %4714, %v5173_v0  }
  0x5c   : > { %4716 = vset.pattern.permute.xlu0 %v7477_v46 }
  0x5d   : > { %1099 = vperm.xlu0 %4716, %v5173_v0  }
  0x61   : > { %4717 = vset.pattern.permute.xlu0 %v7475_v54 }
  0x62   : > { %1126 = vperm.xlu0 %4717, %v5173_v0  }
  0x66   : > { %4718 = vset.pattern.permute.xlu0 %v7471_v61 }
  0x67   : > { %1153 = vperm.xlu0 %4718, %v5173_v0  }
  0x6b   : > { %4719 = vset.pattern.permute.xlu0 %v7465_v9 }
  0x6c   : > { %1180 = vperm.xlu0 %4719, %v5173_v0  }
  0x70   : > { %4720 = vset.pattern.permute.xlu0 %v7462_v31 }
  0x71   : > { %1209 = vperm.xlu0 %4720, %v5173_v0  }
  0x75   : > { %4721 = vset.pattern.permute.xlu0 %v7459_v44 }
  0x76   : > { %1235 = vperm.xlu0 %4721, %v5173_v0  }
  0x7a   : > { %4722 = vset.pattern.permute.xlu0 %v7455_v53 }
  0x7b   : > { %1261 = vperm.xlu0 %4722, %v5173_v0  }
  0x7f   : > { %4723 = vset.pattern.permute.xlu0 %v7461_v62 }
  0x80   : > { %1287 = vperm.xlu0 %4723, %v5173_v0  }
  0x84   : > { %4725 = vset.pattern.permute.xlu0 %v7473_v63 }
  0x85   : > { %1352 = vperm.xlu0 %4725, %v5173_v0  }
  0x89   : > { %4726 = vset.pattern.permute.xlu0 %v7469_v5 }
  0x8a   : > { %1379 = vperm.xlu0 %4726, %v5173_v0  }
  0x8e   : > { %4727 = vset.pattern.permute.xlu0 %v7474_v6 }
  0x8f   : > { %1406 = vperm.xlu0 %4727, %v5173_v0  }
  0x93   : > { %4728 = vset.pattern.permute.xlu0 %v7460_v7 }
  0x94   : > { %1433 = vperm.xlu0 %4728, %v5173_v0  }
  0x98   : > { %4729 = vset.pattern.permute.xlu0 %v7457_v19 }
  0x99   : > { %1462 = vperm.xlu0 %4729, %v5173_v0  }
  0x9d   : > { %4730 = vset.pattern.permute.xlu0 %v7463_v26 }
  0x9e   : > { %v716_v28 = vpop.permute.xlu0 %715 }
  0x9f   : > { %v5392_v35 = vrot.slane %v716_v28, %v5388_v25 }
  0xa1   : > { %v726_v41 = vmul.f32 %v5392_v35, %v713_v32 }
  0xa3   : > { %v743_v42 = vpop.permute.xlu0 %742  ;;  %731 = vrot.lane.b32.xlu1 %v726_v41, %s7487_s16 }
  0xa4   : > { %v5397_v43 = vrot.slane %v743_v42, %v5388_v25 }
  0xa6   : > { %v753_v45 = vmul.f32 %v5397_v43, %v713_v32 }
  0xa8   : > { %758 = vrot.lane.b32.xlu1 %v753_v45, %s7500_s17 }
  0xaa   : > { %v770_v47 = vpop.permute.xlu0 %769 }
  0xab   : > { %v5402_v48 = vrot.slane %v770_v47, %v5388_v25 }
  0xad   : > { %v780_v49 = vmul.f32 %v5402_v48, %v713_v32 }
  0xaf   : > { %v5405_v50 = vpop.permute.xlu0 %796  ;;  %785 = vrot.lane.b32.xlu1 %v780_v49, %s7513_s18 }
  0xb0   : > { %7605 = vst [vmem:[#allocation10_spill] sm:$0xff] %v5405_v50 }
  0xb4   : > { %v5408_v51 = vpop.permute.xlu0 %846 }
  0xb9   : > { %v5410_v52 = vpop.permute.xlu0 %873 }
  0xbe   : > { %v5412_v55 = vpop.permute.xlu0 %900 }
  0xc3   : > { %v5414_v56 = vpop.permute.xlu0 %927 }
  0xc8   : > { %v957_v57 = vpop.permute.xlu0 %956 }
  0xc9   : > { %v5419_v59 = vrot.slane %v957_v57, %v5388_v25 }
  0xcb   : > { %v967_v60 = vmul.f32 %v5419_v59, %v5416_v58 }
  0xcd   : > { %v983_v8 = vpop.permute.xlu0 %982  ;;  %972 = vrot.lane.b32.xlu1 %v967_v60, %s7487_s16 }
  0xce   : > { %v5425_v18 = vrot.slane %v983_v8, %v5388_v25  ;;  %v5446_v8 = vld [vmem:[#allocation2 + $0xc] sm:$0xf] }
  0xd0   : > { %v993_v22 = vmul.f32 %v5425_v18, %v5416_v58 }
  0xd2   : > { %v1009_v28 = vpop.permute.xlu0 %1008  ;;  %998 = vrot.lane.b32.xlu1 %v993_v22, %s7500_s17 }
  0xd3   : > { %v5431_v32 = vrot.slane %v1009_v28, %v5388_v25 }
  0xd5   : > { %v1019_v41 = vmul.f32 %v5431_v32, %v5416_v58 }
  0xd7   : > { %v5435_v42 = vpop.permute.xlu0 %1034  ;;  %1024 = vrot.lane.b32.xlu1 %v1019_v41, %s7513_s18 }
  0xdc   : > { %v5438_v45 = vpop.permute.xlu0 %1099 }
  0xe1   : > { %v5440_v47 = vpop.permute.xlu0 %1126 }
  0xe6   : > { %v5442_v49 = vpop.permute.xlu0 %1153 }
  0xeb   : > { %v5444_v57 = vpop.permute.xlu0 %1180 }
  0xf0   : > { %v1210_v60 = vpop.permute.xlu0 %1209 }
  0xf1   : > { %v5449_v22 = vrot.slane %v1210_v60, %v5388_v25 }
  0xf3   : > { %v1220_v28 = vmul.f32 %v5449_v22, %v5446_v8 }
  0xf5   : > { %v1236_v2 = vpop.permute.xlu0 %1235  ;;  %1225 = vrot.lane.b32.xlu1 %v1220_v28, %s7487_s16 }
  0xf6   : > { %v5455_v41 = vrot.slane %v1236_v2, %v5388_v25 }
  0xf8   : > { %v1246_v16 = vmul.f32 %v5455_v41, %v5446_v8 }
  0xfa   : > { %v1262_v1 = vpop.permute.xlu0 %1261  ;;  %1251 = vrot.lane.b32.xlu1 %v1246_v16, %s7500_s17  ;;  %v601_v16 = vpop.permute.xlu1 %600 }
  0xfb   : > { %v485_v21 = vpop.f32.mrb[0].mxu1  ;;  %v5461_v17 = vrot.slane %v1262_v1, %v5388_v25  ;;  %v608_v1 = vrot.slane %v601_v16, %v5388_v25 }
  0xfc   : > { %v487_v60 = vpop.f32.mrb[1].mxu1 }
  0xfd   : > { %v490_v33 = vadd.f32 %v487_v60, %v485_v21  ;;  %v1272_v27 = vmul.f32 %v5461_v17, %v5446_v8 }
  0xff   : > { %v566_v3 = vpop.f32.mrb[2].mxu1  ;;  %491 = vadd.xlane.f32.xlu0 %v490_v33  ;;  %1277 = vrot.lane.b32.xlu1 %v1272_v27, %s7513_s18  ;;  %v630_v33 = vpop.permute.xlu1 %629 }
 0x100   : > { %v568_v2 = vpop.f32.mrb[3].mxu1  ;;  %v637_v27 = vrot.slane %v630_v33, %v5388_v25 }
 0x101   : > { %v5466_v28 = vcombine.low %v566_v3, %v568_v2  ;;  %2953 = vmatprep.mubr.f32.mxu0 %v568_v2 }
 0x102   : > { %2954 = vmatmul.mubr.f32.vlgmr.msra.gmra.mrb[0].mxu0 %v566_v3 }
 0x103   : > { %577 = vst [vmem:[#allocation2 + $0x4] sm:$0xff] %v5466_v28  ;;  %v658_v2 = vpop.permute.xlu1 %657  ;;  %v1271_v62 = vmul.f32 %v5461_v17, %v5466_v28 }
 0x104   : > { %v665_v16 = vrot.slane %v658_v2, %v5388_v25  ;;  %v7464_v2 = vmov 22  }
 0x10a   : > { %v5470_v11 = vld [vmem:[#allocation2] sm:$0xff]  ;;  %v584_v60 = vld [vmem:[#allocation2 + $0x8] sm:$0xf] }
 0x10b   : > { %v610_v21 = vmul.f32 %v5470_v11, %v608_v1  ;;  %v611_v4 = vmul.f32 %v608_v1, %v584_v60  ;;  %v639_v3 = vmul.f32 %v5470_v11, %v637_v27  ;;  %v640_v37 = vmul.f32 %v637_v27, %v584_v60  ;;  %v5624_v31 = vld [vmem:[#allocation2 + $0x8] sm:$0xf] }
 0x10c   : > { %v7453_v1 = vmov 75   ;;  %v668_v27 = vmul.f32 %v665_v16, %v584_v60 }
 0x10d   : > { %614 = vrot.lane.b32.xlu1 %v610_v21, %s7531_s19  ;;  %v686_v21 = vpop.permute.xlu1 %685 }
 0x10e   : > { %v693_v33 = vrot.slane %v686_v21, %v5388_v25  ;;  %v725_v21 = vmul.f32 %v5392_v35, %v5466_v28  ;;  %v779_v35 = vmul.f32 %v5402_v48, %v5466_v28 }
 0x111   : > { %616 = vrot.lane.b32.xlu1 %v611_v4, %s7531_s19  ;;  %v667_v4 = vmul.f32 %v5470_v11, %v665_v16  ;;  %v5496_v16 = vpop.permute.xlu1 %821 }
 0x112   : > { %7606 = vst [vmem:[#allocation11_spill] sm:$0xff] %v5496_v16 }
 0x115   : > { %1488 = vperm.xlu0 %4730, %v5173_v0   ;;  %643 = vrot.lane.b32.xlu1 %v639_v3, %s7497_s20  ;;  %v7476_v3 = vmov 13  }
 0x119   : > { %4731 = vset.pattern.permute.xlu0 %v7454_v12  ;;  %645 = vrot.lane.b32.xlu1 %v640_v37, %s7497_s20  ;;  %v695_v37 = vmul.f32 %v5470_v11, %v693_v33  ;;  %v881_v12 = vrot.slane %v5410_v52, %v5388_v25 }
 0x11a   : > { %1514 = vperm.xlu0 %4731, %v5173_v0  }
 0x11b   : > { %v883_v48 = vmul.f32 %v5470_v11, %v881_v12 }
 0x11d   : > { %671 = vrot.lane.b32.xlu1 %v667_v4, %s7495_s26  ;;  %v696_v4 = vmul.f32 %v693_v33, %v584_v60  ;;  %v5505_v60 = vpop.permute.xlu1 %833  ;;  %v7466_v33 = vmov 40  }
 0x11e   : > { %4732 = vset.pattern.permute.xlu0 %v7453_v1  ;;  %v5518_v1 = vld [vmem:[#allocation2 + $0x8] sm:$0xf] }
 0x11f   : > { %1540 = vperm.xlu0 %4732, %v5173_v0  }
 0x121   : > { %673 = vrot.lane.b32.xlu1 %v668_v27, %s7495_s26  ;;  %v7470_v27 = vmov 31  }
 0x123   : > { %4734 = vset.pattern.permute.xlu0 %v7476_v3 }
 0x124   : > { %1605 = vperm.xlu0 %4734, %v5173_v0  }
 0x125   : > { %699 = vrot.lane.b32.xlu1 %v695_v37, %s7515_s28  ;;  %v752_v37 = vmul.f32 %v5397_v43, %v5466_v28 }
 0x128   : > { %4735 = vset.pattern.permute.xlu0 %v7464_v2 }
 0x129   : > { %1632 = vperm.xlu0 %4735, %v5173_v0   ;;  %701 = vrot.lane.b32.xlu1 %v696_v4, %s7515_s28  ;;  %v854_v4 = vrot.slane %v5408_v51, %v5388_v25 }
 0x12b   : > { %v856_v43 = vmul.f32 %v5470_v11, %v854_v4 }
 0x12d   : > { %4736 = vset.pattern.permute.xlu0 %v7470_v27  ;;  %729 = vrot.lane.b32.xlu1 %v725_v21, %s7487_s16  ;;  %v5515_v21 = vpop.permute.xlu1 %1059 }
 0x12e   : > { %1659 = vperm.xlu0 %4736, %v5173_v0  }
 0x131   : > { %756 = vrot.lane.b32.xlu1 %v752_v37, %s7500_s17  ;;  %v857_v37 = vmul.f32 %v854_v4, %v5518_v1  ;;  %v5524_v53 = vpop.permute.xlu1 %1086 }
 0x132   : > { %4737 = vset.pattern.permute.xlu0 %v7466_v33 }
 0x133   : > { %1687 = vperm.xlu0 %4737, %v5173_v0  }
 0x135   : > { %783 = vrot.lane.b32.xlu1 %v779_v35, %s7513_s18  ;;  %v5529_v51 = vpop.permute.xlu1 %1312  ;;  %v884_v35 = vmul.f32 %v881_v12, %v5518_v1 }
 0x139   : > { %860 = vrot.lane.b32.xlu1 %v856_v43, %s7531_s19  ;;  %v908_v43 = vrot.slane %v5412_v55, %v5388_v25  ;;  %v5536_v52 = vpop.permute.xlu1 %1339  ;;  %v7458_v55 = vmov 4  }
 0x13a   : > { %4733 = vset.pattern.permute.xlu1 %v7458_v55 }
 0x13b   : > { %v910_v4 = vmul.f32 %v5470_v11, %v908_v43 }
 0x13d   : > { %862 = vrot.lane.b32.xlu1 %v857_v37, %s7531_s19  ;;  %v911_v37 = vmul.f32 %v908_v43, %v5518_v1  ;;  %v5542_v40 = vpop.permute.xlu1 %731 }
 0x13e   : > { %7607 = vst [vmem:[#allocation12_spill] sm:$0xff] %v5542_v40 }
 0x141   : > { %887 = vrot.lane.b32.xlu1 %v883_v48, %s7497_s20  ;;  %v935_v48 = vrot.slane %v5414_v56, %v5388_v25  ;;  %v966_v56 = vmul.f32 %v5419_v59, %v5466_v28 }
 0x143   : > { %v937_v12 = vmul.f32 %v5470_v11, %v935_v48 }
 0x145   : > { %889 = vrot.lane.b32.xlu1 %v884_v35, %s7497_s20  ;;  %v5548_v35 = vpop.permute.xlu1 %758 }
 0x146   : > { %7608 = vst [vmem:[#allocation13_spill] sm:$0xff] %v5548_v35 }
 0x149   : > { %914 = vrot.lane.b32.xlu1 %v910_v4, %s7495_s26  ;;  %v938_v4 = vmul.f32 %v935_v48, %v5518_v1  ;;  %v5554_v43 = vpop.permute.xlu1 %785  ;;  %v1107_v48 = vrot.slane %v5438_v45, %v5388_v25 }
 0x14a   : > { %7609 = vst [vmem:[#allocation14_spill] sm:$0xff] %v5554_v43 }
 0x14d   : > { %916 = vrot.lane.b32.xlu1 %v911_v37, %s7495_s26  ;;  %v992_v37 = vmul.f32 %v5425_v18, %v5466_v28  ;;  %v5559_v19 = vpop.permute.xlu1 %972 }
 0x151   : > { %941 = vrot.lane.b32.xlu1 %v937_v12, %s7515_s28  ;;  %v1018_v12 = vmul.f32 %v5431_v32, %v5466_v28  ;;  %v5567_v59 = vpop.permute.xlu1 %998 }
 0x155   : > { %943 = vrot.lane.b32.xlu1 %v938_v4, %s7515_s28  ;;  %v1109_v4 = vmul.f32 %v5470_v11, %v1107_v48  ;;  %v5576_v55 = vpop.permute.xlu1 %1024 }
 0x159   : > { %970 = vrot.lane.b32.xlu1 %v966_v56, %s7487_s16  ;;  %v5570_v56 = vld [vmem:[#allocation2 + $0x8] sm:$0xf] }
 0x15a   : > { %v1110_v18 = vmul.f32 %v1107_v48, %v5570_v56 }
 0x15d   : > { %996 = vrot.lane.b32.xlu1 %v992_v37, %s7500_s17  ;;  %v1134_v37 = vrot.slane %v5440_v47, %v5388_v25 }
 0x15f   : > { %v1136_v32 = vmul.f32 %v5470_v11, %v1134_v37 }
 0x161   : > { %1022 = vrot.lane.b32.xlu1 %v1018_v12, %s7513_s18  ;;  %v1137_v12 = vmul.f32 %v1134_v37, %v5570_v56 }
 0x165   : > { %1113 = vrot.lane.b32.xlu1 %v1109_v4, %s7531_s19  ;;  %v1161_v4 = vrot.slane %v5442_v49, %v5388_v25 }
 0x167   : > { %v5581_v45 = vpop.permute.xlu1 %1225  ;;  %v1163_v48 = vmul.f32 %v5470_v11, %v1161_v4 }
 0x169   : > { %1115 = vrot.lane.b32.xlu1 %v1110_v18, %s7531_s19  ;;  %v1164_v18 = vmul.f32 %v1161_v4, %v5570_v56  ;;  %v1219_v4 = vmul.f32 %v5449_v22, %v5466_v28 }
 0x16c   : > { %v5588_v47 = vpop.permute.xlu1 %1251 }
 0x16d   : > { %1140 = vrot.lane.b32.xlu1 %v1136_v32, %s7497_s20  ;;  %v1188_v32 = vrot.slane %v5444_v57, %v5388_v25  ;;  %v5607_v57 = vpop.permute.xlu0 %1287 }
 0x16f   : > { %v1190_v37 = vmul.f32 %v5470_v11, %v1188_v32 }
 0x171   : > { %1142 = vrot.lane.b32.xlu1 %v1137_v12, %s7497_s20  ;;  %v5595_v44 = vpop.permute.xlu1 %1277  ;;  %v1191_v12 = vmul.f32 %v1188_v32, %v5570_v56  ;;  %v1353_v7 = vpop.permute.xlu0 %1352 }
 0x172   : > { %v1360_v32 = vrot.slane %v1353_v7, %v5388_v25 }
 0x174   : > { %v1362_v22 = vmul.f32 %v1360_v32, %v5470_v11 }
 0x175   : > { %1167 = vrot.lane.b32.xlu1 %v1163_v48, %s7495_s26  ;;  %v1380_v26 = vpop.permute.xlu0 %1379 }
 0x176   : > { %v1387_v7 = vrot.slane %v1380_v26, %v5388_v25 }
 0x178   : > { %v1389_v17 = vmul.f32 %v1387_v7, %v5470_v11  ;;  %v1390_v9 = vmul.f32 %v1387_v7, %v5624_v31 }
 0x179   : > { %1169 = vrot.lane.b32.xlu1 %v1164_v18, %s7495_s26  ;;  %v1407_v2 = vpop.permute.xlu0 %1406 }
 0x17a   : > { %v1414_v33 = vrot.slane %v1407_v2, %v5388_v25 }
 0x17c   : > { %v1416_v26 = vmul.f32 %v1414_v33, %v5470_v11  ;;  %v1417_v36 = vmul.f32 %v1414_v33, %v5624_v31 }
 0x17d   : > { %1194 = vrot.lane.b32.xlu1 %v1190_v37, %s7515_s28  ;;  %v1245_v37 = vmul.f32 %v5455_v41, %v5466_v28  ;;  %v1363_v41 = vmul.f32 %v1360_v32, %v5624_v31 }
 0x17f   : > { %v5599_v49 = vpop.permute.xlu1 %614 }
 0x180   : > { %7610 = vst [vmem:[#allocation15_spill] sm:$0xff] %v5599_v49 }
 0x181   : > { %1196 = vrot.lane.b32.xlu1 %v1191_v12, %s7515_s28 }
 0x183   : > { %v5603_v48 = vpop.permute.xlu1 %616 }
 0x185   : > { %1223 = vrot.lane.b32.xlu1 %v1219_v4, %s7487_s16 }
 0x187   : > { %v5610_v18 = vpop.permute.xlu1 %643 }
 0x188   : > { %7611 = vst [vmem:[#allocation16_spill] sm:$0xff] %v5610_v18 }
 0x189   : > { %1249 = vrot.lane.b32.xlu1 %v1245_v37, %s7500_s17 }
 0x18b   : > { %v5616_v12 = vpop.permute.xlu1 %645 }
 0x18d   : > { %1275 = vrot.lane.b32.xlu1 %v1271_v62, %s7513_s18 }
 0x18f   : > { %v5622_v4 = vpop.permute.xlu1 %671 }
 0x190   : > { %7612 = vst [vmem:[#allocation17_spill] sm:$0xff] %v5622_v4 }
 0x191   : > { %1366 = vrot.lane.b32.xlu1 %v1362_v22, %s7531_s19 }
 0x193   : > { %v5629_v37 = vpop.permute.xlu1 %673 }
 0x194   : > { %7613 = vst [vmem:[#allocation18_spill] sm:$0xff] %v5629_v37 }
 0x195   : > { %1368 = vrot.lane.b32.xlu1 %v1363_v41, %s7531_s19  ;;  %v1434_v41 = vpop.permute.xlu0 %1433 }
 0x196   : > { %v1441_v39 = vrot.slane %v1434_v41, %v5388_v25 }
 0x197   : > { %v5633_v62 = vpop.permute.xlu1 %699 }
 0x198   : > { %7614 = vst [vmem:[#allocation19_spill] sm:$0xff] %v5633_v62  ;;  %v1443_v2 = vmul.f32 %v1441_v39, %v5470_v11  ;;  %v1444_v5 = vmul.f32 %v1441_v39, %v5624_v31 }
 0x199   : > { %1393 = vrot.lane.b32.xlu1 %v1389_v17, %s7497_s20 }
 0x19b   : > { %v5638_v22 = vpop.permute.xlu1 %701 }
 0x19c   : > { %7615 = vst [vmem:[#allocation20_spill] sm:$0xff] %v5638_v22 }
 0x19d   : > { %1395 = vrot.lane.b32.xlu1 %v1390_v9, %s7497_s20  ;;  %v1463_v9 = vpop.permute.xlu0 %1462 }
 0x19e   : > { %v1470_v27 = vrot.slane %v1463_v9, %v5388_v25 }
 0x19f   : > { %v5642_v32 = vpop.permute.xlu1 %729 }
 0x1a0   : > { %7616 = vst [vmem:[#allocation21_spill] sm:$0xff] %v5642_v32  ;;  %v1472_v33 = vmul.f32 %v1470_v27, %v5466_v28 }
 0x1a1   : > { %1420 = vrot.lane.b32.xlu1 %v1416_v26, %s7495_s26  ;;  %v5656_v61 = vpop.xlane.xlu0 %491 }
 0x1a2   : > { %7619 = vst [vmem:[#allocation24_spill] sm:$0xff] %v5656_v61 }
 0x1a3   : > { %v5647_v17 = vpop.permute.xlu1 %756 }
 0x1a4   : > { %7617 = vst [vmem:[#allocation22_spill] sm:$0xff] %v5647_v17 }
 0x1a5   : > { %1422 = vrot.lane.b32.xlu1 %v1417_v36, %s7495_s26  ;;  %v5660_v36 = vld [vmem:[#allocation2 + $0xc] sm:$0xf]  ;;  %v1489_v38 = vpop.permute.xlu0 %1488 }
 0x1a6   : > { %v1473_v63 = vmul.f32 %v1470_v27, %v5660_v36  ;;  %v5672_v27 = vsub.s32 3, %v5198_v10 }
 0x1a7   : > { %v5651_v7 = vpop.permute.xlu1 %783 }
 0x1a8   : > { %7618 = vst [vmem:[#allocation23_spill] sm:$0xff] %v5651_v7  ;;  %v1561_v20 = vrot.slane %v5217_v15, %v5672_v27 }
 0x1a9   : > { %1447 = vrot.lane.b32.xlu1 %v1443_v2, %s7515_s28  ;;  %v1496_v2 = vrot.slane %v1489_v38, %v5388_v25  ;;  %v1515_v54 = vpop.permute.xlu0 %1514 }
 0x1aa   : > { %v1522_v3 = vrot.slane %v1515_v54, %v5388_v25 }
 0x1ab   : > { %v861_v26 = vpop.permute.xlu1 %860  ;;  %v1498_v9 = vmul.f32 %v1496_v2, %v5466_v28 }
 0x1ac   : > { %v864_v38 = vrot.slane %v861_v26, 4 }
 0x1ad   : > { %1449 = vrot.lane.b32.xlu1 %v1444_v5, %s7515_s28  ;;  %v1499_v5 = vmul.f32 %v1496_v2, %v5660_v36  ;;  %v5683_v61 = vpop.permute.xlu0 %1540 }
 0x1af   : > { %v863_v41 = vpop.permute.xlu1 %862 }
 0x1b0   : > { %v865_v34 = vrot.slane %v863_v41, 4 }
 0x1b1   : > { %1476 = vrot.lane.b32.xlu1 %v1472_v33, %s7487_s16 }
 0x1b2   : > { %v866_v2 = vsel %vm620_vm2, %v864_v38, %v865_v34 }
 0x1b3   : > { %v888_v39 = vpop.permute.xlu1 %887  ;;  %v867_v34 = vsel %vm622_vm3, %v861_v26, %v866_v2 }
 0x1b4   : > { %v891_v30 = vrot.slane %v888_v39, 4 }
 0x1b5   : > { %1478 = vrot.lane.b32.xlu1 %v1473_v63, %s7487_s16  ;;  %v1524_v63 = vmul.f32 %v1522_v3, %v5466_v28 }
 0x1b7   : > { %v890_v6 = vpop.permute.xlu1 %889 }
 0x1b8   : > { %v892_v33 = vrot.slane %v890_v6, 4 }
 0x1b9   : > { %1502 = vrot.lane.b32.xlu1 %v1498_v9, %s7500_s17  ;;  %v841_v9 = vrot.slane %v5505_v60, %v5388_v25  ;;  %v1525_v60 = vmul.f32 %v1522_v3, %v5660_v36 }
 0x1ba   : > { %v893_v16 = vsel %vm620_vm2, %v891_v30, %v892_v33  ;;  %v1606_v33 = vpop.permute.xlu0 %1605 }
 0x1bb   : > { %v915_v46 = vpop.permute.xlu1 %914  ;;  %v843_v4 = vmul.f32 %v5470_v11, %v841_v9  ;;  %v844_v2 = vmul.f32 %v841_v9, %v5518_v1 }
 0x1bc   : > { %v918_v62 = vrot.slane %v915_v46, 4 }
 0x1bd   : > { %1504 = vrot.lane.b32.xlu1 %v1499_v5, %s7500_s17  ;;  %v1557_v5 = vrot.slane %v5212_v14, %v5672_v27  ;;  %v894_v14 = vsel %vm650_vm4, %v888_v39, %v893_v16  ;;  %v870_v18 = vadd.f32 %v867_v34, %v843_v4  ;;  %v1613_v39 = vrot.slane %v1606_v33, %v5388_v25 }
 0x1bf   : > { %v917_v24 = vpop.permute.xlu1 %916  ;;  %v1564_v15 = vcombine.low %v1557_v5, %v1561_v20  ;;  %v897_v26 = vadd.f32 %v894_v14, %v870_v18  ;;  %v871_v20 = vadd.f32 %v863_v41, %v844_v2  ;;  %v1615_v18 = vmul.f32 %v1613_v39, %v5470_v11 }
 0x1c0   : > { %v919_v54 = vrot.slane %v917_v24, 4 }
 0x1c1   : > { %1528 = vrot.lane.b32.xlu1 %v1524_v63, %s7513_s18 }
 0x1c2   : > { %v920_v63 = vsel %vm620_vm2, %v918_v62, %v919_v54 }
 0x1c3   : > { %v942_v38 = vpop.permute.xlu1 %941  ;;  %v921_v30 = vsel %vm678_vm5, %v915_v46, %v920_v63  ;;  %v1633_v63 = vpop.permute.xlu0 %1632 }
 0x1c4   : > { %v945_v3 = vrot.slane %v942_v38, 4  ;;  %v924_v16 = vadd.f32 %v921_v30, %v897_v26  ;;  %v7509_v30 = vmov 49   ;;  %v1640_v33 = vrot.slane %v1633_v63, %v5388_v25 }
 0x1c5   : > { %1530 = vrot.lane.b32.xlu1 %v1525_v60, %s7513_s18  ;;  %v898_v60 = vadd.f32 %v890_v6, %v871_v20  ;;  %v1042_v6 = vrot.slane %v5435_v42, %v5388_v25 }
 0x1c7   : > { %v944_v49 = vpop.permute.xlu1 %943  ;;  %v925_v9 = vadd.f32 %v917_v24, %v898_v60  ;;  %v1045_v20 = vmul.f32 %v1042_v6, %v5416_v58 }
 0x1c8   : > { %v946_v43 = vrot.slane %v944_v49, 4 }
 0x1c9   : > { %1565 = vrot.lane.b32.xlu1 %v1564_v15, %s4990_s29  ;;  %s7491_s29 = smov 126  }
 0x1ca   : > { %v947_v62 = vsel %vm620_vm2, %v945_v3, %v946_v43 }
 0x1cb   : > { %v948_v4 = vsel %vm706_vm6, %v942_v38, %v947_v62  ;;  %v971_v54 = vpop.permute.xlu1 %970  ;;  %v952_v38 = vadd.f32 %v944_v49, %v925_v9 }
 0x1cc   : > { %v951_v5 = vadd.f32 %v948_v4, %v924_v16  ;;  %v974_v46 = vrot.slane %v971_v54, 4 }
 0x1cd   : > { %1592 = vperm.xlu1 %4733, %v5173_v0   ;;  %v5705_v0 = vld [vmem:[#allocation2 + $0x8] sm:$0xf] }
 0x1ce   : > { %v975_v1 = vsel %vm734_vm7, %v974_v46, %v971_v54  ;;  %v976_v41 = vsel %vm734_vm7, %v974_v46, %v5559_v19  ;;  %v1616_v19 = vmul.f32 %v1613_v39, %v5705_v0  ;;  %v1642_v54 = vmul.f32 %v1640_v33, %v5470_v11 }
 0x1cf   : > { %v979_v34 = vadd.f32 %v975_v1, %v951_v5  ;;  %v997_v43 = vpop.permute.xlu1 %996  ;;  %v980_v49 = vadd.f32 %v976_v41, %v952_v38  ;;  %v1044_v5 = vmul.f32 %v1042_v6, %v5466_v28 }
 0x1d0   : > { %v1000_v14 = vrot.slane %v997_v43, 4 }
 0x1d1   : > { %1619 = vrot.lane.b32.xlu1 %v1615_v18, %s7531_s19  ;;  %v1660_v18 = vpop.permute.xlu0 %1659 }
 0x1d2   : > { %v1001_v15 = vsel %vm761_vm8, %v1000_v14, %v997_v43  ;;  %v1002_v24 = vsel %vm761_vm8, %v1000_v14, %v5567_v59  ;;  %4738 = vset.pattern.permute.xlu1 %v7509_v30 }
 0x1d3   : > { %v1005_v3 = vadd.f32 %v1001_v15, %v979_v34  ;;  %v1023_v26 = vpop.permute.xlu1 %1022  ;;  %v1006_v42 = vadd.f32 %v1002_v24, %v980_v49  ;;  %v1643_v34 = vmul.f32 %v1640_v33, %v5705_v0 }
 0x1d4   : > { %v1026_v2 = vrot.slane %v1023_v26, 4 }
 0x1d5   : > { %v4488_v62 = vpop.f32.mrb[0].mxu0  ;;  %1621 = vrot.lane.b32.xlu1 %v1616_v19, %s7531_s19  ;;  %v1688_v14 = vpop.permute.xlu0 %1687 }
 0x1d6   : > { %v4489_v16 = vpop.f32.mrb[1].mxu0  ;;  %v1027_v59 = vsel %vm788_vm9, %v1026_v2, %v1023_v26  ;;  %v1028_v4 = vsel %vm788_vm9, %v1026_v2, %v5576_v55  ;;  %v1667_v55 = vrot.slane %v1660_v18, %v5388_v25  ;;  %v1695_v6 = vrot.slane %v1688_v14, %v5388_v25 }
 0x1d7   : > { %v4490_v39 = vadd.f32 %v4489_v16, %v4488_v62  ;;  %v1031_v46 = vadd.f32 %v1027_v59, %v1005_v3  ;;  %v1114_v60 = vpop.permute.xlu1 %1113  ;;  %v1032_v1 = vadd.f32 %v1028_v4, %v1006_v42  ;;  %v1094_v2 = vrot.slane %v5524_v53, %v5388_v25 }
 0x1d8   : > { %v1669_v63 = vmul.f32 %v1667_v55, %v5470_v11  ;;  %v1670_v38 = vmul.f32 %v1667_v55, %v5705_v0  ;;  %v1697_v24 = vmul.f32 %v1695_v6, %v5466_v28  ;;  %v1117_v49 = vrot.slane %v1114_v60, 4 }
 0x1d9   : > { %2962 = vst.msk [vmem:[#allocation3 + $0x4] sm:$0xf] %vm2960_vm0, %v4490_v39  ;;  %v5721_v9 = vadd.f32 %v1044_v5, %v1031_v46  ;;  %1646 = vrot.lane.b32.xlu1 %v1642_v54, %s7497_s20  ;;  %v5724_v58 = vadd.f32 %v1045_v20, %v1032_v1  ;;  %v5742_v20 = vld [vmem:[%s7429_s2] sm:$0xf]  ;;  %v1096_v5 = vmul.f32 %v5470_v11, %v1094_v2  ;;  %v7507_v18 = vmov 58  }
 0x1da   : > { %4739 = vset.pattern.permute.xlu0 %v7507_v18  ;;  %v1097_v6 = vmul.f32 %v1094_v2, %v5570_v56  ;;  %vm3032_vm0 = vcmask 719872  }
 0x1db   : > { %v1116_v43 = vpop.permute.xlu1 %1115 }
 0x1dc   : > { %v1118_v33 = vrot.slane %v1116_v43, 4 }
 0x1dd   : > { %1648 = vrot.lane.b32.xlu1 %v1643_v34, %s7497_s20 }
 0x1de   : > { %v1119_v62 = vsel %vm620_vm2, %v1117_v49, %v1118_v33  ;;  %v1124_v33 = vadd.f32 %v1116_v43, %v1097_v6 }
 0x1df   : > { %v1141_v41 = vpop.permute.xlu1 %1140  ;;  %v1120_v39 = vsel %vm622_vm3, %v1114_v60, %v1119_v62 }
 0x1e0   : > { %v1144_v42 = vrot.slane %v1141_v41, 4  ;;  %v1123_v1 = vadd.f32 %v1120_v39, %v1096_v5 }
 0x1e1   : > { %1673 = vrot.lane.b32.xlu1 %v1669_v63, %s7495_s26 }
 0x1e3   : > { %v1143_v15 = vpop.permute.xlu1 %1142 }
 0x1e4   : > { %v1145_v3 = vrot.slane %v1143_v15, 4 }
 0x1e5   : > { %1675 = vrot.lane.b32.xlu1 %v1670_v38, %s7495_s26  ;;  %s7621_s26 = smov 127  }
 0x1e6   : > { %v1146_v59 = vsel %vm620_vm2, %v1144_v42, %v1145_v3  ;;  %v1151_v42 = vadd.f32 %v1143_v15, %v1124_v33 }
 0x1e7   : > { %v1168_v19 = vpop.permute.xlu1 %1167  ;;  %v1147_v46 = vsel %vm650_vm4, %v1141_v41, %v1146_v59 }
 0x1e8   : > { %v1171_v4 = vrot.slane %v1168_v19, 4  ;;  %v1150_v38 = vadd.f32 %v1147_v46, %v1123_v1 }
 0x1e9   : > { %1699 = vrot.lane.b32.xlu1 %v1697_v24, %s7515_s28 }
 0x1eb   : > { %v1170_v26 = vpop.permute.xlu1 %1169 }
 0x1ec   : > { %v1172_v16 = vrot.slane %v1170_v26, 4  ;;  %v1178_v59 = vadd.f32 %v1170_v26, %v1151_v42 }
 0x1ed   : > { %1710 = vperm.xlu1 %4738, %v5742_v20  }
 0x1ee   : > { %v1173_v53 = vsel %vm620_vm2, %v1171_v4, %v1172_v16 }
 0x1ef   : > { %v1195_v54 = vpop.permute.xlu1 %1194  ;;  %v1174_v55 = vsel %vm678_vm5, %v1168_v19, %v1173_v53 }
 0x1f0   : > { %v1198_v63 = vrot.slane %v1195_v54, 4  ;;  %v1177_v24 = vadd.f32 %v1174_v55, %v1150_v38 }
 0x1f3   : > { %v1197_v34 = vpop.permute.xlu1 %1196 }
 0x1f4   : > { %v1199_v14 = vrot.slane %v1197_v34, 4  ;;  %v1205_v56 = vadd.f32 %v1197_v34, %v1178_v59 }
 0x1f6   : > { %v1200_v60 = vsel %vm620_vm2, %v1198_v63, %v1199_v14 }
 0x1f7   : > { %v1201_v49 = vsel %vm706_vm6, %v1195_v54, %v1200_v60  ;;  %v1224_v3 = vpop.permute.xlu1 %1223  ;;  %v1295_v54 = vrot.slane %v5607_v57, %v5388_v25 }
 0x1f8   : > { %v1204_v41 = vadd.f32 %v1201_v49, %v1177_v24  ;;  %v1227_v62 = vrot.slane %v1224_v3, 4 }
 0x1f9   : > { %v1297_v34 = vmul.f32 %v1295_v54, %v5466_v28  ;;  %v1298_v63 = vmul.f32 %v1295_v54, %v5446_v8  ;;  %v5782_v8 = vrot.slane %v5536_v52, %v5388_v25 }
 0x1fa   : > { %v1228_v16 = vsel %vm734_vm7, %v1227_v62, %v1224_v3  ;;  %v1229_v39 = vsel %vm734_vm7, %v1227_v62, %v5581_v45 }
 0x1fb   : > { %v1232_v4 = vadd.f32 %v1228_v16, %v1204_v41  ;;  %v1250_v19 = vpop.permute.xlu1 %1249  ;;  %v1233_v53 = vadd.f32 %v1229_v39, %v1205_v56  ;;  %v1349_v56 = vmul.f32 %v5782_v8, %v5470_v11 }
 0x1fc   : > { %v1253_v5 = vrot.slane %v1250_v19, 4 }
 0x1fe   : > { %v1254_v2 = vsel %vm761_vm8, %v1253_v5, %v1250_v19  ;;  %v1255_v43 = vsel %vm761_vm8, %v1253_v5, %v5588_v47 }
 0x1ff   : > { %v1258_v15 = vadd.f32 %v1254_v2, %v1232_v4  ;;  %v1276_v46 = vpop.permute.xlu1 %1275  ;;  %v1259_v26 = vadd.f32 %v1255_v43, %v1233_v53 }
 0x200   : > { %v1279_v1 = vrot.slane %v1276_v46, 4 }
 0x202   : > { %v1280_v55 = vsel %vm788_vm9, %v1279_v1, %v1276_v46  ;;  %v1281_v45 = vsel %vm788_vm9, %v1279_v1, %v5595_v44 }
 0x203   : > { %v1284_v14 = vadd.f32 %v1280_v55, %v1258_v15  ;;  %v1367_v38 = vpop.permute.xlu1 %1366  ;;  %v1285_v47 = vadd.f32 %v1281_v45, %v1259_v26 }
 0x204   : > { %v1370_v44 = vrot.slane %v1367_v38, 4 }
 0x205   : > { %v5768_v6 = vadd.f32 %v1297_v34, %v1284_v14  ;;  %v5770_v57 = vadd.f32 %v1298_v63, %v1285_v47 }
 0x207   : > { %v5772_v60 = vpop.permute.xlu1 %1368 }
 0x208   : > { %v1371_v3 = vrot.slane %v5772_v60, 4 }
 0x20a   : > { %v1372_v42 = vsel %vm620_vm2, %v1370_v44, %v1371_v3 }
 0x20b   : > { %v1394_v24 = vpop.permute.xlu1 %1393  ;;  %v1373_v39 = vsel %vm622_vm3, %v1367_v38, %v1372_v42 }
 0x20c   : > { %v1397_v16 = vrot.slane %v1394_v24, 4  ;;  %v1376_v52 = vadd.f32 %v1373_v39, %v1349_v56 }
 0x20f   : > { %v5774_v33 = vpop.permute.xlu1 %1395 }
 0x210   : > { %v1398_v41 = vrot.slane %v5774_v33, 4 }
 0x212   : > { %v1399_v4 = vsel %vm620_vm2, %v1397_v16, %v1398_v41  ;;  %v5802_v16 = vrot.slane %v5683_v61, %v5388_v25 }
 0x213   : > { %v1421_v49 = vpop.permute.xlu1 %1420  ;;  %v1400_v43 = vsel %vm650_vm4, %v1394_v24, %v1399_v4 }
 0x214   : > { %v1424_v19 = vrot.slane %v1421_v49, 4  ;;  %v1403_v1 = vadd.f32 %v1400_v43, %v1376_v52  ;;  %v1550_v39 = vmul.f32 %v5802_v16, %v5466_v28 }
 0x217   : > { %v5778_v62 = vpop.permute.xlu1 %1422 }
 0x218   : > { %v1425_v59 = vrot.slane %v5778_v62, 4 }
 0x21a   : > { %v1426_v2 = vsel %vm620_vm2, %v1424_v19, %v1425_v59 }
 0x21b   : > { %v1448_v5 = vpop.permute.xlu1 %1447  ;;  %v1427_v53 = vsel %vm678_vm5, %v1421_v49, %v1426_v2 }
 0x21c   : > { %v1451_v15 = vrot.slane %v1448_v5, 4  ;;  %v1430_v55 = vadd.f32 %v1427_v53, %v1403_v1 }
 0x21f   : > { %v5792_v54 = vpop.permute.xlu1 %1449 }
 0x220   : > { %v1452_v46 = vrot.slane %v5792_v54, 4 }
 0x222   : > { %v1453_v26 = vsel %vm620_vm2, %v1451_v15, %v1452_v46 }
 0x223   : > { %v1454_v45 = vsel %vm706_vm6, %v1448_v5, %v1453_v26  ;;  %v1477_v34 = vpop.permute.xlu1 %1476 }
 0x224   : > { %v1457_v63 = vadd.f32 %v1454_v45, %v1430_v55  ;;  %v1480_v14 = vrot.slane %v1477_v34, 4 }
 0x226   : > { %v1481_v38 = vsel %vm734_vm7, %v1480_v14, %v1477_v34 }
 0x227   : > { %v1485_v47 = vadd.f32 %v1481_v38, %v1457_v63  ;;  %v1479_v24 = vpop.permute.xlu1 %1478  ;;  %v5825_v38 = vld [vmem:[#allocation2 + $0xc] sm:$0xf] }
 0x22b   : > { %v1503_v3 = vpop.permute.xlu1 %1502 }
 0x22c   : > { %v1506_v44 = vrot.slane %v1503_v3, 4 }
 0x22e   : > { %v1507_v49 = vsel %vm761_vm8, %v1506_v44, %v1503_v3 }
 0x22f   : > { %v1511_v41 = vadd.f32 %v1507_v49, %v1485_v47  ;;  %v1505_v42 = vpop.permute.xlu1 %1504 }
 0x233   : > { %v1529_v59 = vpop.permute.xlu1 %1528 }
 0x234   : > { %v1532_v4 = vrot.slane %v1529_v59, 4 }
 0x236   : > { %v1533_v19 = vsel %vm788_vm9, %v1532_v4, %v1529_v59  ;;  %v7506_v59 = vmov 67  }
 0x237   : > { %v1537_v5 = vadd.f32 %v1533_v19, %v1511_v41  ;;  %v1531_v56 = vpop.permute.xlu1 %1530  ;;  %v7505_v19 = vmov 76  }
 0x239   : > { %v1552_v2 = vadd.f32 %v1550_v39, %v1537_v5  ;;  %v4995_v39 = vmov 14   ;;  %v1350_v5 = vmul.f32 %v5782_v8, %v5624_v31 }
 0x23b   : > { %v1566_v43 = vpop.permute.xlu1 %1565 }
 0x23c   : > { %v1567_v52 = vrot.slane %v1566_v43, 4 }
 0x23e   : > { %v1569_v53 = vsel %vm1568_vm10, %v1567_v52, %v1566_v43  ;;  %v1377_v43 = vadd.f32 %v5772_v60, %v1350_v5  ;;  %v1508_v60 = vsel %vm761_vm8, %v1506_v44, %v1505_v42  ;;  %v1534_v5 = vsel %vm788_vm9, %v1532_v4, %v1531_v56 }
 0x23f   : > { %v5807_v15 = vmul.f32 %v1569_v53, %v1552_v2  ;;  %v4996_v2 = vmov 23   ;;  %vm3196_vm10 = vcmask 760832  }
 0x240   : > { %v1404_v53 = vadd.f32 %v5774_v33, %v1377_v43  ;;  %v7508_v33 = vmov 41   ;;  %v1061_v43 = vrot.slane %v5515_v21, 4 }
 0x24c   : > { %v5809_v46 = vpop.permute.xlu1 %1592 }
 0x250   : > { %v5811_v61 = vpop.permute.xlu1 %1619 }
 0x254   : > { %v5813_v1 = vpop.permute.xlu1 %1621 }
 0x258   : > { %v5815_v26 = vpop.permute.xlu1 %1646 }
 0x25c   : > { %v5817_v55 = vpop.permute.xlu1 %1648 }
 0x260   : > { %v5819_v45 = vpop.permute.xlu1 %1673 }
 0x264   : > { %v5821_v34 = vpop.permute.xlu1 %1675 }
 0x268   : > { %v5823_v63 = vpop.permute.xlu1 %1699 }
 0x26c   : > { %v1711_v47 = vpop.permute.xlu1 %1710 }
 0x26d   : > { %v1718_v3 = vrot.slane %v1711_v47, %v5388_v25  ;;  %v7503_v47 = vmov 5  }
 0x26e   : > { %4742 = vset.pattern.permute.xlu1 %v7503_v47 }
 0x26f   : > { %v1720_v49 = vmul.f32 %v1718_v3, %v5466_v28  ;;  %v1721_v41 = vmul.f32 %v1718_v3, %v5825_v38  ;;  %v1431_v3 = vadd.f32 %v5778_v62, %v1404_v53 }
 0x271   : > { %1726 = vrot.lane.b32.xlu1 %v1721_v41, %s7487_s16  ;;  %1724 = vrot.lane.b32.xlu0 %v1720_v49, %s7487_s16  ;;  %v7511_v49 = vmov 32   ;;  %v1482_v41 = vsel %vm734_vm7, %v1480_v14, %v1479_v24  ;;  %v1458_v31 = vadd.f32 %v5792_v54, %v1431_v3  ;;  %v1067_v14 = vmul.f32 %v1061_v43, %v5724_v58  ;;  %s7489_s16 = smov 125  }
 0x272   : > { %v1314_v54 = vrot.slane %v5529_v51, 4  ;;  %v1551_v24 = vmul.f32 %v5802_v16, %v5660_v36 }
 0x273   : > { %v1486_v8 = vadd.f32 %v1482_v41, %v1458_v31 }
 0x274   : > { %v1320_v42 = vmul.f32 %v1314_v54, %v5770_v57 }
 0x275   : > { %1736 = vperm.xlu0 %4739, %v5742_v20   ;;  %v1512_v62 = vadd.f32 %v1508_v60, %v1486_v8  ;;  %v5884_v60 = vld [vmem:[%s7430_s3] sm:$0xff] }
 0x277   : > { %v1538_v53 = vadd.f32 %v1534_v5, %v1512_v62  ;;  %v5891_v5 = vld [vmem:[%s7430_s3 + $0x8] sm:$0xff] }
 0x279   : > { %4740 = vset.pattern.permute.xlu0 %v7506_v59  ;;  %v1553_v44 = vadd.f32 %v1551_v24, %v1538_v53 }
 0x27a   : > { %1762 = vperm.xlu0 %4740, %v5742_v20  }
 0x27b   : > { %v1573_v4 = vmul.f32 %v1567_v52, %v1553_v44  ;;  %v5877_v52 = vsub.s32 4, %v5198_v10 }
 0x27d   : > { %v1805_v8 = vrot.slane %v5884_v60, %v5877_v52  ;;  %v1809_v62 = vrot.slane %v5891_v5, %v5877_v52 }
 0x27e   : > { %4741 = vset.pattern.permute.xlu0 %v7505_v19 }
 0x27f   : > { %1788 = vperm.xlu0 %4741, %v5742_v20   ;;  %v1812_v24 = vcombine.low %v1805_v8, %v1809_v62 }
 0x283   : > { %4743 = vset.pattern.permute.xlu0 %v4995_v39 }
 0x284   : > { %1852 = vperm.xlu0 %4743, %v5742_v20  }
 0x288   : > { %4744 = vset.pattern.permute.xlu0 %v4996_v2 }
 0x289   : > { %1879 = vperm.xlu0 %4744, %v5742_v20  }
 0x28d   : > { %4745 = vset.pattern.permute.xlu0 %v7511_v49 }
 0x28e   : > { %1906 = vperm.xlu0 %4745, %v5742_v20  }
 0x292   : > { %4746 = vset.pattern.permute.xlu0 %v7508_v33 }
 0x293   : > { %1935 = vperm.xlu0 %4746, %v5742_v20  }
 0x297   : > { %1072 = vrot.lane.b32.xlu0 %v1067_v14, %s7493_s15  ;;  %s7622_s15 = smov 126  }
 0x29b   : > { %1325 = vrot.lane.b32.xlu0 %v1320_v42, %s7491_s29  ;;  %s7623_s29 = smov 125  }
 0x29f   : > { %1578 = vrot.lane.b32.xlu0 %v1573_v4, %s7489_s16  ;;  %s7620_s16 = smov 80  }
 0x2e3   : > { %v5868_v58 = vpop.permute.xlu0 %1724 }
 0x2f4   : > { %v1737_v56 = vpop.permute.xlu0 %1736 }
 0x2f5   : > { %v1744_v36 = vrot.slane %v1737_v56, %v5388_v25 }
 0x2f7   : > { %v1746_v16 = vmul.f32 %v1744_v36, %v5466_v28  ;;  %v1747_v41 = vmul.f32 %v1744_v36, %v5825_v38  ;;  %v5905_v36 = vld [vmem:[#allocation2 + $0x8] sm:$0xf] }
 0x2f9   : > { %1750 = vrot.lane.b32.xlu1 %v1746_v16, %s7500_s17  ;;  %v1763_v3 = vpop.permute.xlu0 %1762 }
 0x2fa   : > { %v1770_v57 = vrot.slane %v1763_v3, %v5388_v25 }
 0x2fc   : > { %v1772_v31 = vmul.f32 %v1770_v57, %v5466_v28  ;;  %v5003_v28 = vmov 50   ;;  %v1773_v14 = vmul.f32 %v1770_v57, %v5825_v38 }
 0x2fd   : > { %1752 = vrot.lane.b32.xlu1 %v1747_v41, %s7500_s17  ;;  %4747 = vset.pattern.permute.xlu0 %v5003_v28 }
 0x2fe   : > { %v5895_v53 = vpop.permute.xlu0 %1788 }
 0x301   : > { %1776 = vrot.lane.b32.xlu1 %v1772_v31, %s7513_s18 }
 0x303   : > { %v1853_v44 = vpop.permute.xlu0 %1852 }
 0x304   : > { %v1860_v42 = vrot.slane %v1853_v44, %v5388_v25 }
 0x305   : > { %1778 = vrot.lane.b32.xlu1 %v1773_v14, %s7513_s18 }
 0x306   : > { %v1862_v4 = vmul.f32 %v1860_v42, %v5470_v11  ;;  %v1863_v16 = vmul.f32 %v1860_v42, %v5905_v36  ;;  %v5922_v42 = vld [vmem:[#allocation2 + $0x4] sm:$0xff] }
 0x308   : > { %v1880_v56 = vpop.permute.xlu0 %1879 }
 0x309   : > { %1813 = vrot.lane.b32.xlu1 %v1812_v24, %s7515_s28  ;;  %v1887_v3 = vrot.slane %v1880_v56, %v5388_v25 }
 0x30b   : > { %v1889_v41 = vmul.f32 %v1887_v3, %v5470_v11  ;;  %v1890_v31 = vmul.f32 %v1887_v3, %v5905_v36 }
 0x30d   : > { %1839 = vperm.xlu1 %4742, %v5742_v20   ;;  %v1907_v57 = vpop.permute.xlu0 %1906 }
 0x30e   : > { %v1914_v8 = vrot.slane %v1907_v57, %v5388_v25 }
 0x310   : > { %v1916_v62 = vmul.f32 %v1914_v8, %v5470_v11  ;;  %v1917_v24 = vmul.f32 %v1914_v8, %v5905_v36  ;;  %v1063_v11 = vsel %vm1062_vm11, %v1061_v43, %v5515_v21  ;;  %v1623_v21 = vrot.slane %v5811_v61, 4 }
 0x311   : > { %1866 = vrot.lane.b32.xlu1 %v1862_v4, %s7531_s19  ;;  %v1066_v56 = vmul.f32 %v1063_v11, %v5721_v9  ;;  %v1651_v43 = vrot.slane %v5817_v55, 4  ;;  %v1600_v9 = vrot.slane %v5809_v46, %v5388_v25  ;;  %vm3440_vm11 = vcmask 777216  }
 0x312   : > { %v1936_v14 = vpop.permute.xlu0 %1935 }
 0x313   : > { %v5919_v44 = vrot.slane %v1936_v14, %v5388_v25 }
 0x315   : > { %1868 = vrot.lane.b32.xlu1 %v1863_v16, %s7531_s19  ;;  %v1945_v4 = vmul.f32 %v5919_v44, %v5922_v42  ;;  %v1316_v16 = vsel %vm1315_vm12, %v1314_v54, %v5529_v51  ;;  %v1650_v51 = vrot.slane %v5815_v26, 4  ;;  %vm3318_vm12 = vcmask 769024  }
 0x316   : > { %v1319_v3 = vmul.f32 %v1316_v16, %v5768_v6  ;;  %v1678_v6 = vrot.slane %v5821_v34, 4 }
 0x317   : > { %v1652_v54 = vsel %vm620_vm2, %v1650_v51, %v1651_v43 }
 0x319   : > { %1893 = vrot.lane.b32.xlu1 %v1889_v41, %s7497_s20  ;;  %v1624_v41 = vrot.slane %v5813_v1, 4 }
 0x31b   : > { %v1625_v57 = vsel %vm620_vm2, %v1623_v21, %v1624_v41  ;;  %v1728_v21 = vrot.slane %v5868_v58, 4 }
 0x31c   : > { %v1626_v8 = vsel %vm622_vm3, %v5811_v61, %v1625_v57 }
 0x31d   : > { %1895 = vrot.lane.b32.xlu1 %v1890_v31, %s7497_s20  ;;  %v1677_v31 = vrot.slane %v5819_v45, 4  ;;  %s7499_s20 = smov 124  }
 0x31f   : > { %v1679_v46 = vsel %vm620_vm2, %v1677_v31, %v1678_v6 }
 0x320   : > { %v1680_v16 = vsel %vm678_vm5, %v5819_v45, %v1679_v46  ;;  %v1729_v45 = vsel %vm734_vm7, %v1728_v21, %v5868_v58 }
 0x321   : > { %1920 = vrot.lane.b32.xlu1 %v1916_v62, %s7620_s16  ;;  %v5951_v62 = vld [vmem:[#allocation2] sm:$0xff] }
 0x322   : > { %v1602_v14 = vmul.f32 %v5951_v62, %v1600_v9 }
 0x324   : > { %v1629_v11 = vadd.f32 %v1626_v8, %v1602_v14 }
 0x325   : > { %1922 = vrot.lane.b32.xlu1 %v1917_v24, %s7620_s16  ;;  %v1653_v24 = vsel %vm650_vm4, %v5815_v26, %v1652_v54 }
 0x326   : > { %v1656_v41 = vadd.f32 %v1653_v24, %v1629_v11 }
 0x328   : > { %v1683_v57 = vadd.f32 %v1680_v16, %v1656_v41 }
 0x329   : > { %1949 = vrot.lane.b32.xlu1 %v1945_v4, %s7515_s28  ;;  %v1603_v4 = vmul.f32 %v1600_v9, %v5705_v0 }
 0x32b   : > { %v1630_v61 = vadd.f32 %v5813_v1, %v1603_v4 }
 0x32d   : > { %1070 = vrot.lane.b32.xlu1 %v1066_v56, %s7621_s26  ;;  %v1657_v43 = vadd.f32 %v5817_v55, %v1630_v61 }
 0x32f   : > { %v1684_v9 = vadd.f32 %v5821_v34, %v1657_v43 }
 0x331   : > { %1323 = vrot.lane.b32.xlu1 %v1319_v3, %s7622_s15  ;;  %v1701_v3 = vrot.slane %v5823_v63, 4 }
 0x333   : > { %v1702_v26 = vsel %vm706_vm6, %v1701_v3, %v5823_v63  ;;  %v1706_v1 = vadd.f32 %v1701_v3, %v1684_v9  ;;  %v1796_v63 = vrot.slane %v5895_v53, %v5388_v25 }
 0x334   : > { %v1705_v54 = vadd.f32 %v1702_v26, %v1683_v57  ;;  %v5977_v26 = vld [vmem:[#allocation2 + $0xc] sm:$0xf] }
 0x335   : > { %1576 = vrot.lane.b32.xlu1 %v5807_v15, %s7623_s29  ;;  %v1727_v15 = vpop.permute.xlu1 %1726  ;;  %v1799_v4 = vmul.f32 %v1796_v63, %v5825_v38  ;;  %v1946_v38 = vmul.f32 %v5919_v44, %v5977_v26  ;;  %v7624_v44 = vmov 10  }
 0x336   : > { %v1730_v6 = vsel %vm734_vm7, %v1728_v21, %v1727_v15  ;;  %v1733_v46 = vadd.f32 %v1729_v45, %v1705_v54  ;;  %v7512_v45 = vmov 59   ;;  %v7510_v54 = vmov 77  }
 0x337   : > { %v1734_v24 = vadd.f32 %v1730_v6, %v1706_v1  ;;  %v7504_v6 = vmov 68   ;;  %v5993_v1 = vpop.permute.xlu0 %1072 }
 0x338   : > { %7625 = vst [vmem:[#allocation25_spill] sm:$0xff] %v5993_v1 }
 0x36b   : > { %v1751_v56 = vpop.permute.xlu1 %1750 }
 0x36c   : > { %v1754_v0 = vrot.slane %v1751_v56, 4 }
 0x36e   : > { %v1755_v8 = vsel %vm761_vm8, %v1754_v0, %v1751_v56  ;;  %v4865_v56 = vld [vmem:[#allocation2 + $0x4] sm:$0xff] }
 0x36f   : > { %v1753_v51 = vpop.permute.xlu1 %1752  ;;  %v1759_v58 = vadd.f32 %v1755_v8, %v1733_v46  ;;  %v1798_v41 = vmul.f32 %v4865_v56, %v1796_v63 }
 0x370   : > { %v1756_v55 = vsel %vm761_vm8, %v1754_v0, %v1753_v51 }
 0x371   : > { %v1760_v11 = vadd.f32 %v1756_v55, %v1734_v24 }
 0x373   : > { %v1777_v31 = vpop.permute.xlu1 %1776 }
 0x374   : > { %v1780_v14 = vrot.slane %v1777_v31, 4 }
 0x376   : > { %v1781_v34 = vsel %vm788_vm9, %v1780_v14, %v1777_v31  ;;  %v5995_v31 = vpop.permute.xlu0 %1325 }
 0x377   : > { %v1779_v15 = vpop.permute.xlu1 %1778  ;;  %v1785_v3 = vadd.f32 %v1781_v34, %v1759_v58  ;;  %7626 = vst [vmem:[#allocation26_spill] sm:$0xff] %v5995_v31 }
 0x378   : > { %v1782_v16 = vsel %vm788_vm9, %v1780_v14, %v1779_v15 }
 0x379   : > { %v1786_v61 = vadd.f32 %v1782_v16, %v1760_v11  ;;  %v1800_v51 = vadd.f32 %v1798_v41, %v1785_v3  ;;  %v6013_v3 = vsub.s32 5, %v5198_v10 }
 0x37a   : > { %v5997_v8 = vpop.permute.xlu0 %1578 }
 0x37b   : > { %v1801_v21 = vadd.f32 %v1799_v4, %v1786_v61  ;;  %v1814_v43 = vpop.permute.xlu1 %1813  ;;  %7627 = vst [vmem:[#allocation27_spill] sm:$0xff] %v5997_v8  ;;  %v2056_v56 = vrot.slane %v5884_v60, %v6013_v3  ;;  %v2060_v41 = vrot.slane %v5891_v5, %v6013_v3 }
 0x37c   : > { %v1815_v57 = vrot.slane %v1814_v43, 4 }
 0x37e   : > { %v1816_v53 = vsel %vm706_vm6, %v1815_v57, %v1814_v43  ;;  %v1820_v0 = vmul.f32 %v1815_v57, %v1801_v21  ;;  %v7502_v21 = vmov 6   ;;  %v2063_v57 = vcombine.low %v2056_v56, %v2060_v41 }
 0x37f   : > { %v1819_v9 = vmul.f32 %v1816_v53, %v1800_v51  ;;  %4751 = vset.pattern.permute.xlu1 %v7502_v21 }
 0x380   : > { %1825 = vrot.lane.b32.xlu0 %v1820_v0, %s7499_s20 }
 0x381   : > { %1823 = vrot.lane.b32.xlu1 %v1819_v9, %s7499_s20  ;;  %s7629_s20 = smov 48  }
 0x384   : > { %1961 = vperm.xlu0 %4747, %v5742_v20  }
 0x385   : > { %1951 = vrot.lane.b32.xlu1 %v1946_v38, %s7515_s28  ;;  %s7679_s28 = smov 96  }
 0x388   : > { %4748 = vset.pattern.permute.xlu0 %v7512_v45 }
 0x389   : > { %1987 = vperm.xlu0 %4748, %v5742_v20  }
 0x38c   : > { %v1840_v51 = vpop.permute.xlu1 %1839 }
 0x38d   : > { %4749 = vset.pattern.permute.xlu0 %v7504_v6 }
 0x38e   : > { %2013 = vperm.xlu0 %4749, %v5742_v20  }
 0x390   : > { %v1867_v53 = vpop.permute.xlu1 %1866 }
 0x392   : > { %4750 = vset.pattern.permute.xlu0 %v7510_v54 }
 0x393   : > { %2039 = vperm.xlu0 %4750, %v5742_v20  }
 0x394   : > { %v1869_v0 = vpop.permute.xlu1 %1868 }
 0x397   : > { %4752 = vset.pattern.permute.xlu0 %v7624_v44 }
 0x398   : > { %v1894_v9 = vpop.permute.xlu1 %1893 }
 0x399   : > { %v1897_v56 = vrot.slane %v1894_v9, 4 }
 0x39c   : > { %v1896_v38 = vpop.permute.xlu1 %1895 }
 0x3a0   : > { %v1921_v44 = vpop.permute.xlu1 %1920 }
 0x3a4   : > { %v1923_v60 = vpop.permute.xlu1 %1922 }
 0x3a5   : > { %v1925_v41 = vrot.slane %v1923_v60, 4 }
 0x3f2   : > { %v5999_v55 = vpop.permute.xlu0 %1825 }
 0x3f3   : > { %7628 = vst [vmem:[#allocation28_spill] sm:$0xff] %v5999_v55 }
 0x403   : > { %v1962_v14 = vpop.permute.xlu0 %1961 }
 0x404   : > { %v1969_v46 = vrot.slane %v1962_v14, %v5388_v25  ;;  %v1950_v14 = vpop.permute.xlu1 %1949 }
 0x406   : > { %v1971_v63 = vmul.f32 %v1969_v46, %v5922_v42  ;;  %v1972_v34 = vmul.f32 %v1969_v46, %v5977_v26 }
 0x408   : > { %1975 = vrot.lane.b32.xlu1 %v1971_v63, %s7629_s20  ;;  %v1988_v24 = vpop.permute.xlu0 %1987  ;;  %v6024_v46 = vpop.permute.xlu1 %1070 }
 0x409   : > { %v1995_v4 = vrot.slane %v1988_v24, %v5388_v25  ;;  %7630 = vst [vmem:[#allocation29_spill] sm:$0xff] %v6024_v46 }
 0x40b   : > { %v1997_v58 = vmul.f32 %v1995_v4, %v5922_v42  ;;  %v1998_v15 = vmul.f32 %v1995_v4, %v5977_v26  ;;  %v1871_v4 = vrot.slane %v1869_v0, 4 }
 0x40c   : > { %1977 = vrot.lane.b32.xlu1 %v1972_v34, %s7629_s20  ;;  %v6026_v5 = vpop.permute.xlu1 %1323 }
 0x40d   : > { %v2014_v11 = vpop.permute.xlu0 %2013  ;;  %7631 = vst [vmem:[#allocation30_spill] sm:$0xff] %v6026_v5 }
 0x40e   : > { %v2021_v16 = vrot.slane %v2014_v11, %v5388_v25  ;;  %v1898_v11 = vrot.slane %v1896_v38, 4 }
 0x410   : > { %2001 = vrot.lane.b32.xlu1 %v1997_v58, %s7500_s17  ;;  %v2023_v61 = vmul.f32 %v2021_v16, %v5922_v42  ;;  %v2024_v43 = vmul.f32 %v2021_v16, %v5977_v26  ;;  %v6028_v63 = vpop.permute.xlu1 %1576  ;;  %v1870_v58 = vrot.slane %v1867_v53, 4  ;;  %v1847_v16 = vrot.slane %v1840_v51, %v5388_v25 }
 0x411   : > { %7632 = vst [vmem:[#allocation31_spill] sm:$0xff] %v6028_v63 }
 0x412   : > { %v1849_v6 = vmul.f32 %v5951_v62, %v1847_v16  ;;  %v1850_v18 = vmul.f32 %v1847_v16, %v5905_v36 }
 0x414   : > { %2003 = vrot.lane.b32.xlu1 %v1998_v15, %s7500_s17  ;;  %s5009_s17 = smov 65   ;;  %v6030_v24 = vpop.permute.xlu1 %1823  ;;  %v1877_v30 = vadd.f32 %v1869_v0, %v1850_v18 }
 0x415   : > { %7633 = vst [vmem:[#allocation32_spill] sm:$0xff] %v6030_v24 }
 0x418   : > { %2027 = vrot.lane.b32.xlu1 %v2023_v61, %s7513_s18  ;;  %v1952_v34 = vpop.permute.xlu1 %1951  ;;  %v1872_v61 = vsel %vm620_vm2, %v1870_v58, %v1871_v4  ;;  %v1953_v58 = vrot.slane %v1950_v14, 4 }
 0x419   : > { %v1873_v47 = vsel %vm622_vm3, %v1867_v53, %v1872_v61 }
 0x41a   : > { %v1876_v33 = vadd.f32 %v1873_v47, %v1849_v6  ;;  %v1954_v53 = vsel %vm706_vm6, %v1953_v58, %v1950_v14  ;;  %v1955_v62 = vsel %vm706_vm6, %v1953_v58, %v1952_v34 }
 0x41c   : > { %2029 = vrot.lane.b32.xlu1 %v2024_v43, %s7513_s18  ;;  %v1899_v43 = vsel %vm620_vm2, %v1897_v56, %v1898_v11  ;;  %v1904_v56 = vadd.f32 %v1896_v38, %v1877_v30  ;;  %s7550_s18 = smov 120  }
 0x41d   : > { %v1900_v59 = vsel %vm650_vm4, %v1894_v9, %v1899_v43  ;;  %v2040_v9 = vpop.permute.xlu0 %2039 }
 0x41e   : > { %v1903_v54 = vadd.f32 %v1900_v59, %v1876_v33  ;;  %v2047_v33 = vrot.slane %v2040_v9, %v5388_v25  ;;  %v7641_v9 = vmov 30  }
 0x420   : > { %2064 = vrot.lane.b32.xlu1 %v2063_v57, %s5009_s17  ;;  %v1924_v57 = vrot.slane %v1921_v44, 4  ;;  %v2049_v43 = vmul.f32 %v2047_v33, %v5922_v42  ;;  %s7527_s17 = smov 123   ;;  %v7635_v42 = vmov 28  }
 0x422   : > { %v1926_v19 = vsel %vm620_vm2, %v1924_v57, %v1925_v41  ;;  %v1931_v41 = vadd.f32 %v1923_v60, %v1904_v56  ;;  %v2050_v60 = vmul.f32 %v2047_v33, %v5977_v26  ;;  %v6057_v26 = vld [vmem:[%s7634_s4] sm:$0xf]  ;;  %v7650_v33 = vmov 38   ;;  %s7693_s4 = smov 88  }
 0x423   : > { %v1927_v4 = vsel %vm678_vm5, %v1921_v44, %v1926_v19 }
 0x424   : > { %v1930_v49 = vadd.f32 %v1927_v4, %v1903_v54  ;;  %v1959_v19 = vadd.f32 %v1955_v62, %v1931_v41  ;;  %v7637_v62 = vmov 37   ;;  %v7639_v41 = vmov 13  }
 0x426   : > { %v1958_v6 = vadd.f32 %v1954_v53, %v1930_v49  ;;  %v7636_v53 = vmov 19  }
 0x47a   : > { %v1976_v15 = vpop.permute.xlu1 %1975 }
 0x47b   : > { %v1979_v11 = vrot.slane %v1976_v15, 4 }
 0x47d   : > { %v1980_v36 = vsel %vm734_vm7, %v1979_v11, %v1976_v15 }
 0x47e   : > { %v1978_v21 = vpop.permute.xlu1 %1977  ;;  %v1984_v54 = vadd.f32 %v1980_v36, %v1958_v6  ;;  %v7642_v36 = vmov 12   ;;  %v7644_v6 = vmov 29  }
 0x47f   : > { %v1981_v47 = vsel %vm734_vm7, %v1979_v11, %v1978_v21 }
 0x480   : > { %v1985_v0 = vadd.f32 %v1981_v47, %v1959_v19  ;;  %v7643_v47 = vmov 55   ;;  %v7645_v19 = vmov 31  }
 0x482   : > { %v2002_v51 = vpop.permute.xlu1 %2001 }
 0x483   : > { %v2005_v61 = vrot.slane %v2002_v51, 4 }
 0x485   : > { %v2006_v18 = vsel %vm761_vm8, %v2005_v61, %v2002_v51 }
 0x486   : > { %v2004_v45 = vpop.permute.xlu1 %2003  ;;  %v2010_v14 = vadd.f32 %v2006_v18, %v1984_v54  ;;  %v7647_v18 = vmov 64   ;;  %v7549_v54 = vmov 16  }
 0x487   : > { %v2007_v30 = vsel %vm761_vm8, %v2005_v61, %v2004_v45  ;;  %v7638_v61 = vmov 11  }
 0x488   : > { %v2011_v34 = vadd.f32 %v2007_v30, %v1985_v0  ;;  %v7648_v30 = vmov 46   ;;  %v7651_v0 = vmov 22  }
 0x48a   : > { %v2028_v44 = vpop.permute.xlu1 %2027 }
 0x48b   : > { %v2031_v59 = vrot.slane %v2028_v44, 4 }
 0x48d   : > { %v2032_v38 = vsel %vm788_vm9, %v2031_v59, %v2028_v44  ;;  %v7646_v44 = vmov 21  }
 0x48e   : > { %v2030_v15 = vpop.permute.xlu1 %2029  ;;  %v2036_v21 = vadd.f32 %v2032_v38, %v2010_v14  ;;  %v7652_v38 = vmov 57   ;;  %v7653_v14 = vmov 47  }
 0x48f   : > { %v2033_v49 = vsel %vm788_vm9, %v2031_v59, %v2030_v15  ;;  %v7649_v59 = vmov 40   ;;  %v7655_v15 = vmov 39  }
 0x490   : > { %v2037_v16 = vadd.f32 %v2033_v49, %v2011_v34  ;;  %v2051_v4 = vadd.f32 %v2049_v43, %v2036_v21  ;;  %v7654_v34 = vmov 74   ;;  %v7552_v49 = vmov 15  }
 0x491   : > { %v7656_v21 = vmov 59   ;;  %v7523_v43 = vmov 60  }
 0x492   : > { %v2052_v57 = vadd.f32 %v2050_v60, %v2037_v16  ;;  %v2065_v45 = vpop.permute.xlu1 %2064  ;;  %v7546_v60 = vmov 33   ;;  %v7658_v16 = vmov 48  }
 0x493   : > { %v2066_v51 = vrot.slane %v2065_v45, 4 }
 0x495   : > { %v2068_v58 = vsel %vm2067_vm13, %v2066_v51, %v2065_v45  ;;  %v2072_v11 = vmul.f32 %v2066_v51, %v2052_v57  ;;  %v7659_v57 = vmov 32   ;;  %v7660_v45 = vmov 77  }
 0x496   : > { %v2071_v56 = vmul.f32 %v2068_v58, %v2051_v4  ;;  %v5017_v51 = vmov 24   ;;  %v7519_v4 = vmov 53   ;;  %v7661_v58 = vmov 73  }
 0x497   : > { %2077 = vrot.lane.b32.xlu0 %v2072_v11, %s7527_s17  ;;  %v7522_v11 = vmov 62   ;;  %vm3683_vm13 = vcmask 793600  }
 0x498   : > { %2075 = vrot.lane.b32.xlu1 %v2071_v56, %s7527_s17  ;;  %v7662_v56 = vmov 65   ;;  %s7536_s17 = smov 72  }
 0x49b   : > { %3092 = vperm.xlu0 %4752, %v6057_v26  }
 0x49c   : > { %2091 = vperm.xlu1 %4751, %v5742_v20   ;;  %v7640_v20 = vmov 20  }
 0x49f   : > { %4755 = vset.pattern.permute.xlu0 %v7635_v42  ;;  %v7517_v42 = vmov 80  }
 0x4a0   : > { %3116 = vperm.xlu0 %4755, %v6057_v26   ;;  %4753 = vset.pattern.permute.xlu1 %v7636_v53  ;;  %v7663_v53 = vmov 49  }
 0x4a1   : > { %3104 = vperm.xlu1 %4753, %v6057_v26  }
 0x4a4   : > { %4758 = vset.pattern.permute.xlu0 %v7637_v62  ;;  %v7664_v62 = vmov 18  }
 0x4a5   : > { %3128 = vperm.xlu0 %4758, %v6057_v26   ;;  %4754 = vset.pattern.permute.xlu1 %v7638_v61  ;;  %v7665_v61 = vmov 41  }
 0x4a6   : > { %3214 = vperm.xlu1 %4754, %v6057_v26  }
 0x4a9   : > { %4761 = vset.pattern.permute.xlu0 %v7639_v41  ;;  %v7666_v41 = vmov 3  }
 0x4aa   : > { %3458 = vperm.xlu0 %4761, %v6057_v26   ;;  %4756 = vset.pattern.permute.xlu1 %v7640_v20  ;;  %v7544_v20 = vmov 25  }
 0x4ab   : > { %3226 = vperm.xlu1 %4756, %v6057_v26  }
 0x4ae   : > { %4764 = vset.pattern.permute.xlu0 %v7641_v9  ;;  %v7667_v9 = vmov 4  }
 0x4af   : > { %3360 = vperm.xlu0 %4764, %v6057_v26   ;;  %4757 = vset.pattern.permute.xlu1 %v7642_v36  ;;  %v7545_v36 = vmov 17  }
 0x4b0   : > { %3336 = vperm.xlu1 %4757, %v6057_v26  }
 0x4b3   : > { %4767 = vset.pattern.permute.xlu0 %v7643_v47 }
 0x4b4   : > { %3153 = vperm.xlu0 %4767, %v6057_v26   ;;  %4759 = vset.pattern.permute.xlu1 %v7644_v6  ;;  %v7669_v6 = vmov 54  }
 0x4b5   : > { %3238 = vperm.xlu1 %4759, %v6057_v26  }
 0x4b8   : > { %4770 = vset.pattern.permute.xlu0 %v7645_v19  ;;  %v7670_v19 = vmov 66  }
 0x4b9   : > { %3482 = vperm.xlu0 %4770, %v6057_v26   ;;  %4760 = vset.pattern.permute.xlu1 %v7646_v44 }
 0x4ba   : > { %3348 = vperm.xlu1 %4760, %v6057_v26  }
 0x4bd   : > { %4773 = vset.pattern.permute.xlu0 %v7647_v18  ;;  %v7672_v18 = vmov 58  }
 0x4be   : > { %3165 = vperm.xlu0 %4773, %v6057_v26   ;;  %4762 = vset.pattern.permute.xlu1 %v7648_v30 }
 0x4bf   : > { %3141 = vperm.xlu1 %4762, %v6057_v26  }
 0x4c2   : > { %4776 = vset.pattern.permute.xlu0 %v7649_v59  ;;  %v7538_v59 = vmov 42  }
 0x4c3   : > { %3495 = vperm.xlu0 %4776, %v6057_v26   ;;  %4763 = vset.pattern.permute.xlu1 %v7650_v33  ;;  %v6170_v33 = vld [vmem:[#allocation3] sm:$0xff] }
 0x4c4   : > { %3250 = vperm.xlu1 %4763, %v6057_v26  }
 0x4c7   : > { %4779 = vset.pattern.permute.xlu0 %v7549_v54 }
 0x4c8   : > { %3823 = vperm.xlu0 %4779, %v6057_v26   ;;  %4765 = vset.pattern.permute.xlu1 %v7651_v0 }
 0x4c9   : > { %3470 = vperm.xlu1 %4765, %v6057_v26  }
 0x4cc   : > { %4782 = vset.pattern.permute.xlu0 %v7652_v38 }
 0x4cd   : > { %3397 = vperm.xlu0 %4782, %v6057_v26   ;;  %4766 = vset.pattern.permute.xlu1 %v4995_v39  ;;  %v7540_v39 = vmov 26  }
 0x4ce   : > { %3579 = vperm.xlu1 %4766, %v6057_v26  }
 0x4d1   : > { %4785 = vset.pattern.permute.xlu0 %v7546_v60 }
 0x4d2   : > { %3725 = vperm.xlu0 %4785, %v6057_v26   ;;  %4768 = vset.pattern.permute.xlu1 %v7653_v14  ;;  %v7541_v14 = vmov 34  }
 0x4d3   : > { %3263 = vperm.xlu1 %4768, %v6057_v26  }
 0x4d6   : > { %4788 = vset.pattern.permute.xlu0 %v7654_v34 }
 0x4d7   : > { %3299 = vperm.xlu0 %4788, %v6057_v26   ;;  %4769 = vset.pattern.permute.xlu1 %v7655_v15  ;;  %v7673_v15 = vmov 75  }
 0x4d8   : > { %3372 = vperm.xlu1 %4769, %v6057_v26  }
 0x4db   : > { %4791 = vset.pattern.permute.xlu0 %v5003_v28  ;;  %v7657_v28 = vmov 56  }
 0x4dc   : > { %3628 = vperm.xlu0 %4791, %v6057_v26   ;;  %4771 = vset.pattern.permute.xlu1 %v4996_v2  ;;  %v7534_v2 = vmov 35  }
 0x4dd   : > { %3591 = vperm.xlu1 %4771, %v6057_v26  }
 0x4e0   : > { %4794 = vset.pattern.permute.xlu0 %v7540_v39 }
 0x4e1   : > { %3956 = vperm.xlu0 %4794, %v6057_v26   ;;  %4772 = vset.pattern.permute.xlu1 %v7552_v49 }
 0x4e2   : > { %3701 = vperm.xlu1 %4772, %v6057_v26  }
 0x4e5   : > { %4797 = vset.pattern.permute.xlu0 %v7656_v21 }
 0x4e6   : > { %3640 = vperm.xlu0 %4797, %v6057_v26   ;;  %4774 = vset.pattern.permute.xlu1 %v7657_v28 }
 0x4e7   : > { %3275 = vperm.xlu1 %4774, %v6057_v26  }
 0x4ea   : > { %4800 = vset.pattern.permute.xlu0 %v7534_v2 }
 0x4eb   : > { %3968 = vperm.xlu0 %4800, %v6057_v26   ;;  %4775 = vset.pattern.permute.xlu1 %v7658_v16 }
 0x4ec   : > { %3385 = vperm.xlu1 %4775, %v6057_v26  }
 0x4ef   : > { %4803 = vset.pattern.permute.xlu0 %v7523_v43  ;;  %v7528_v43 = vmov 78  }
 0x4f0   : > { %3762 = vperm.xlu0 %4803, %v6057_v26   ;;  %4777 = vset.pattern.permute.xlu1 %v7659_v57  ;;  %v7675_v57 = vmov 63  }
 0x4f1   : > { %3603 = vperm.xlu1 %4777, %v6057_v26  }
 0x4f4   : > { %4806 = vset.pattern.permute.xlu0 %v7660_v45  ;;  %v7676_v45 = vmov 67  }
 0x4f5   : > { %3664 = vperm.xlu0 %4806, %v6057_v26   ;;  %4778 = vset.pattern.permute.xlu1 %v5017_v51 }
 0x4f6   : > { %3713 = vperm.xlu1 %4778, %v6057_v26  }
 0x4f9   : > { %4809 = vset.pattern.permute.xlu0 %v7519_v4 }
 0x4fa   : > { %3992 = vperm.xlu0 %4809, %v6057_v26   ;;  %4780 = vset.pattern.permute.xlu1 %v7661_v58 }
 0x4fb   : > { %3177 = vperm.xlu1 %4780, %v6057_v26  }
 0x4fe   : > { %4812 = vset.pattern.permute.xlu0 %v7522_v11 }
 0x4ff   : > { %4004 = vperm.xlu0 %4812, %v6057_v26   ;;  %4781 = vset.pattern.permute.xlu1 %v7662_v56 }
 0x500   : > { %3287 = vperm.xlu1 %4781, %v6057_v26  }
 0x503   : > { %4815 = vset.pattern.permute.xlu0 %v7517_v42  ;;  %v7524_v42 = vmov 69  }
 0x504   : > { %4029 = vperm.xlu0 %4815, %v6057_v26   ;;  %4783 = vset.pattern.permute.xlu1 %v7663_v53  ;;  %v7535_v53 = vmov 51  }
 0x505   : > { %3507 = vperm.xlu1 %4783, %v6057_v26  }
 0x508   : > { %4818 = vset.pattern.permute.xlu0 %v7664_v62 }
 0x509   : > { %2986 = vperm.xlu0 %4818, %v6057_v26   ;;  %4784 = vset.pattern.permute.xlu1 %v7665_v61  ;;  %v6181_v28 = vpop.permute.xlu0 %2077 }
 0x50a   : > { %3616 = vperm.xlu1 %4784, %v6057_v26   ;;  %v6157_v47 = vpop.permute.xlu1 %2075  ;;  %7674 = vst [vmem:[#allocation35_spill] sm:$0xff] %v6181_v28 }
 0x50b   : > { %7668 = vst [vmem:[#allocation33_spill] sm:$0xff] %v6157_v47 }
 0x50d   : > { %4821 = vset.pattern.permute.xlu0 %v7666_v41 }
 0x50e   : > { %3331 = vperm.xlu0 %4821, %v6057_v26   ;;  %4786 = vset.pattern.permute.xlu1 %v7544_v20 }
 0x50f   : > { %3835 = vperm.xlu1 %4786, %v6057_v26  }
 0x512   : > { %4823 = vset.pattern.permute.xlu0 %v7667_v9  ;;  %v7518_v9 = vmov 7  }
 0x513   : > { %3453 = vperm.xlu0 %4823, %v6057_v26   ;;  %4787 = vset.pattern.permute.xlu1 %v7545_v36  ;;  %v7685_v36 = vmov 36  }
 0x514   : > { %3944 = vperm.xlu1 %4787, %v6057_v26  }
 0x517   : > { %4826 = vset.pattern.permute.xlu0 %v7669_v6  ;;  %v7526_v6 = vmov 43  }
 0x518   : > { %4789 = vset.pattern.permute.xlu1 %v7670_v19 }
 0x519   : > { %3409 = vperm.xlu1 %4789, %v6057_v26  }
 0x51a   : > { %v6188_v58 = vpop.permute.xlu0 %3092 }
 0x51b   : > { %v6162_v44 = vpop.permute.xlu1 %2091 }
 0x51c   : > { %7671 = vst [vmem:[#allocation34_spill] sm:$0xff] %v6162_v44 }
 0x51d   : > { %4790 = vset.pattern.permute.xlu1 %v7672_v18 }
 0x51e   : > { %3519 = vperm.xlu1 %4790, %v6057_v26  }
 0x51f   : > { %v6195_v61 = vpop.permute.xlu0 %3116 }
 0x520   : > { %v6166_v30 = vpop.permute.xlu1 %3104 }
 0x522   : > { %4792 = vset.pattern.permute.xlu1 %v7538_v59 }
 0x523   : > { %3738 = vperm.xlu1 %4792, %v6057_v26  }
 0x524   : > { %v6204_v18 = vpop.permute.xlu0 %3128 }
 0x525   : > { %v3215_v0 = vpop.permute.xlu1 %3214 }
 0x526   : > { %v3217_v38 = vmul.f32 %v3215_v0, %v6170_v33  ;;  %v7677_v0 = vmov 76  }
 0x527   : > { %4793 = vset.pattern.permute.xlu1 %v7541_v14  ;;  %v7683_v14 = vmov 27  }
 0x528   : > { %3847 = vperm.xlu1 %4793, %v6057_v26   ;;  %3219 = vrot.lane.b32.xlu0 %v3217_v38, %s7550_s18 }
 0x52a   : > { %v6176_v34 = vpop.permute.xlu1 %3226 }
 0x52c   : > { %4795 = vset.pattern.permute.xlu1 %v7673_v15  ;;  %3037 = vperm.xlu0 %4826, %v6057_v26  }
 0x52d   : > { %3421 = vperm.xlu1 %4795, %v6057_v26  }
 0x52f   : > { %v3337_v21 = vpop.permute.xlu1 %3336 }
 0x530   : > { %v3339_v16 = vmul.f32 %v3337_v21, %v6170_v33  ;;  %4828 = vset.pattern.permute.xlu0 %v7675_v57  ;;  %v7520_v21 = vmov 8   ;;  %v6212_v57 = vpop.permute.xlu0 %3458 }
 0x531   : > { %4796 = vset.pattern.permute.xlu1 %v7676_v45 }
 0x532   : > { %3531 = vperm.xlu1 %4796, %v6057_v26   ;;  %3341 = vrot.lane.b32.xlu0 %v3339_v16, %s7550_s18  ;;  %v7678_v16 = vmov 68  }
 0x534   : > { %v6190_v56 = vpop.permute.xlu1 %3238 }
 0x536   : > { %4798 = vset.pattern.permute.xlu1 %v7535_v53  ;;  %3049 = vperm.xlu0 %4828, %v6057_v26   ;;  %v7680_v53 = vmov 9  }
 0x537   : > { %3750 = vperm.xlu1 %4798, %v6057_v26  }
 0x539   : > { %v3349_v62 = vpop.permute.xlu1 %3348 }
 0x53a   : > { %v3351_v41 = vmul.f32 %v3349_v62, %v6170_v33  ;;  %4829 = vset.pattern.permute.xlu0 %v7518_v9 }
 0x53b   : > { %4799 = vset.pattern.permute.xlu1 %v7526_v6  ;;  %v7530_v6 = vmov 70  }
 0x53c   : > { %3860 = vperm.xlu1 %4799, %v6057_v26   ;;  %3353 = vrot.lane.b32.xlu0 %v3351_v41, %s7531_s19  ;;  %v7529_v41 = vmov 52  }
 0x53e   : > { %v6202_v19 = vpop.permute.xlu1 %3141 }
 0x540   : > { %4801 = vset.pattern.permute.xlu1 %v7677_v0  ;;  %3818 = vperm.xlu0 %4829, %v6057_v26   ;;  %v6220_v0 = vpop.permute.xlu0 %3360 }
 0x541   : > { %3543 = vperm.xlu1 %4801, %v6057_v26  }
 0x543   : > { %v3251_v38 = vpop.permute.xlu1 %3250 }
 0x544   : > { %v3253_v15 = vmul.f32 %v3251_v38, %v6170_v33  ;;  %4831 = vset.pattern.permute.xlu0 %v7520_v21  ;;  %v7525_v21 = vmov 61  }
 0x545   : > { %4802 = vset.pattern.permute.xlu1 %v7678_v16  ;;  %v7521_v16 = vmov 44  }
 0x546   : > { %3652 = vperm.xlu1 %4802, %v6057_v26   ;;  %3255 = vrot.lane.b32.xlu0 %v3253_v15, %s7679_s28  ;;  %v6227_v15 = vpop.permute.xlu0 %3153 }
 0x548   : > { %v3471_v45 = vpop.permute.xlu1 %3470 }
 0x549   : > { %v3473_v62 = vmul.f32 %v3471_v45, %v6170_v33 }
 0x54a   : > { %4804 = vset.pattern.permute.xlu1 %v7529_v41  ;;  %v6234_v9 = vpop.permute.xlu0 %3482 }
 0x54b   : > { %3872 = vperm.xlu1 %4804, %v6057_v26   ;;  %3475 = vrot.lane.b32.xlu0 %v3473_v62, %s7531_s19 }
 0x54d   : > { %v6222_v38 = vpop.permute.xlu1 %3579 }
 0x54e   : > { %v3166_v11 = vpop.permute.xlu0 %3165 }
 0x54f   : > { %4805 = vset.pattern.permute.xlu1 %v7521_v16  ;;  %3939 = vperm.xlu0 %4831, %v6057_v26  }
 0x550   : > { %3980 = vperm.xlu1 %4805, %v6057_v26  }
 0x552   : > { %v6229_v45 = vpop.permute.xlu1 %3263 }
 0x553   : > { %4834 = vset.pattern.permute.xlu0 %v5017_v51 }
 0x554   : > { %4807 = vset.pattern.permute.xlu1 %v7524_v42  ;;  %v6244_v42 = vld [vmem:[#allocation3 + $0x4] sm:$0xf] }
 0x555   : > { %3774 = vperm.xlu1 %4807, %v6057_v26  }
 0x557   : > { %v3373_v62 = vpop.permute.xlu1 %3372 }
 0x558   : > { %v3375_v4 = vmul.f32 %v3373_v62, %v6170_v33  ;;  %v3168_v62 = vmul.f32 %v3166_v11, %v6244_v42 }
 0x559   : > { %4808 = vset.pattern.permute.xlu1 %v7525_v21 }
 0x55a   : > { %3884 = vperm.xlu1 %4808, %v6057_v26   ;;  %3377 = vrot.lane.b32.xlu0 %v3375_v4, %s7679_s28 }
 0x55c   : > { %v3592_v16 = vpop.permute.xlu1 %3591 }
 0x55d   : > { %v3594_v51 = vmul.f32 %v3592_v16, %v6170_v33  ;;  %v7533_v16 = vmov 79  }
 0x55e   : > { %4810 = vset.pattern.permute.xlu1 %v7528_v43  ;;  %v6258_v43 = vpop.permute.xlu0 %3495 }
 0x55f   : > { %3786 = vperm.xlu1 %4810, %v6057_v26   ;;  %3596 = vrot.lane.b32.xlu0 %v3594_v51, %s7531_s19  ;;  %v6256_v51 = vld [vmem:[#allocation3 + $0x4] sm:$0xf]  ;;  %s7547_s19 = smov 88  }
 0x561   : > { %v6247_v21 = vpop.permute.xlu1 %3701 }
 0x562   : > { %v3824_v2 = vpop.permute.xlu0 %3823 }
 0x563   : > { %4811 = vset.pattern.permute.xlu1 %v7530_v6  ;;  %3170 = vrot.lane.b32.xlu0 %v3168_v62, %s7536_s17  ;;  %v7539_v6 = vmov 71   ;;  %s7542_s17 = smov 104  }
 0x564   : > { %3896 = vperm.xlu1 %4811, %v6057_v26  }
 0x566   : > { %v6252_v4 = vpop.permute.xlu1 %3275 }
 0x568   : > { %4813 = vset.pattern.permute.xlu1 %v7533_v16 }
 0x569   : > { %3908 = vperm.xlu1 %4813, %v6057_v26  }
 0x56b   : > { %v3386_v11 = vpop.permute.xlu1 %3385 }
 0x56c   : > { %v3388_v41 = vmul.f32 %v3386_v11, %v6256_v51  ;;  %v3826_v11 = vmul.f32 %v3824_v2, %v6170_v33 }
 0x56d   : > { %4814 = vset.pattern.permute.xlu1 %v7539_v6  ;;  %v7681_v6 = vmov 1  }
 0x56e   : > { %4016 = vperm.xlu1 %4814, %v6057_v26   ;;  %3390 = vrot.lane.b32.xlu0 %v3388_v41, %s7547_s19 }
 0x570   : > { %v3604_v62 = vpop.permute.xlu1 %3603 }
 0x571   : > { %v3606_v16 = vmul.f32 %v3604_v62, %v6170_v33  ;;  %v7682_v62 = vmov 2  }
 0x572   : > { %4816 = vset.pattern.permute.xlu1 %v7680_v53  ;;  %v6278_v53 = vld [vmem:[#allocation3 + $0x4] sm:$0xf] }
 0x573   : > { %2974 = vperm.xlu1 %4816, %v6057_v26   ;;  %3608 = vrot.lane.b32.xlu0 %v3606_v16, %s7542_s17  ;;  %v6280_v16 = vpop.permute.xlu0 %3397  ;;  %s7684_s17 = smov 72  }
 0x575   : > { %v6269_v59 = vpop.permute.xlu1 %3713 }
 0x577   : > { %4817 = vset.pattern.permute.xlu1 %v7681_v6  ;;  %3828 = vrot.lane.b32.xlu0 %v3826_v11, %s7550_s18  ;;  %v6286_v6 = vld [vmem:[#allocation3 + $0x4] sm:$0xf]  ;;  %v3726_v20 = vpop.permute.xlu0 %3725 }
 0x578   : > { %3087 = vperm.xlu1 %4817, %v6057_v26  }
 0x57a   : > { %v6274_v41 = vpop.permute.xlu1 %3177 }
 0x57b   : > { %v3300_v54 = vpop.permute.xlu0 %3299 }
 0x57c   : > { %4819 = vset.pattern.permute.xlu1 %v7682_v62 }
 0x57d   : > { %3209 = vperm.xlu1 %4819, %v6057_v26  }
 0x57f   : > { %v3288_v39 = vpop.permute.xlu1 %3287 }
 0x580   : > { %v3290_v2 = vmul.f32 %v3288_v39, %v6278_v53  ;;  %v3095_v39 = vmul.f32 %v6188_v58, %v6170_v33 }
 0x581   : > { %4820 = vset.pattern.permute.xlu1 %v7683_v14  ;;  %v3728_v14 = vmul.f32 %v3726_v20, %v6170_v33 }
 0x582   : > { %2998 = vperm.xlu1 %4820, %v6057_v26   ;;  %3292 = vrot.lane.b32.xlu0 %v3290_v2, %s7684_s17  ;;  %v7687_v2 = vmov 45  }
 0x584   : > { %v3508_v11 = vpop.permute.xlu1 %3507 }
 0x585   : > { %v3510_v62 = vmul.f32 %v3508_v11, %v6286_v6 }
 0x586   : > { %4822 = vset.pattern.permute.xlu1 %v7685_v36  ;;  %v3107_v36 = vmul.f32 %v6166_v30, %v6170_v33  ;;  %v7691_v30 = vmov 6  }
 0x587   : > { %3011 = vperm.xlu1 %4822, %v6057_v26   ;;  %3512 = vrot.lane.b32.xlu0 %v3510_v62, %s7547_s19  ;;  %s7688_s19 = smov 112   ;;  %v7689_v62 = vmov 5  }
 0x589   : > { %v6295_v60 = vpop.permute.xlu1 %3616 }
 0x58b   : > { %3097 = vrot.lane.b32.xlu1 %v3095_v39, %s7550_s18  ;;  %3730 = vrot.lane.b32.xlu0 %v3728_v14, %s7686_s0  ;;  %v3302_v39 = vmul.f32 %v3300_v54, %v6278_v53  ;;  %v6325_v54 = vld [vmem:[#allocation3 + $0x4] sm:$0xf] }
 0x58c   : > { %4824 = vset.pattern.permute.xlu1 %v7687_v2  ;;  %v3119_v2 = vmul.f32 %v6195_v61, %v6170_v33 }
 0x58e   : > { %v6300_v11 = vpop.permute.xlu1 %3835 }
 0x58f   : > { %3024 = vperm.xlu1 %4824, %v6057_v26  }
 0x593   : > { %3109 = vrot.lane.b32.xlu1 %v3107_v36, %s7688_s19  ;;  %v3945_v58 = vpop.permute.xlu1 %3944  ;;  %v3229_v36 = vmul.f32 %v6176_v34, %v6170_v33  ;;  %v3131_v34 = vmul.f32 %v6204_v18, %v6170_v33  ;;  %v3461_v18 = vmul.f32 %v6212_v57, %v6170_v33  ;;  %v3144_v57 = vmul.f32 %v6202_v19, %v6244_v42  ;;  %v6369_v19 = vld [vmem:[%s7432_s5] sm:$0xff] }
 0x594   : > { %v3947_v20 = vmul.f32 %v3945_v58, %v6170_v33  ;;  %4825 = vset.pattern.permute.xlu1 %v7689_v62 }
 0x596   : > { %3949 = vrot.lane.b32.xlu0 %v3947_v20, %s7550_s18  ;;  %v6320_v20 = vpop.permute.xlu0 %3628 }
 0x597   : > { %3574 = vperm.xlu1 %4825, %v6057_v26  }
 0x598   : > { %v6311_v14 = vpop.permute.xlu1 %3409 }
 0x59a   : > { %3304 = vrot.lane.b32.xlu0 %v3302_v39, %s7690_s1 }
 0x59b   : > { %3121 = vrot.lane.b32.xlu1 %v3119_v2, %s7686_s0  ;;  %v3957_v2 = vpop.permute.xlu0 %3956 }
 0x59c   : > { %4827 = vset.pattern.permute.xlu1 %v7691_v30  ;;  %v3959_v30 = vmul.f32 %v3957_v2, %v6170_v33 }
 0x59d   : > { %v3520_v58 = vpop.permute.xlu1 %3519 }
 0x59e   : > { %v3522_v62 = vmul.f32 %v3520_v58, %v6286_v6  ;;  %v7692_v58 = vmov 72  }
 0x59f   : > { %3231 = vrot.lane.b32.xlu1 %v3229_v36, %s7688_s19  ;;  %v3641_v2 = vpop.permute.xlu0 %3640 }
 0x5a0   : > { %3524 = vrot.lane.b32.xlu0 %v3522_v62, %s7620_s16  ;;  %v3241_v62 = vmul.f32 %v6190_v56, %v6170_v33 }
 0x5a2   : > { %v3739_v61 = vpop.permute.xlu1 %3738 }
 0x5a3   : > { %v3741_v39 = vmul.f32 %v3739_v61, %v6325_v54  ;;  %3696 = vperm.xlu1 %4827, %v6057_v26  }
 0x5a5   : > { %3743 = vrot.lane.b32.xlu0 %v3741_v39, %s7679_s28 }
 0x5a7   : > { %3133 = vrot.lane.b32.xlu1 %v3131_v34, %s7679_s28  ;;  %v6334_v36 = vpop.permute.xlu1 %3847  ;;  %v6346_v34 = vld [vmem:[#allocation3 + $0x4] sm:$0xf] }
 0x5a8   : > { %4830 = vset.pattern.permute.xlu1 %v7692_v58  ;;  %v3643_v58 = vmul.f32 %v3641_v2, %v6346_v34 }
 0x5a9   : > { %3961 = vrot.lane.b32.xlu0 %v3959_v30, %s7688_s19 }
 0x5ab   : > { %3243 = vrot.lane.b32.xlu1 %v3241_v62, %s7686_s0  ;;  %v6358_v62 = vpop.permute.xlu0 %3968 }
 0x5ac   : > { %v3422_v61 = vpop.permute.xlu1 %3421 }
 0x5ad   : > { %v3424_v39 = vmul.f32 %v3422_v61, %v6256_v51  ;;  %v7553_v61 = vmov 0  }
 0x5af   : > { %3463 = vrot.lane.b32.xlu1 %v3461_v18, %s7550_s18  ;;  %3426 = vrot.lane.b32.xlu0 %v3424_v39, %s7690_s1  ;;  %v3363_v18 = vmul.f32 %v6220_v0, %v6170_v33  ;;  %v6364_v39 = vld [vmem:[#allocation3 + $0x4] sm:$0xf]  ;;  %v6374_v49 = vpop.permute.xlu0 %3762  ;;  %v3435_v0 = vrot.slane %v6369_v19, %v5672_v27  ;;  %v3485_v27 = vmul.f32 %v6234_v9, %v6170_v33  ;;  %s5043_s18 = smov 93  }
 0x5b0   : > { %v3278_v9 = vmul.f32 %v6252_v4, %v6278_v53  ;;  %v3716_v4 = vmul.f32 %v6269_v59, %v6170_v33  ;;  %v3400_v59 = vmul.f32 %v6280_v16, %v6256_v51 }
 0x5b1   : > { %v6349_v56 = vpop.permute.xlu1 %3531 }
 0x5b3   : > { %3062 = vperm.xlu1 %4830, %v6057_v26   ;;  %3645 = vrot.lane.b32.xlu0 %v3643_v58, %s7620_s16 }
 0x5b6   : > { %v6355_v30 = vpop.permute.xlu1 %3750 }
 0x5b7   : > { %3146 = vrot.lane.b32.xlu1 %v3144_v57, %s7693_s4  ;;  %v3582_v57 = vmul.f32 %v6222_v38, %v6170_v33  ;;  %v3266_v38 = vmul.f32 %v6229_v45, %v6278_v53  ;;  %v3557_v45 = vrot.slane %v6369_v19, %v5877_v52  ;;  %v6415_v52 = vld [vmem:[#allocation3 + $0x4] sm:$0xf] }
 0x5b8   : > { %4832 = vset.pattern.permute.xlu1 %v7553_v61  ;;  %v3156_v61 = vmul.f32 %v6227_v15, %v6244_v42 }
 0x5bb   : > { %3365 = vrot.lane.b32.xlu1 %v3363_v18, %s7686_s0  ;;  %v3861_v2 = vpop.permute.xlu1 %3860 }
 0x5bc   : > { %v3863_v58 = vmul.f32 %v3861_v2, %v6364_v39  ;;  %v6385_v2 = vpop.permute.xlu0 %3664 }
 0x5be   : > { %3865 = vrot.lane.b32.xlu0 %v3863_v58, %s7679_s28 }
 0x5bf   : > { %3584 = vrot.lane.b32.xlu1 %v3582_v57, %s7694_s10 }
 0x5c0   : > { %v6380_v18 = vpop.permute.xlu1 %3543  ;;  %v3993_v15 = vpop.permute.xlu0 %3992 }
 0x5c1   : > { %v3995_v53 = vmul.f32 %v3993_v15, %v6415_v52 }
 0x5c2   : > { %3437 = vrot.lane.b32.xlu0 %v3435_v0, %s5042_s6  ;;  %s5044_s6 = smov 99  }
 0x5c3   : > { %3158 = vrot.lane.b32.xlu1 %v3156_v61, %s7620_s16  ;;  %v3704_v61 = vmul.f32 %v6247_v21, %v6170_v33  ;;  %v3498_v21 = vmul.f32 %v6258_v43, %v6286_v6 }
 0x5c5   : > { %v3653_v58 = vpop.permute.xlu1 %3652 }
 0x5c6   : > { %v3655_v47 = vmul.f32 %v3653_v58, %v6346_v34 }
 0x5c7   : > { %3268 = vrot.lane.b32.xlu1 %v3266_v38, %s7693_s4  ;;  %v4005_v38 = vpop.permute.xlu0 %4004 }
 0x5c8   : > { %3657 = vrot.lane.b32.xlu0 %v3655_v47, %s7684_s17 }
 0x5ca   : > { %v3873_v57 = vpop.permute.xlu1 %3872 }
 0x5cb   : > { %v3875_v0 = vmul.f32 %v3873_v57, %v6364_v39  ;;  %3487 = vrot.lane.b32.xlu1 %v3485_v27, %s7686_s0  ;;  %v6411_v57 = vpop.permute.xlu0 %4029 }
 0x5cd   : > { %3877 = vrot.lane.b32.xlu0 %v3875_v0, %s7693_s4 }
 0x5cf   : > { %3706 = vrot.lane.b32.xlu1 %v3704_v61, %s7694_s10  ;;  %v6402_v47 = vpop.permute.xlu1 %3980  ;;  %v6424_v43 = vpop.permute.xlu0 %2986  ;;  %v3180_v61 = vmul.f32 %v6274_v41, %v6244_v42  ;;  %v3619_v42 = vmul.f32 %v6295_v60, %v6346_v34  ;;  %v6444_v41 = vsub.s32 7, %v5198_v10  ;;  %v3191_v60 = vrot.slane %v6369_v19, %v5232_v23 }
 0x5d0   : > { %v3412_v23 = vmul.f32 %v6311_v14, %v6256_v51  ;;  %v3850_v51 = vmul.f32 %v6334_v36, %v6170_v33 }
 0x5d1   : > { %3559 = vrot.lane.b32.xlu0 %v3557_v45, %s7679_s28  ;;  %7695 = vst [vmem:[#allocation36_spill] sm:$0xff] %v6444_v41 }
 0x5d3   : > { %3280 = vrot.lane.b32.xlu1 %v3278_v9, %s7620_s16  ;;  %v6433_v15 = vpop.permute.xlu0 %3331 }
 0x5d4   : > { %v3775_v58 = vpop.permute.xlu1 %3774 }
 0x5d5   : > { %v3777_v27 = vmul.f32 %v3775_v58, %v6325_v54  ;;  %v4007_v58 = vmul.f32 %v4005_v38, %v6415_v52  ;;  %v3838_v38 = vmul.f32 %v6300_v11, %v6170_v33 }
 0x5d7   : > { %3500 = vrot.lane.b32.xlu1 %v3498_v21, %s7679_s28  ;;  %3779 = vrot.lane.b32.xlu0 %v3777_v27, %s7684_s17  ;;  %v6446_v16 = vpop.permute.xlu0 %3453 }
 0x5d9   : > { %v6420_v0 = vpop.permute.xlu1 %3884 }
 0x5db   : > { %3718 = vrot.lane.b32.xlu1 %v3716_v4, %s7688_s19  ;;  %3997 = vrot.lane.b32.xlu0 %v3995_v53, %s7693_s4  ;;  %v3922_v53 = vrot.slane %v6369_v19, %v6444_v41 }
 0x5de   : > { %v3787_v45 = vpop.permute.xlu1 %3786 }
 0x5df   : > { %v3789_v9 = vmul.f32 %v3787_v45, %v6325_v54  ;;  %3182 = vrot.lane.b32.xlu1 %v3180_v61, %s7690_s1  ;;  %v6457_v61 = vpop.permute.xlu0 %3219 }
 0x5e1   : > { %3791 = vrot.lane.b32.xlu0 %v3789_v9, %s7690_s1  ;;  %v4440_v9 = vld [vmem:[%s7432_s5 + $0x8] ss:$0 sm:$0xff] }
 0x5e3   : > { %3402 = vrot.lane.b32.xlu1 %v3400_v59, %s7620_s16  ;;  %v6437_v21 = vpop.permute.xlu1 %3896  ;;  %v6461_v11 = vpop.permute.xlu0 %3037 }
 0x5e5   : > { %4009 = vrot.lane.b32.xlu0 %v4007_v58, %s7620_s16  ;;  %v3631_v58 = vmul.f32 %v6320_v20, %v6346_v34 }
 0x5e7   : > { %3621 = vrot.lane.b32.xlu1 %v3619_v42, %s7679_s28 }
 0x5e8   : > { %v3909_v27 = vpop.permute.xlu1 %3908 }
 0x5e9   : > { %v3911_v4 = vmul.f32 %v3909_v27, %v6364_v39  ;;  %v6472_v27 = vpop.permute.xlu0 %3341 }
 0x5ea   : > { %v3343_v1 = vrot.slane %v6472_v27, 4 }
 0x5eb   : > { %3840 = vrot.lane.b32.xlu1 %v3838_v38, %s7688_s19  ;;  %3913 = vrot.lane.b32.xlu0 %v3911_v4, %s7690_s1  ;;  %v3313_v4 = vrot.slane %v6369_v19, %v5243_v29  ;;  %v3753_v29 = vmul.f32 %v6355_v30, %v6325_v54 }
 0x5ec   : > { %v3344_v50 = vsel %vm7581_vm14, %v6472_v27, %v3343_v1 }
 0x5ed   : > { %v6459_v45 = vpop.permute.xlu1 %4016  ;;  %v3050_v14 = vpop.permute.xlu0 %3049 }
 0x5ef   : > { %3193 = vrot.lane.b32.xlu1 %v3191_v60, %s5043_s18  ;;  %3924 = vrot.lane.b32.xlu0 %v3922_v53, %s5044_s6  ;;  %v3534_v53 = vmul.f32 %v6349_v56, %v6286_v6 }
 0x5f1   : > { %v6485_v60 = vpop.permute.xlu0 %3353 }
 0x5f2   : > { %v2975_v59 = vpop.permute.xlu1 %2974  ;;  %v3355_v35 = vrot.slane %v6485_v60, 4 }
 0x5f3   : > { %3414 = vrot.lane.b32.xlu1 %v3412_v23, %s7684_s17  ;;  %4045 = vrot.lane.b32.xlu0 %v4440_v9, %s5045_s27  ;;  %v2977_v42 = vmul.f32 %v6170_v33, %v2975_v59  ;;  %s5049_s27 = smov 98  }
 0x5f5   : > { %v6491_v36 = vpop.permute.xlu0 %3818 }
 0x5f7   : > { %3633 = vrot.lane.b32.xlu1 %v3631_v58, %s7693_s4  ;;  %2979 = vrot.lane.b32.xlu0 %v2977_v42, %s7694_s10  ;;  %v6476_v38 = vpop.permute.xlu1 %3087  ;;  %v3971_v58 = vmul.f32 %v6358_v62, %v6170_v33 }
 0x5f8   : > { %v3090_v46 = vmul.f32 %v6476_v38, %v6170_v33 }
 0x5f9   : > { %v6499_v42 = vpop.permute.xlu0 %3255 }
 0x5fb   : > { %3852 = vrot.lane.b32.xlu1 %v3850_v51, %s7686_s0  ;;  %v3546_v51 = vmul.f32 %v6380_v18, %v6286_v6  ;;  %v3983_v6 = vmul.f32 %v6402_v47, %v6415_v52  ;;  %v3076_v18 = vrot.slane %v6369_v19, %v5206_v13  ;;  %v3887_v47 = vmul.f32 %v6420_v0, %v6364_v39 }
 0x5fc   : > { %v6483_v20 = vpop.permute.xlu1 %3209  ;;  %v3678_v13 = vrot.slane %v6369_v19, %v6013_v3 }
 0x5fd   : > { %v6508_v30 = vpop.permute.xlu0 %3475 }
 0x5ff   : > { %3315 = vrot.lane.b32.xlu1 %v3313_v4, %s5046_s23  ;;  %s5055_s23 = smov 68  }
 0x601   : > { %v2999_v9 = vpop.permute.xlu1 %2998 }
 0x602   : > { %v3001_v23 = vmul.f32 %v6170_v33, %v2999_v9  ;;  %v3765_v9 = vmul.f32 %v6374_v49, %v6325_v54  ;;  %v3667_v49 = vmul.f32 %v6385_v2, %v6346_v34  ;;  %v6546_v2 = vsub.s32 6, %v5198_v10 }
 0x603   : > { %3536 = vrot.lane.b32.xlu1 %v3534_v53, %s7684_s17  ;;  %v4019_v10 = vmul.f32 %v6459_v45, %v6415_v52  ;;  %v2989_v45 = vmul.f32 %v6170_v33, %v6424_v43 }
 0x604   : > { %3003 = vrot.lane.b32.xlu0 %v3001_v23, %s7686_s0  ;;  %v3052_v23 = vmul.f32 %v3050_v14, %v6415_v52  ;;  %7696 = vst [vmem:[#allocation37_spill] sm:$0xff] %v6546_v2  ;;  %v3800_v3 = vrot.slane %v6369_v19, %v6546_v2 }
 0x606   : > { %v3012_v59 = vpop.permute.xlu1 %3011 }
 0x607   : > { %3755 = vrot.lane.b32.xlu1 %v3753_v29, %s7693_s4  ;;  %v6517_v29 = vpop.permute.xlu0 %3939 }
 0x60a   : > { %v6501_v56 = vpop.permute.xlu1 %3097 }
 0x60b   : > { %3973 = vrot.lane.b32.xlu1 %v3971_v58, %s7686_s0  ;;  %s5047_s0 = smov 92   ;;  %v6529_v54 = vpop.permute.xlu0 %3377 }
 0x60e   : > { %v3025_v4 = vpop.permute.xlu1 %3024 }
 0x60f   : > { %v3027_v53 = vmul.f32 %v3025_v4, %v6415_v52  ;;  %3548 = vrot.lane.b32.xlu1 %v3546_v51, %s7690_s1  ;;  %v6541_v4 = vpop.permute.xlu0 %3596 }
 0x611   : > { %3029 = vrot.lane.b32.xlu0 %v3027_v53, %s7693_s4  ;;  %s5048_s4 = smov 97   ;;  %v3899_v53 = vmul.f32 %v6437_v21, %v6364_v39  ;;  %v4027_v39 = vld [vmem:[#allocation3 + $0x4] sm:$0xf] }
 0x612   : > { %v6513_v62 = vpop.permute.xlu1 %3109 }
 0x613   : > { %3767 = vrot.lane.b32.xlu1 %v3765_v9, %s7620_s16  ;;  %v6550_v0 = vpop.permute.xlu0 %3170 }
 0x615   : > { %3054 = vrot.lane.b32.xlu0 %v3052_v23, %s7684_s17 }
 0x616   : > { %v6524_v58 = vpop.permute.xlu1 %3574 }
 0x617   : > { %3985 = vrot.lane.b32.xlu1 %v3983_v6, %s7679_s28  ;;  %v6557_v23 = vpop.permute.xlu0 %3390 }
 0x619   : > { %3078 = vrot.lane.b32.xlu0 %v3076_v18, %s5047_s0  ;;  %s7742_s0 = smov 122  }
 0x61a   : > { %v6531_v14 = vpop.permute.xlu1 %3121 }
 0x61b   : > { %3669 = vrot.lane.b32.xlu1 %v3667_v49, %s7690_s1  ;;  %v6566_v21 = vpop.permute.xlu0 %3608  ;;  %v4032_v49 = vmul.f32 %v6411_v57, %v4027_v39  ;;  %v3014_v57 = vmul.f32 %v6170_v33, %v3012_v59  ;;  %v3123_v5 = vrot.slane %v6531_v14, 4 }
 0x61e   : > { %v6536_v51 = vpop.permute.xlu1 %3231 }
 0x61f   : > { %3889 = vrot.lane.b32.xlu1 %v3887_v47, %s7620_s16  ;;  %v6570_v19 = vpop.permute.xlu0 %3828 }
 0x622   : > { %v6543_v34 = vpop.permute.xlu1 %3696 }
 0x623   : > { %3680 = vrot.lane.b32.xlu1 %v3678_v13, %s5048_s4  ;;  %s5052_s4 = smov 36  }
 0x626   : > { %v6552_v9 = vpop.permute.xlu1 %3133 }
 0x627   : > { %3901 = vrot.lane.b32.xlu1 %v3899_v53, %s7684_s17  ;;  %v6575_v53 = vpop.permute.xlu0 %3292  ;;  %v3135_v2 = vrot.slane %v6552_v9, 4 }
 0x62a   : > { %v6559_v6 = vpop.permute.xlu1 %3243 }
 0x62b   : > { %3802 = vrot.lane.b32.xlu1 %v3800_v3, %s5049_s27 }
 0x62e   : > { %v6563_v18 = vpop.permute.xlu1 %3463 }
 0x62f   : > { %4021 = vrot.lane.b32.xlu1 %v4019_v10, %s7684_s17  ;;  %v7697_v10 = vmov 15   ;;  %s7579_s17 = smov 122  }
 0x632   : > { %v3063_v47 = vpop.permute.xlu1 %3062 }
 0x633   : > { %4034 = vrot.lane.b32.xlu1 %v4032_v49, %s7690_s1  ;;  %v6583_v49 = vpop.permute.xlu0 %3512  ;;  %v3065_v43 = vmul.f32 %v3063_v47, %v6415_v52 }
 0x636   : > { %v3147_v13 = vpop.permute.xlu1 %3146 }
 0x637   : > { %2969 = vperm.xlu1 %4832, %v6057_v26   ;;  %v3040_v26 = vmul.f32 %v6461_v11, %v6415_v52  ;;  %v6589_v24 = vpop.permute.xlu0 %3730  ;;  %v3099_v52 = vrot.slane %v6501_v56, 4 }
 0x639   : > { %v3100_v31 = vsel %vm7581_vm14, %v6501_v56, %v3099_v52  ;;  %v3124_v56 = vsel %vm3006_vm15, %v6531_v14, %v3123_v5  ;;  %v3148_v52 = vrot.slane %v3147_v13, 4 }
 0x63a   : > { %v3366_v3 = vpop.permute.xlu1 %3365  ;;  %v3102_v7 = vadd.f32 %v3100_v31, %v3090_v46  ;;  %v3356_v31 = vsel %vm622_vm3, %v6485_v60, %v3355_v35  ;;  %v3379_v35 = vrot.slane %v6529_v54, 4  ;;  %v3172_v60 = vrot.slane %v6550_v0, 4 }
 0x63b   : > { %2991 = vrot.lane.b32.xlu1 %v2989_v45, %s7688_s19  ;;  %v6594_v59 = vpop.permute.xlu0 %3949  ;;  %v3367_v17 = vrot.slane %v3366_v3, 4  ;;  %v3149_v1 = vsel %vm3032_vm0, %v3148_v52, %v3147_v13 }
 0x63c   : > { %4833 = vset.pattern.permute.xlu1 %v7697_v10 }
 0x63e   : > { %v6580_v39 = vpop.permute.xlu1 %3584 }
 0x63f   : > { %3016 = vrot.lane.b32.xlu1 %v3014_v57, %s7679_s28  ;;  %v6600_v55 = vpop.permute.xlu0 %3304 }
 0x642   : > { %v3159_v28 = vpop.permute.xlu1 %3158 }
 0x643   : > { %3042 = vrot.lane.b32.xlu1 %v3040_v26, %s7620_s16  ;;  %v6604_v8 = vpop.permute.xlu0 %3524  ;;  %v3160_v37 = vrot.slane %v3159_v28, 4 }
 0x645   : > { %v3161_v32 = vsel %vm678_vm5, %v3160_v37, %v3159_v28  ;;  %v3257_v28 = vrot.slane %v6499_v42, 4 }
 0x646   : > { %v6591_v45 = vpop.permute.xlu1 %3268 }
 0x647   : > { %3067 = vrot.lane.b32.xlu1 %v3065_v43, %s7690_s1  ;;  %v6609_v47 = vpop.permute.xlu0 %3743  ;;  %v3111_v43 = vrot.slane %v6513_v62, 4 }
 0x649   : > { %v3112_v44 = vsel %vm622_vm3, %v6513_v62, %v3111_v43  ;;  %v3334_v62 = vmul.f32 %v6433_v15, %v6170_v33  ;;  %v3136_v43 = vsel %vm650_vm4, %v6552_v9, %v3135_v2  ;;  %v3233_v2 = vrot.slane %v6536_v51, 4 }
 0x64a   : > { %v6596_v10 = vpop.permute.xlu1 %3487  ;;  %v3114_v38 = vadd.f32 %v3112_v44, %v3102_v7  ;;  %v3221_v7 = vrot.slane %v6457_v61, 4  ;;  %v3368_v9 = vsel %vm3006_vm15, %v3366_v3, %v3367_v17  ;;  %v3173_v3 = vsel %vm3057_vm1, %v3172_v60, %v6550_v0 }
 0x64b   : > { %v6624_v40 = vpop.permute.xlu0 %3961  ;;  %v3346_v14 = vadd.f32 %v3344_v50, %v3334_v62  ;;  %v3212_v50 = vmul.f32 %v6483_v20, %v6170_v33  ;;  %v3234_v17 = vsel %vm622_vm3, %v6536_v51, %v3233_v2  ;;  %v3380_v20 = vsel %vm650_vm4, %v6529_v54, %v3379_v35 }
 0x64c   : > { %v3126_v46 = vadd.f32 %v3124_v56, %v3114_v38  ;;  %v3245_v56 = vrot.slane %v6559_v6, 4  ;;  %v3222_v37 = vsel %vm7581_vm14, %v6457_v61, %v3221_v7  ;;  %v3270_v54 = vrot.slane %v6591_v45, 4 }
 0x64d   : > { %v3358_v15 = vadd.f32 %v3356_v31, %v3346_v14  ;;  %v3392_v14 = vrot.slane %v6557_v23, 4 }
 0x64e   : > { %v6598_v57 = vpop.permute.xlu1 %3706  ;;  %v3138_v44 = vadd.f32 %v3136_v43, %v3126_v46  ;;  %v3224_v46 = vadd.f32 %v3222_v37, %v3212_v50 }
 0x64f   : > { %v6636_v5 = vpop.permute.xlu0 %3426  ;;  %v3370_v62 = vadd.f32 %v3368_v9, %v3358_v15  ;;  %v3393_v60 = vsel %vm3032_vm0, %v3392_v14, %v6557_v23 }
 0x650   : > { %v3151_v13 = vadd.f32 %v3149_v1, %v3138_v44  ;;  %v3236_v7 = vadd.f32 %v3234_v17, %v3224_v46  ;;  %v3428_v37 = vrot.slane %v6636_v5, 4 }
 0x651   : > { %v3382_v51 = vadd.f32 %v3380_v20, %v3370_v62  ;;  %v3271_v20 = vsel %vm3032_vm0, %v3270_v54, %v6591_v45 }
 0x652   : > { %v6602_v11 = vpop.permute.xlu1 %3280  ;;  %v3163_v43 = vadd.f32 %v3161_v32, %v3151_v13  ;;  %v3246_v32 = vsel %vm3006_vm15, %v6559_v6, %v3245_v56  ;;  %v3258_v13 = vsel %vm650_vm4, %v6499_v42, %v3257_v28  ;;  %v3429_v45 = vsel %vm706_vm6, %v3428_v37, %v6636_v5 }
 0x653   : > { %v6650_v38 = vpop.permute.xlu0 %3645  ;;  %v3248_v0 = vadd.f32 %v3246_v32, %v3236_v7  ;;  %v3282_v6 = vrot.slane %v6602_v11, 4 }
 0x654   : > { %v3175_v15 = vadd.f32 %v3173_v3, %v3163_v43 }
 0x655   : > { %v3260_v23 = vadd.f32 %v3258_v13, %v3248_v0 }
 0x656   : > { %v6606_v26 = vpop.permute.xlu1 %3500 }
 0x657   : > { %v6667_v44 = vpop.permute.xlu0 %3865  ;;  %v3273_v28 = vadd.f32 %v3271_v20, %v3260_v23 }
 0x65a   : > { %v6611_v63 = vpop.permute.xlu1 %3718 }
 0x65b   : > { %v3438_v56 = vpop.permute.xlu0 %3437 }
 0x65c   : > { %v3439_v17 = vrot.slane %v3438_v56, 4 }
 0x65e   : > { %v3183_v41 = vpop.permute.xlu1 %3182  ;;  %v3441_v7 = vsel %vm3440_vm11, %v3439_v17, %v3438_v56  ;;  %vm3805_vm11 = vcmask 801792  }
 0x65f   : > { %v3184_v52 = vrot.slane %v3183_v41, 4  ;;  %v6698_v5 = vpop.permute.xlu0 %3657 }
 0x661   : > { %v3185_v1 = vsel %vm706_vm6, %v3184_v52, %v3183_v41  ;;  %v3395_v52 = vadd.f32 %v3393_v60, %v3382_v51 }
 0x662   : > { %v3403_v22 = vpop.permute.xlu1 %3402  ;;  %v3187_v35 = vadd.f32 %v3185_v1, %v3175_v15  ;;  %v3294_v1 = vrot.slane %v6575_v53, 4 }
 0x663   : > { %v3404_v61 = vrot.slane %v3403_v22, 4  ;;  %v6710_v37 = vpop.permute.xlu0 %3877 }
 0x665   : > { %v3405_v41 = vsel %vm678_vm5, %v3404_v61, %v3403_v22  ;;  %v3283_v22 = vsel %vm678_vm5, %v3282_v6, %v6602_v11  ;;  %v3465_v61 = vrot.slane %v6563_v18, 4  ;;  %v3295_v11 = vsel %vm3057_vm1, %v3294_v1, %v6575_v53 }
 0x666   : > { %v6640_v27 = vpop.permute.xlu1 %3621  ;;  %v3407_v46 = vadd.f32 %v3405_v41, %v3395_v52  ;;  %v3285_v51 = vadd.f32 %v3283_v22, %v3273_v28  ;;  %v3477_v6 = vrot.slane %v6508_v30, 4  ;;  %v3489_v41 = vrot.slane %v6596_v10, 4 }
 0x667   : > { %v3466_v0 = vsel %vm7581_vm14, %v6563_v18, %v3465_v61  ;;  %v3502_v18 = vrot.slane %v6606_v26, 4  ;;  %v3560_v22 = vpop.permute.xlu0 %3559 }
 0x668   : > { %v3297_v60 = vadd.f32 %v3295_v11, %v3285_v51  ;;  %v3577_v51 = vmul.f32 %v6524_v58, %v6170_v33 }
 0x669   : > { %v3503_v23 = vsel %vm650_vm4, %v3502_v18, %v6606_v26 }
 0x66a   : > { %v6652_v31 = vpop.permute.xlu1 %3840 }
 0x66e   : > { %v3194_v2 = vpop.permute.xlu1 %3193 }
 0x66f   : > { %v3195_v9 = vrot.slane %v3194_v2, 4 }
 0x671   : > { %v3197_v50 = vsel %vm3196_vm10, %v3195_v9, %v3194_v2  ;;  %v3306_v9 = vrot.slane %v6600_v55, 4  ;;  %vm3927_vm10 = vcmask 809984  }
 0x672   : > { %v3199_v62 = vmul.f32 %v3197_v50, %v3187_v35  ;;  %v3415_v43 = vpop.permute.xlu1 %3414  ;;  %v3456_v35 = vmul.f32 %v6446_v16, %v6170_v33  ;;  %v3478_v16 = vsel %vm622_vm3, %v6508_v30, %v3477_v6 }
 0x673   : > { %v3416_v3 = vrot.slane %v3415_v43, 4  ;;  %v3307_v13 = vsel %vm706_vm6, %v3306_v9, %v6600_v55 }
 0x674   : > { %3201 = vrot.lane.b32.xlu1 %v3199_v62, %s7621_s26  ;;  %v3468_v50 = vadd.f32 %v3466_v0, %v3456_v35  ;;  %v3309_v52 = vadd.f32 %v3307_v13, %v3297_v60  ;;  %v3490_v62 = vsel %vm3006_vm15, %v6596_v10, %v3489_v41  ;;  %v3586_v10 = vrot.slane %v6580_v39, 4  ;;  %s7699_s26 = smov 123  }
 0x675   : > { %v3417_v42 = vsel %vm3057_vm1, %v3416_v3, %v3415_v43  ;;  %v3708_v60 = vrot.slane %v6598_v57, 4  ;;  %v3610_v41 = vrot.slane %v6566_v21, 4 }
 0x676   : > { %v3419_v14 = vadd.f32 %v3417_v42, %v3407_v46  ;;  %v6683_v32 = vpop.permute.xlu1 %3633  ;;  %v3480_v17 = vadd.f32 %v3478_v16, %v3468_v50  ;;  %v3514_v46 = vrot.slane %v6583_v49, 4  ;;  %v3587_v26 = vsel %vm7581_vm14, %v6580_v39, %v3586_v10 }
 0x677   : > { %v3589_v9 = vadd.f32 %v3587_v26, %v3577_v51  ;;  %v3720_v50 = vrot.slane %v6611_v63, 4  ;;  %v3830_v16 = vrot.slane %v6570_v19, 4 }
 0x678   : > { %v3431_v15 = vadd.f32 %v3429_v45, %v3419_v14  ;;  %v3492_v55 = vadd.f32 %v3490_v62, %v3480_v17  ;;  %v3515_v28 = vsel %vm3032_vm0, %v3514_v46, %v6583_v49  ;;  %v3526_v14 = vrot.slane %v6604_v8, 4 }
 0x679   : > { %v3561_v49 = vrot.slane %v3560_v22, 4  ;;  %v3635_v62 = vrot.slane %v6683_v32, 4  ;;  %v3842_v46 = vrot.slane %v6652_v31, 4 }
 0x67a   : > { %v6689_v2 = vpop.permute.xlu1 %3852  ;;  %v3443_v54 = vmul.f32 %v3441_v7, %v3431_v15  ;;  %v3505_v42 = vadd.f32 %v3503_v23, %v3492_v55  ;;  %v3598_v7 = vrot.slane %v6541_v4, 4  ;;  %v6729_v15 = vpop.permute.xlu0 %3779  ;;  %v3721_v23 = vsel %vm622_vm3, %v6611_v63, %v3720_v50 }
 0x67b   : > { %v3562_v58 = vsel %vm650_vm4, %v3561_v49, %v3560_v22  ;;  %v3951_v22 = vrot.slane %v6594_v59, 4  ;;  %v3831_v63 = vsel %vm7581_vm14, %v6570_v19, %v3830_v16  ;;  %v3843_v51 = vsel %vm622_vm3, %v6652_v31, %v3842_v46 }
 0x67c   : > { %3445 = vrot.lane.b32.xlu1 %v3443_v54, %s7623_s29  ;;  %v3517_v45 = vadd.f32 %v3515_v28, %v3505_v42  ;;  %v3527_v54 = vsel %vm678_vm5, %v3526_v14, %v6604_v8  ;;  %v3599_v39 = vsel %vm622_vm3, %v6541_v4, %v3598_v7  ;;  %v3623_v8 = vrot.slane %v6640_v27, 4  ;;  %s7577_s29 = smov 121  }
 0x67d   : > { %v3601_v13 = vadd.f32 %v3599_v39, %v3589_v9  ;;  %v3709_v4 = vsel %vm7581_vm14, %v6598_v57, %v3708_v60  ;;  %v3732_v57 = vrot.slane %v6589_v24, 4  ;;  %v3647_v7 = vrot.slane %v6650_v38, 4 }
 0x67e   : > { %v3316_v53 = vpop.permute.xlu1 %3315  ;;  %v3529_v0 = vadd.f32 %v3527_v54, %v3517_v45  ;;  %v6742_v18 = vpop.permute.xlu0 %3997  ;;  %v3624_v55 = vsel %vm650_vm4, %v3623_v8, %v6640_v27  ;;  %v3854_v27 = vrot.slane %v6689_v2, 4  ;;  %v3963_v9 = vrot.slane %v6624_v40, 4 }
 0x67f   : > { %v3317_v56 = vrot.slane %v3316_v53, 4  ;;  %v3733_v19 = vsel %vm3006_vm15, %v6589_v24, %v3732_v57  ;;  %v3867_v31 = vrot.slane %v6667_v44, 4  ;;  %v3879_v16 = vrot.slane %v6710_v37, 4 }
 0x681   : > { %v3319_v43 = vsel %vm3318_vm12, %v3317_v56, %v3316_v53  ;;  %vm4048_vm12 = vcmask 818176  }
 0x682   : > { %v3321_v20 = vmul.f32 %v3319_v43, %v3309_v52  ;;  %v3537_v3 = vpop.permute.xlu1 %3536  ;;  %v6748_v43 = vld [vmem:[#allocation3] sm:$0xff]  ;;  %v6761_v10 = vpop.permute.xlu0 %3791 }
 0x683   : > { %v3538_v1 = vrot.slane %v3537_v3, 4  ;;  %v3699_v17 = vmul.f32 %v6748_v43, %v6543_v34  ;;  %v3821_v14 = vmul.f32 %v6748_v43, %v6491_v36  ;;  %v3942_v26 = vmul.f32 %v6748_v43, %v6517_v29 }
 0x684   : > { %3323 = vrot.lane.b32.xlu0 %v3321_v20, %s7622_s15  ;;  %v3745_v36 = vrot.slane %v6609_v47, 4  ;;  %v3855_v29 = vsel %vm3006_vm15, %v6689_v2, %v3854_v27 }
 0x685   : > { %v3539_v11 = vsel %vm3057_vm1, %v3538_v1, %v3537_v3  ;;  %v3611_v3 = vsel %vm3006_vm15, %v6566_v21, %v3610_v41  ;;  %v3711_v42 = vadd.f32 %v3709_v4, %v3699_v17  ;;  %v3636_v21 = vsel %vm3032_vm0, %v3635_v62, %v6683_v32 }
 0x686   : > { %v6716_v30 = vpop.permute.xlu1 %3755  ;;  %v3541_v33 = vadd.f32 %v3539_v11, %v3529_v0  ;;  %v3613_v34 = vadd.f32 %v3611_v3, %v3601_v13  ;;  %v3833_v54 = vadd.f32 %v3831_v63, %v3821_v14  ;;  %v3952_v32 = vsel %vm7581_vm14, %v6594_v59, %v3951_v22  ;;  %v6789_v60 = vpop.permute.xlu0 %4009 }
 0x687   : > { %v3723_v1 = vadd.f32 %v3721_v23, %v3711_v42  ;;  %v3757_v0 = vrot.slane %v6716_v30, 4  ;;  %v3648_v59 = vsel %vm678_vm5, %v3647_v7, %v6650_v38  ;;  %v3746_v2 = vsel %vm650_vm4, %v3745_v36, %v6609_v47 }
 0x688   : > { %v3626_v45 = vadd.f32 %v3624_v55, %v3613_v34  ;;  %v3880_v34 = vsel %vm3032_vm0, %v3879_v16, %v6710_v37  ;;  %v3793_v14 = vrot.slane %v6761_v10, 4 }
 0x689   : > { %v3735_v24 = vadd.f32 %v3733_v19, %v3723_v1  ;;  %v3758_v13 = vsel %vm3032_vm0, %v3757_v0, %v6716_v30  ;;  %v3781_v30 = vrot.slane %v6729_v15, 4 }
 0x68a   : > { %v6722_v61 = vpop.permute.xlu1 %3973  ;;  %v3638_v49 = vadd.f32 %v3636_v21, %v3626_v45  ;;  %v3914_v4 = vpop.permute.xlu0 %3913  ;;  %v3794_v0 = vsel %vm706_vm6, %v3793_v14, %v6761_v10 }
 0x68b   : > { %v3748_v62 = vadd.f32 %v3746_v2, %v3735_v24  ;;  %v3975_v17 = vrot.slane %v6722_v61, 4  ;;  %v3782_v27 = vsel %vm3057_vm1, %v3781_v30, %v6729_v15  ;;  %v3999_v15 = vrot.slane %v6742_v18, 4 }
 0x68c   : > { %v7701_v30 = vmov 33  }
 0x68d   : > { %v3760_v23 = vadd.f32 %v3758_v13, %v3748_v62  ;;  %v6837_v62 = vld [vmem:[%s7429_s2] sm:$0xf] }
 0x68e   : > { %v3549_v35 = vpop.permute.xlu1 %3548  ;;  %v3925_v1 = vpop.permute.xlu0 %3924 }
 0x68f   : > { %v3550_v6 = vrot.slane %v3549_v35, 4 }
 0x691   : > { %v3551_v53 = vsel %vm706_vm6, %v3550_v6, %v3549_v35  ;;  %v3659_v35 = vrot.slane %v6698_v5, 4  ;;  %v3845_v6 = vadd.f32 %v3843_v51, %v3833_v54  ;;  %v3915_v51 = vrot.slane %v3914_v4, 4 }
 0x692   : > { %v3553_v56 = vadd.f32 %v3551_v53, %v3541_v33  ;;  %v3768_v52 = vpop.permute.xlu1 %3767  ;;  %v3954_v33 = vadd.f32 %v3952_v32, %v3942_v26  ;;  %v3964_v53 = vsel %vm622_vm3, %v6624_v40, %v3963_v9  ;;  %v3926_v54 = vrot.slane %v3925_v1, 4 }
 0x693   : > { %v3769_v39 = vrot.slane %v3768_v52, 4  ;;  %v3857_v50 = vadd.f32 %v3855_v29, %v3845_v6  ;;  %v3660_v38 = vsel %vm3057_vm1, %v3659_v35, %v6698_v5 }
 0x694   : > { %v3564_v20 = vmul.f32 %v3562_v58, %v3553_v56  ;;  %v3650_v58 = vadd.f32 %v3648_v59, %v3638_v49  ;;  %v3868_v56 = vsel %vm650_vm4, %v3867_v31, %v6667_v44  ;;  %v3966_v57 = vadd.f32 %v3964_v53, %v3954_v33 }
 0x695   : > { %v3770_v47 = vsel %vm678_vm5, %v3769_v39, %v3768_v52  ;;  %v3870_v3 = vadd.f32 %v3868_v56, %v3857_v50  ;;  %v3976_v52 = vsel %vm3006_vm15, %v6722_v61, %v3975_v17  ;;  %v3928_v31 = vsel %vm3927_vm10, %v3926_v54, %v3925_v1 }
 0x696   : > { %3566 = vrot.lane.b32.xlu0 %v3564_v20, %s7698_s30  ;;  %v6764_v28 = vpop.permute.xlu1 %3985  ;;  %v3662_v55 = vadd.f32 %v3660_v38, %v3650_v58  ;;  %v3772_v22 = vadd.f32 %v3770_v47, %v3760_v23  ;;  %v3978_v61 = vadd.f32 %v3976_v52, %v3966_v57  ;;  %v4000_v59 = vsel %vm3032_vm0, %v3999_v15, %v6742_v18  ;;  %v4046_v18 = vpop.permute.xlu0 %4045  ;;  %v4068_v15 = vld [vmem:[%s7434_s7 + $0x18] sm:$0xff] }
 0x697   : > { %v3987_v46 = vrot.slane %v6764_v28, 4  ;;  %v3882_v45 = vadd.f32 %v3880_v34, %v3870_v3  ;;  %v4011_v39 = vrot.slane %v6789_v60, 4  ;;  %v4047_v38 = vrot.slane %v4046_v18, 4 }
 0x698   : > { %v3784_v32 = vadd.f32 %v3782_v27, %v3772_v22  ;;  %v7702_v3 = vmov 17   ;;  %v7703_v23 = vmov 25   ;;  %vm1830_vm10 = vcmask 1014784  }
 0x699   : > { %v3988_v37 = vsel %vm650_vm4, %v3987_v46, %v6764_v28  ;;  %v3916_v28 = vsel %vm706_vm6, %v3915_v51, %v3914_v4  ;;  %v4012_v10 = vsel %vm678_vm5, %v4011_v39, %v6789_v60  ;;  %v4049_v60 = vsel %vm4048_vm12, %v4047_v38, %v4046_v18  ;;  %v4071_v39 = vld [vmem:[%s7434_s7 + $0x30] sm:$0xff]  ;;  %v4080_v38 = vld [vmem:[%s7434_s7 + $0x78] sm:$0xff] }
 0x69a   : > { %v3670_v11 = vpop.permute.xlu1 %3669  ;;  %v3990_v36 = vadd.f32 %v3988_v37, %v3978_v61  ;;  %v3796_v6 = vadd.f32 %v3794_v0, %v3784_v32  ;;  %v4070_v0 = vld [vmem:[%s7434_s7 + $0x28] sm:$0xff]  ;;  %v4075_v18 = vld [vmem:[%s7434_s7 + $0x50] sm:$0xff]  ;;  %vm7590_vm12 = vcmask 998400  }
 0x69b   : > { %v3671_v41 = vrot.slane %v3670_v11, 4 }
 0x69c   : > { %v4002_v33 = vadd.f32 %v4000_v59, %v3990_v36  ;;  %v4069_v59 = vld [vmem:[%s7434_s7 + $0x20] sm:$0xff] }
 0x69d   : > { %v3672_v40 = vsel %vm706_vm6, %v3671_v41, %v3670_v11 }
 0x69e   : > { %v3890_v8 = vpop.permute.xlu1 %3889  ;;  %v3674_v42 = vadd.f32 %v3672_v40, %v3662_v55  ;;  %v4014_v13 = vadd.f32 %v4012_v10, %v4002_v33  ;;  %v7704_v55 = vmov 34  }
 0x69f   : > { %v3891_v20 = vrot.slane %v3890_v8, 4 }
 0x6a1   : > { %v3892_v63 = vsel %vm678_vm5, %v3891_v20, %v3890_v8  ;;  %v7700_v20 = vmov 16  }
 0x6a2   : > { %v3681_v44 = vpop.permute.xlu1 %3680  ;;  %v3894_v49 = vadd.f32 %v3892_v63, %v3882_v45 }
 0x6a3   : > { %v3682_v5 = vrot.slane %v3681_v44, 4 }
 0x6a5   : > { %v3684_v21 = vsel %vm3683_vm13, %v3682_v5, %v3681_v44  ;;  %v7705_v44 = vmov 26   ;;  %v2980_v5 = vpop.permute.xlu0 %2979  ;;  %vm1583_vm13 = vcmask 1022976  }
 0x6a6   : > { %v3686_v26 = vmul.f32 %v3684_v21, %v3674_v42  ;;  %v3902_v7 = vpop.permute.xlu1 %3901  ;;  %v2981_v22 = vrot.slane %v2980_v5, 4 }
 0x6a7   : > { %v3903_v19 = vrot.slane %v3902_v7, 4 }
 0x6a8   : > { %3688 = vrot.lane.b32.xlu1 %v3686_v26, %s7699_s26  ;;  %v2982_v63 = vsel %vm7581_vm14, %v2980_v5, %v2981_v22 }
 0x6a9   : > { %v3904_v11 = vsel %vm3057_vm1, %v3903_v19, %v3902_v7  ;;  %v3004_v52 = vpop.permute.xlu0 %3003 }
 0x6aa   : > { %v3906_v9 = vadd.f32 %v3904_v11, %v3894_v49  ;;  %v3803_v29 = vpop.permute.xlu1 %3802  ;;  %v3005_v1 = vrot.slane %v3004_v52, 4  ;;  %v4066_v49 = vld [vmem:[%s7434_s7 + $0x8] sm:$0xff]  ;;  %v4065_v11 = vld [vmem:[%s7434_s7] sm:$0xff] }
 0x6ab   : > { %v3804_v35 = vrot.slane %v3803_v29, 4 }
 0x6ac   : > { %v3918_v24 = vadd.f32 %v3916_v28, %v3906_v9  ;;  %v3007_v7 = vsel %vm3006_vm15, %v3004_v52, %v3005_v1  ;;  %v4523_v9 = vpack.c.bf16 %v4068_v15, %v4066_v49  ;;  %v4072_v28 = vld [vmem:[%s7434_s7 + $0x38] sm:$0xff]  ;;  %vm3081_vm15 = vcmask 752640  }
 0x6ad   : > { %v3806_v41 = vsel %vm3805_vm11, %v3804_v35, %v3803_v29  ;;  %v3030_v51 = vpop.permute.xlu0 %3029  ;;  %v4067_v29 = vld [vmem:[%s7434_s7 + $0x10] sm:$0xff]  ;;  %vm2082_vm11 = vcmask 1006592  }
 0x6ae   : > { %v3808_v58 = vmul.f32 %v3806_v41, %v3796_v6  ;;  %v4022_v50 = vpop.permute.xlu1 %4021  ;;  %v3930_v8 = vmul.f32 %v3928_v31, %v3918_v24  ;;  %v3031_v61 = vrot.slane %v3030_v51, 4  ;;  %v4525_v24 = vpack.c.bf16 %v4067_v29, %v4065_v11  ;;  %v4074_v41 = vld [vmem:[%s7434_s7 + $0x48] sm:$0xff]  ;;  %4524 = vmatprep.subr.bf16.mxu1 %v4523_v9  ;;  %v4079_v9 = vld [vmem:[%s7434_s7 + $0x70] sm:$0xff] }
 0x6af   : > { %v4023_v2 = vrot.slane %v4022_v50, 4  ;;  %v4527_v6 = vpack.c.bf16 %v4072_v28, %v4070_v0 }
 0x6b0   : > { %3932 = vrot.lane.b32.xlu1 %v3930_v8, %s7577_s29  ;;  %3810 = vrot.lane.b32.xlu0 %v3808_v58, %s7579_s17  ;;  %v3033_v36 = vsel %vm3032_vm0, %v3031_v61, %v3030_v51  ;;  %v4076_v58 = vld [vmem:[%s7434_s7 + $0x58] sm:$0xff]  ;;  %v4529_v8 = vpack.c.bf16 %v4071_v39, %v4069_v59  ;;  %vm1077_vm0 = vcmask 1039360   ;;  %s5054_s17 = smov 67  }
 0x6b1   : > { %v4024_v53 = vsel %vm3057_vm1, %v4023_v2, %v4022_v50  ;;  %v3055_v31 = vpop.permute.xlu0 %3054  ;;  %4526 = vmatpush1.bf16.msra.mxu1 %v4525_v24  ;;  %v4531_v10 = vpack.c.bf16 %v4076_v58, %v4074_v41  ;;  %v7706_v58 = vmov 42  }
 0x6b2   : > { %v4035_v56 = vpop.permute.xlu1 %4034  ;;  %v4026_v4 = vadd.f32 %v4024_v53, %v4014_v13  ;;  %v3056_v2 = vrot.slane %v3055_v31, 4  ;;  %4528 = vmatprep.subr.bf16.mxu1 %v4527_v6  ;;  %v4073_v53 = vld [vmem:[%s7434_s7 + $0x40] sm:$0xff] }
 0x6b3   : > { %v4036_v16 = vrot.slane %v4035_v56, 4 }
 0x6b4   : > { %2104 = vperm.xlu1 %4833, %v6837_v62  }
 0x6b5   : > { %v4037_v17 = vsel %vm706_vm6, %v4036_v16, %v4035_v56  ;;  %v4078_v56 = vld [vmem:[%s7434_s7 + $0x68] sm:$0xff]  ;;  %4530 = vmatpush1.bf16.msra.mxu1 %v4529_v8  ;;  %v7708_v8 = vmov 35  }
 0x6b6   : > { %v4039_v47 = vadd.f32 %v4037_v17, %v4026_v4  ;;  %v2970_v46 = vpop.permute.xlu1 %2969  ;;  %v3079_v4 = vpop.permute.xlu0 %3078  ;;  %v4533_v17 = vpack.c.bf16 %v4075_v18, %v4073_v53  ;;  %4532 = vmatprep.subr.bf16.mxu1 %v4531_v10  ;;  %v7710_v10 = vmov 43   ;;  %v7711_v53 = vmov 61  }
 0x6b7   : > { %v2972_v34 = vmul.f32 %v6748_v43, %v2970_v46  ;;  %v7712_v18 = vmov 60  }
 0x6b8   : > { %v4051_v40 = vmul.f32 %v4049_v60, %v4039_v47  ;;  %4835 = vset.pattern.permute.xlu1 %v7700_v20  ;;  %v3058_v47 = vsel %vm3057_vm1, %v3056_v2, %v3055_v31  ;;  %v4535_v60 = vpack.c.bf16 %v4080_v38, %v4078_v56  ;;  %vm1330_vm1 = vcmask 1031168  }
 0x6b9   : > { %2356 = vperm.xlu1 %4835, %v6837_v62   ;;  %v2984_v27 = vadd.f32 %v2982_v63, %v2972_v34  ;;  %4534 = vmatpush1.bf16.msra.mxu1 %v4533_v17  ;;  %v7709_v2 = vmov 52   ;;  %v7714_v38 = vmov 44  }
 0x6ba   : > { %4053 = vrot.lane.b32.xlu0 %v4051_v40, %s7694_s10  ;;  %v2992_v57 = vpop.permute.xlu1 %2991  ;;  %4536 = vmatprep.subr.bf16.mxu1 %v4535_v60 }
 0x6bb   : > { %v2993_v42 = vrot.slane %v2992_v57, 4 }
 0x6bd   : > { %4836 = vset.pattern.permute.xlu1 %v7701_v30  ;;  %v2994_v21 = vsel %vm622_vm3, %v2992_v57, %v2993_v42 }
 0x6be   : > { %2158 = vperm.xlu1 %4836, %v6837_v62   ;;  %2131 = vperm.xlu0 %4834, %v6837_v62   ;;  %v3017_v14 = vpop.permute.xlu1 %3016  ;;  %v2996_v45 = vadd.f32 %v2994_v21, %v2984_v27 }
 0x6bf   : > { %v3018_v26 = vrot.slane %v3017_v14, 4 }
 0x6c0   : > { %v3009_v54 = vadd.f32 %v3007_v7, %v2996_v45 }
 0x6c1   : > { %v3019_v37 = vsel %vm650_vm4, %v3017_v14, %v3018_v26 }
 0x6c2   : > { %4838 = vset.pattern.permute.xlu1 %v7702_v3  ;;  %4837 = vset.pattern.permute.xlu0 %v7703_v23  ;;  %v3043_v19 = vpop.permute.xlu1 %3042  ;;  %v3021_v32 = vadd.f32 %v3019_v37, %v3009_v54  ;;  %v3080_v3 = vrot.slane %v3079_v4, 4 }
 0x6c3   : > { %2608 = vperm.xlu1 %4838, %v6837_v62   ;;  %2383 = vperm.xlu0 %4837, %v6837_v62   ;;  %v3044_v43 = vrot.slane %v3043_v19, 4 }
 0x6c4   : > { %v3035_v35 = vadd.f32 %v3033_v36, %v3021_v32  ;;  %v3082_v46 = vsel %vm3081_vm15, %v3080_v3, %v3079_v4  ;;  %vm7589_vm15 = vcmask 990208   ;;  %v4077_v36 = vld [vmem:[%s7434_s7 + $0x60] sm:$0xff] }
 0x6c5   : > { %v3045_v33 = vsel %vm678_vm5, %v3044_v43, %v3043_v19  ;;  %v4537_v29 = vpack.c.bf16 %v4079_v9, %v4077_v36 }
 0x6c6   : > { %v3068_v50 = vpop.permute.xlu1 %3067  ;;  %v3047_v13 = vadd.f32 %v3045_v33, %v3035_v35 }
 0x6c7   : > { %4839 = vset.pattern.permute.xlu1 %v7704_v55  ;;  %4840 = vset.pattern.permute.xlu0 %v7705_v44  ;;  %v3069_v16 = vrot.slane %v3068_v50, 4 }
 0x6c8   : > { %v3060_v40 = vadd.f32 %v3058_v47, %v3047_v13  ;;  %4538 = vmatpush1.bf16.msra.mxu1 %v4537_v29  ;;  %v7713_v13 = vmov 62   ;;  %v7716_v47 = vmov 69   ;;  %v7723_v29 = vmov 0.0  }
 0x6c9   : > { %v3070_v30 = vsel %vm706_vm6, %v3069_v16, %v3068_v50  ;;  %v7707_v50 = vmov 51   ;;  %v7715_v16 = vmov 8  }
 0x6ca   : > { %v3072_v44 = vadd.f32 %v3070_v30, %v3060_v40  ;;  %v7717_v40 = vmov 0  }
 0x6cc   : > { %v3084_v42 = vmul.f32 %v3082_v46, %v3072_v44  ;;  %v6952_v44 = vld [vmem:[#allocation2] sm:$0xff] }
 0x6e6   : > { %v3202_v20 = vpop.permute.xlu1 %3201 }
 0x6e7   : > { %v3203_v55 = vrot.slane %v3202_v20, 4 }
 0x6e9   : > { %v3204_v22 = vsel %vm1077_vm0, %v3202_v20, %v3203_v55  ;;  %v6945_v20 = vld [vmem:[#allocation2] sm:$0xff] }
 0x6ea   : > { %v3206_v63 = vadd.f32 %v3204_v22, %v3084_v42  ;;  %v7719_v22 = vmov 70  }
 0x6ee   : > { %v3446_v57 = vpop.permute.xlu1 %3445 }
 0x6ef   : > { %v3447_v27 = vrot.slane %v3446_v57, 4 }
 0x6f1   : > { %v3448_v7 = vsel %vm1583_vm13, %v3446_v57, %v3447_v27 }
 0x6f6   : > { %v3324_v23 = vpop.permute.xlu0 %3323 }
 0x6f7   : > { %v3325_v5 = vrot.slane %v3324_v23, 4 }
 0x6f9   : > { %v3326_v52 = vsel %vm1330_vm1, %v3324_v23, %v3325_v5  ;;  %v7718_v23 = vmov 53  }
 0x6fa   : > { %v3328_v1 = vadd.f32 %v3326_v52, %v3206_v63  ;;  %v7720_v63 = vmov 71  }
 0x6fc   : > { %v3450_v37 = vadd.f32 %v3448_v7, %v3328_v1  ;;  %v7721_v1 = vmov 7   ;;  %v6974_v7 = vld [vmem:[#allocation2 + $0x8] sm:$0xf] }
 0x708   : > { %v3567_v34 = vpop.permute.xlu0 %3566 }
 0x709   : > { %v3568_v14 = vrot.slane %v3567_v34, 4 }
 0x70b   : > { %v3569_v51 = vsel %vm1830_vm10, %v3567_v34, %v3568_v14 }
 0x70c   : > { %v3571_v61 = vadd.f32 %v3569_v51, %v3450_v37  ;;  %v7722_v51 = vmov 78  }
 0x71a   : > { %v3689_v21 = vpop.permute.xlu1 %3688 }
 0x71b   : > { %v3690_v45 = vrot.slane %v3689_v21, 4 }
 0x71d   : > { %v3691_v19 = vsel %vm2082_vm11, %v3689_v21, %v3690_v45 }
 0x71e   : > { %v3693_v49 = vadd.f32 %v3691_v19, %v3571_v61  ;;  %v6981_v19 = vld [vmem:[#allocation2 + $0x8] sm:$0xf] }
 0x722   : > { %v3811_v26 = vpop.permute.xlu0 %3810  ;;  %v3933_v32 = vpop.permute.xlu1 %3932 }
 0x723   : > { %v3812_v54 = vrot.slane %v3811_v26, 4  ;;  %v3934_v15 = vrot.slane %v3933_v32, 4 }
 0x725   : > { %v3813_v43 = vsel %vm7590_vm12, %v3811_v26, %v3812_v54  ;;  %v3935_v28 = vsel %vm7589_vm15, %v3933_v32, %v3934_v15  ;;  %vm4169_vm15 = vcmask 1041408   ;;  %vm2823_vm12 = vcmask 556032  }
 0x726   : > { %v3815_v11 = vadd.f32 %v3813_v43, %v3693_v49  ;;  %v6989_v49 = vld [vmem:[#allocation2 + $0x8] sm:$0xf] }
 0x728   : > { %v3937_v35 = vadd.f32 %v3935_v28, %v3815_v11 }
 0x72c   : > { %v4054_v0 = vpop.permute.xlu0 %4053 }
 0x72d   : > { %v4055_v31 = vrot.slane %v4054_v0, 4 }
 0x72f   : > { %v4056_v24 = vsel %vm7581_vm14, %v4054_v0, %v4055_v31  ;;  %vm4087_vm14 = vcmask 293888  }
 0x730   : > { %v4058_v6 = vadd.f32 %v4056_v24, %v3937_v35 }
 0x732   : > { %v4441_v59 = vrot.slane %v4058_v6, 10 }
 0x733   : > { %v2105_v56 = vpop.permute.xlu1 %2104 }
 0x734   : > { %v4063_v39 = vmul.f32 %v4441_v59, %v4058_v6  ;;  %v2112_v14 = vrot.slane %v2105_v56, %v5388_v25 }
 0x736   : > { %v4064_v41 = vmul.f32 1.4142135, %v4063_v39  ;;  %v2114_v26 = vmul.f32 %v2112_v14, %v6945_v20  ;;  %v2115_v54 = vmul.f32 %v2112_v14, %v6974_v7 }
 0x738   : > { %v4082_v33 = vcombine.high %v4064_v41, %v4064_v41  ;;  %4083 = vrot.lane.b32.xlu1 %v4064_v41, %s5052_s4  ;;  %v2357_v17 = vpop.permute.xlu1 %2356 }
 0x739   : > { %v2364_v30 = vrot.slane %v2357_v17, %v5388_v25  ;;  %v7724_v17 = vmov 79  }
 0x73a   : > { %4085 = vrot.lane.b32.xlu0 %v4082_v33, %s5052_s4  ;;  %s7743_s4 = smov 121  }
 0x73b   : > { %v2366_v46 = vmul.f32 %v2364_v30, %v6952_v44  ;;  %v2367_v61 = vmul.f32 %v2364_v30, %v6981_v19 }
 0x73c   : > { %2410 = vperm.xlu1 %4839, %v6837_v62  }
 0x73d   : > { %v2132_v4 = vpop.permute.xlu0 %2131  ;;  %v2159_v55 = vpop.permute.xlu1 %2158 }
 0x73e   : > { %2635 = vperm.xlu0 %4840, %v6837_v62   ;;  %v2139_v60 = vrot.slane %v2132_v4, %v5388_v25  ;;  %v2166_v5 = vrot.slane %v2159_v55, %v5388_v25 }
 0x740   : > { %4841 = vset.pattern.permute.xlu1 %v7706_v58  ;;  %v2141_v3 = vmul.f32 %v2139_v60, %v6945_v20  ;;  %v2168_v42 = vmul.f32 %v2166_v5, %v6945_v20  ;;  %v2142_v37 = vmul.f32 %v2139_v60, %v6974_v7  ;;  %v2169_v32 = vmul.f32 %v2166_v5, %v6974_v7 }
 0x741   : > { %2187 = vperm.xlu1 %4841, %v6837_v62  }
 0x742   : > { %4843 = vset.pattern.permute.xlu0 %v7707_v50  ;;  %v2384_v57 = vpop.permute.xlu0 %2383  ;;  %v2609_v52 = vpop.permute.xlu1 %2608  ;;  %v7006_v50 = vld [vmem:[#allocation2 + $0x4] sm:$0xff] }
 0x743   : > { %2213 = vperm.xlu0 %4843, %v6837_v62   ;;  %v2391_v34 = vrot.slane %v2384_v57, %v5388_v25  ;;  %v2616_v27 = vrot.slane %v2609_v52, %v5388_v25  ;;  %v7036_v52 = vld [vmem:[#allocation2 + $0xc] sm:$0xf] }
 0x745   : > { %4842 = vset.pattern.permute.xlu1 %v7708_v8  ;;  %v2393_v21 = vmul.f32 %v2391_v34, %v6952_v44  ;;  %v2618_v45 = vmul.f32 %v2616_v27, %v6952_v44  ;;  %v2394_v43 = vmul.f32 %v2391_v34, %v6981_v19  ;;  %v2619_v15 = vmul.f32 %v2616_v27, %v6989_v49 }
 0x746   : > { %2662 = vperm.xlu1 %4842, %v6837_v62  }
 0x747   : > { %4846 = vset.pattern.permute.xlu0 %v7709_v2 }
 0x748   : > { %2465 = vperm.xlu0 %4846, %v6837_v62  }
 0x74a   : > { %4844 = vset.pattern.permute.xlu1 %v7710_v10 }
 0x74b   : > { %2439 = vperm.xlu1 %4844, %v6837_v62  }
 0x74c   : > { %4849 = vset.pattern.permute.xlu0 %v7711_v53 }
 0x74d   : > { %2491 = vperm.xlu0 %4849, %v6837_v62  }
 0x74f   : > { %4845 = vset.pattern.permute.xlu1 %v7712_v18 }
 0x750   : > { %2239 = vperm.xlu1 %4845, %v6837_v62  }
 0x751   : > { %4852 = vset.pattern.permute.xlu0 %v7713_v13 }
 0x752   : > { %2743 = vperm.xlu0 %4852, %v6837_v62  }
 0x754   : > { %4847 = vset.pattern.permute.xlu1 %v7714_v38 }
 0x755   : > { %2691 = vperm.xlu1 %4847, %v6837_v62  }
 0x756   : > { %4855 = vset.pattern.permute.xlu0 %v7715_v16  ;;  %v7015_v16 = vld [vmem:[#allocation2 + $0xc] sm:$0xf] }
 0x757   : > { %2595 = vperm.xlu0 %4855, %v6837_v62  }
 0x759   : > { %4848 = vset.pattern.permute.xlu1 %v7716_v47 }
 0x75a   : > { %2265 = vperm.xlu1 %4848, %v6837_v62  }
 0x75b   : > { %4856 = vset.pattern.permute.xlu0 %v7717_v40 }
 0x75c   : > { %587 = vperm.xlu0 %4856, %v6837_v62  }
 0x75e   : > { %4850 = vset.pattern.permute.xlu1 %v7718_v23 }
 0x75f   : > { %2717 = vperm.xlu1 %4850, %v6837_v62  }
 0x760   : > { %2145 = vrot.lane.b32.xlu0 %v2141_v3, %s7679_s28 }
 0x763   : > { %4851 = vset.pattern.permute.xlu1 %v7719_v22 }
 0x764   : > { %2517 = vperm.xlu1 %4851, %v6837_v62   ;;  %2370 = vrot.lane.b32.xlu0 %v2366_v46, %s7688_s19 }
 0x768   : > { %4853 = vset.pattern.permute.xlu1 %v7720_v63  ;;  %2172 = vrot.lane.b32.xlu0 %v2168_v42, %s7620_s16 }
 0x769   : > { %2769 = vperm.xlu1 %4853, %v6837_v62  }
 0x76c   : > { %2397 = vrot.lane.b32.xlu0 %v2393_v21, %s7679_s28  ;;  %v7726_v21 = vmov 80  }
 0x76d   : > { %4854 = vset.pattern.permute.xlu1 %v7721_v1 }
 0x76e   : > { %2343 = vperm.xlu1 %4854, %v6837_v62  }
 0x770   : > { %2622 = vrot.lane.b32.xlu0 %v2618_v45, %s7688_s19 }
 0x772   : > { %2118 = vrot.lane.b32.xlu1 %v2114_v26, %s7688_s19 }
 0x773   : > { %4857 = vset.pattern.permute.xlu1 %v7722_v51 }
 0x776   : > { %2120 = vrot.lane.b32.xlu1 %v2115_v54, %s7688_s19 }
 0x77a   : > { %2147 = vrot.lane.b32.xlu1 %v2142_v37, %s7679_s28  ;;  %v4868_v37 = vld [vmem:[#allocation2 + $0x8] sm:$0xf] }
 0x77e   : > { %2372 = vrot.lane.b32.xlu1 %v2367_v61, %s7688_s19 }
 0x782   : > { %2174 = vrot.lane.b32.xlu1 %v2169_v32, %s7620_s16 }
 0x786   : > { %2399 = vrot.lane.b32.xlu1 %v2394_v43, %s7679_s28 }
 0x78a   : > { %2624 = vrot.lane.b32.xlu1 %v2619_v15, %s7688_s19  ;;  %s7725_s19 = smov 32  }
 0x7aa   : > { %v4084_v11 = vpop.permute.xlu1 %4083 }
 0x7ac   : > { %v4086_v36 = vpop.permute.xlu0 %4085 }
 0x7ad   : > { %v4088_v9 = vsel %vm4087_vm14, %v4084_v11, %v4086_v36  ;;  %vm2319_vm14 = vcmask 539648  }
 0x7ae   : > { %4442 = vmatmul.mubr.msk.f32.vlgmr.msra.gmra.mrb[4].mxu1 %vm706_vm6, %v4088_v9 }
 0x7af   : > { %4240 = vmatprep.mubr.f32.mxu1 %v7723_v29 }
 0x7bb   : > { %v2411_v0 = vpop.permute.xlu1 %2410 }
 0x7bc   : > { %v2418_v28 = vrot.slane %v2411_v0, %v5388_v25  ;;  %v7727_v0 = vld [vmem:[#allocation21_spill] sm:$0xff] }
 0x7bd   : > { %v2636_v31 = vpop.permute.xlu0 %2635 }
 0x7be   : > { %v2420_v35 = vmul.f32 %v2418_v28, %v6952_v44  ;;  %v2421_v24 = vmul.f32 %v2418_v28, %v6981_v19  ;;  %v2643_v6 = vrot.slane %v2636_v31, %v5388_v25  ;;  %v7584_v28 = vrot.slane %v7727_v0, 4 }
 0x7c0   : > { %2426 = vrot.lane.b32.xlu1 %v2421_v24, %s7620_s16  ;;  %2424 = vrot.lane.b32.xlu0 %v2420_v35, %s7620_s16  ;;  %v2188_v59 = vpop.permute.xlu1 %2187  ;;  %v2645_v39 = vmul.f32 %v2643_v6, %v6952_v44  ;;  %v2646_v41 = vmul.f32 %v2643_v6, %v6989_v49  ;;  %v7728_v35 = vld [vmem:[#allocation18_spill] sm:$0xff] }
 0x7c1   : > { %v2195_v33 = vrot.slane %v2188_v59, %v5388_v25  ;;  %v7064_v59 = vld [vmem:[#allocation2 + $0xc] sm:$0xf] }
 0x7c2   : > { %v2214_v58 = vpop.permute.xlu0 %2213 }
 0x7c3   : > { %v2197_v2 = vmul.f32 %v2195_v33, %v7006_v50  ;;  %v2221_v18 = vrot.slane %v2214_v58, %v5388_v25  ;;  %v2198_v47 = vmul.f32 %v2195_v33, %v7015_v16  ;;  %v7731_v33 = vld [vmem:[#allocation20_spill] sm:$0xff] }
 0x7c4   : > { %2651 = vrot.lane.b32.xlu1 %v2646_v41, %s7679_s28  ;;  %2649 = vrot.lane.b32.xlu0 %v2645_v39, %s7679_s28 }
 0x7c5   : > { %v2663_v8 = vpop.permute.xlu1 %2662  ;;  %v2223_v60 = vmul.f32 %v2221_v18, %v7006_v50  ;;  %v2224_v57 = vmul.f32 %v2221_v18, %v7015_v16 }
 0x7c6   : > { %v2670_v10 = vrot.slane %v2663_v8, %v5388_v25 }
 0x7c7   : > { %v2466_v53 = vpop.permute.xlu0 %2465 }
 0x7c8   : > { %2291 = vperm.xlu1 %4857, %v6837_v62   ;;  %2201 = vrot.lane.b32.xlu0 %v2197_v2, %s7690_s1  ;;  %v2672_v13 = vmul.f32 %v2670_v10, %v6952_v44  ;;  %v2673_v56 = vmul.f32 %v2670_v10, %v6989_v49  ;;  %v2473_v22 = vrot.slane %v2466_v53, %v5388_v25  ;;  %v7732_v2 = vld [vmem:[#allocation10_spill] sm:$0xff]  ;;  %v7734_v53 = vld [vmem:[#allocation12_spill] sm:$0xff] }
 0x7c9   : > { %v7073_v10 = vrot.slane %v7732_v2, %v5388_v25  ;;  %v736_v18 = vsel %vm734_vm7, %v7584_v28, %v7734_v53 }
 0x7ca   : > { %v2440_v38 = vpop.permute.xlu1 %2439  ;;  %v2475_v27 = vmul.f32 %v2473_v22, %v7006_v50  ;;  %v2476_v39 = vmul.f32 %v2473_v22, %v7036_v52 }
 0x7cb   : > { %v2447_v30 = vrot.slane %v2440_v38, %v5388_v25  ;;  %7733 = vst [vmem:[#allocation18_spill] sm:$0xff] %v7073_v10 }
 0x7cc   : > { %v2492_v4 = vpop.permute.xlu0 %2491  ;;  %2678 = vrot.lane.b32.xlu1 %v2673_v56, %s7620_s16  ;;  %2676 = vrot.lane.b32.xlu0 %v2672_v13, %s7620_s16  ;;  %s7729_s16 = smov 16   ;;  %v7735_v13 = vld [vmem:[#allocation23_spill] sm:$0xff] }
 0x7cd   : > { %4858 = vset.pattern.permute.xlu1 %v7724_v17  ;;  %v2449_v55 = vmul.f32 %v2447_v30, %v7006_v50  ;;  %v2450_v14 = vmul.f32 %v2447_v30, %v7036_v52  ;;  %v2499_v15 = vrot.slane %v2492_v4, %v5388_v25  ;;  %v7582_v56 = vrot.slane %v7735_v13, 4  ;;  %v7736_v17 = vld [vmem:[#allocation13_spill] sm:$0xff] }
 0x7cf   : > { %v2240_v3 = vpop.permute.xlu1 %2239  ;;  %v2501_v41 = vmul.f32 %v2499_v15, %v7006_v50 }
 0x7d0   : > { %2227 = vrot.lane.b32.xlu1 %v2223_v60, %s7629_s20  ;;  %2203 = vrot.lane.b32.xlu0 %v2198_v47, %s7690_s1  ;;  %v2247_v46 = vrot.slane %v2240_v3, %v5388_v25  ;;  %v4869_v3 = vld [vmem:[#allocation2 + $0xc] sm:$0xf] }
 0x7d1   : > { %v7025_v23 = vpop.permute.xlu0 %2743 }
 0x7d2   : > { %v2249_v42 = vmul.f32 %v2247_v46, %v7006_v50  ;;  %v2250_v11 = vmul.f32 %v2247_v46, %v7015_v16  ;;  %v7737_v46 = vld [vmem:[#allocation14_spill] sm:$0xff] }
 0x7d4   : > { %2543 = vperm.xlu1 %4858, %v6837_v62   ;;  %2453 = vrot.lane.b32.xlu0 %v2449_v55, %s7690_s1  ;;  %v2692_v5 = vpop.permute.xlu1 %2691  ;;  %v807_v55 = vmul.f32 %v4869_v3, %v7073_v10 }
 0x7d5   : > { %v2699_v1 = vrot.slane %v2692_v5, %v5388_v25  ;;  %v790_v5 = vsel %vm788_vm9, %v7582_v56, %v7737_v46 }
 0x7d6   : > { %v7034_v34 = vpop.permute.xlu0 %2595 }
 0x7d7   : > { %v2701_v51 = vmul.f32 %v2699_v1, %v7006_v50 }
 0x7d8   : > { %2229 = vrot.lane.b32.xlu0 %v2224_v57, %s7629_s20  ;;  %2253 = vrot.lane.b32.xlu1 %v2249_v42, %s7725_s19  ;;  %v2502_v57 = vmul.f32 %v2499_v15, %v7036_v52  ;;  %v2751_v15 = vrot.slane %v7025_v23, %v5388_v25  ;;  %v7741_v23 = vld [vmem:[#allocation36_spill] sm:$0xff] }
 0x7d9   : > { %v2266_v63 = vpop.permute.xlu1 %2265  ;;  %4859 = vset.pattern.permute.xlu1 %v7726_v21 }
 0x7da   : > { %v2273_v54 = vrot.slane %v2266_v63, %v5388_v25 }
 0x7db   : > { %v588_v45 = vpop.permute.xlu0 %587 }
 0x7dc   : > { %v7045_v26 = vrot.slane %v588_v45, %v5388_v25  ;;  %2455 = vrot.lane.b32.xlu0 %v2450_v14, %s7690_s1  ;;  %2479 = vrot.lane.b32.xlu1 %v2475_v27, %s7629_s20  ;;  %v2275_v36 = vmul.f32 %v2273_v54, %v7006_v50  ;;  %v2276_v22 = vmul.f32 %v2273_v54, %v7015_v16  ;;  %v7739_v45 = vld [vmem:[#allocation37_spill] sm:$0xff]  ;;  %v4871_v54 = vld [vmem:[%s7430_s3 + $0x8] sm:$0xff] }
 0x7de   : > { %v598_v61 = vmul.f32 %v4868_v37, %v7045_v26  ;;  %v2718_v32 = vpop.permute.xlu1 %2717  ;;  %v2312_v37 = vrot.slane %v4871_v54, %v7739_v45 }
 0x7df   : > { %v2725_v8 = vrot.slane %v2718_v32, %v5388_v25  ;;  %v7740_v32 = vld [vmem:[#allocation34_spill] sm:$0xff] }
 0x7e0   : > { %v627_v43 = vadd.f32 %v5603_v48, %v598_v61  ;;  %2795 = vperm.xlu1 %4859, %v6837_v62   ;;  %2705 = vrot.lane.b32.xlu0 %v2701_v51, %s7690_s1  ;;  %v7730_v62 = vld [vmem:[#allocation22_spill] sm:$0xff] }
 0x7e1   : > { %v7583_v6 = vrot.slane %v7730_v62, 4  ;;  %v2727_v30 = vmul.f32 %v2725_v8, %v7006_v50  ;;  %v2728_v14 = vmul.f32 %v2725_v8, %v7064_v59  ;;  %v2754_v8 = vmul.f32 %v2751_v15, %v7064_v59 }
 0x7e2   : > { %v655_v9 = vadd.f32 %v5616_v12, %v627_v43  ;;  %v2099_v43 = vrot.slane %v7740_v32, %v5388_v25 }
 0x7e3   : > { %v2518_v31 = vpop.permute.xlu1 %2517  ;;  %v763_v47 = vsel %vm761_vm8, %v7583_v6, %v7736_v17 }
 0x7e4   : > { %v683_v24 = vadd.f32 %v7728_v35, %v655_v9  ;;  %2255 = vrot.lane.b32.xlu0 %v2250_v11, %s7725_s19  ;;  %2279 = vrot.lane.b32.xlu1 %v2275_v36, %s7729_s16  ;;  %v2525_v21 = vrot.slane %v2518_v31, %v5388_v25  ;;  %v2146_v36 = vpop.permute.xlu0 %2145 }
 0x7e5   : > { %4860 = vset.pattern.permute.xlu1 %v7717_v40  ;;  %v2702_v40 = vmul.f32 %v2699_v1, %v7064_v59  ;;  %v4870_v1 = vld [vmem:[%s7430_s3] sm:$0xff] }
 0x7e6   : > { %v711_v58 = vadd.f32 %v7731_v33, %v683_v24  ;;  %v2308_v51 = vrot.slane %v4870_v1, %v7739_v45  ;;  %v2527_v11 = vmul.f32 %v2525_v21, %v7006_v50  ;;  %v2753_v24 = vmul.f32 %v2751_v15, %v7006_v50 }
 0x7e7   : > { %v2528_v2 = vmul.f32 %v2525_v21, %v7036_v52  ;;  %v2560_v53 = vrot.slane %v4870_v1, %v7741_v23 }
 0x7e8   : > { %v740_v38 = vadd.f32 %v736_v18, %v711_v58  ;;  %2481 = vrot.lane.b32.xlu0 %v2476_v39, %s7629_s20  ;;  %2505 = vrot.lane.b32.xlu1 %v2501_v41, %s7725_s19  ;;  %v2770_v4 = vpop.permute.xlu1 %2769  ;;  %v2315_v9 = vcombine.low %v2308_v51, %v2312_v37  ;;  %v2102_v41 = vmul.f32 %v2099_v43, %v6974_v7  ;;  %v2371_v3 = vpop.permute.xlu0 %2370 }
 0x7e9   : > { %v2564_v18 = vrot.slane %v4871_v54, %v7741_v23  ;;  %v2101_v7 = vmul.f32 %v2099_v43, %v6945_v20  ;;  %v4436_v20 = vld [vmem:[%s7430_s3 + $0x10] ss:$0 sm:$0xff]  ;;  %v2374_v21 = vrot.slane %v2371_v3, 4 }
 0x7ea   : > { %v767_v60 = vadd.f32 %v763_v47, %v740_v38 }
 0x7ec   : > { %v794_v42 = vadd.f32 %v790_v5, %v767_v60  ;;  %2707 = vrot.lane.b32.xlu0 %v2702_v40, %s7690_s1  ;;  %2731 = vrot.lane.b32.xlu1 %v2727_v30, %s7629_s20  ;;  %v2149_v30 = vrot.slane %v2146_v36, 4  ;;  %s404_s1 = sand.u32 1, %s4928_s22  }
 0x7ed   : > { %v2344_v63 = vpop.permute.xlu1 %2343  ;;  %s4431_s30 = sshll.u32 %s404_s1, 4 }
 0x7ee   : > { %v7098_v27 = vadd.f32 %v807_v55, %v794_v42  ;;  %v2351_v40 = vrot.slane %v2344_v63, %v5388_v25  ;;  %v2777_v55 = vrot.slane %v2770_v4, %v5388_v25  ;;  %v4437_v4 = vld [vmem:[%s7430_s3 + $0x18] ss:$0 sm:$0xff]  ;;  %s406_s26 = scalar_lea.vmem [#allocation4], %s4431_s30 }
 0x7ef   : > { %v2819_v37 = vcombine.low %v4436_v20, %v4437_v4  ;;  %s4368_s18 = sshll.u32 %s406_s26, 4  ;;  %s7387_s18 = int_to_ptr.vmem [resolvable:$true] %s4368_s18 }
 0x7f0   : > { %7738 = vst [vmem:[#allocation10_spill] sm:$0xff] %v7098_v27  ;;  %2281 = vrot.lane.b32.xlu0 %v2276_v22, %s7729_s16  ;;  %2507 = vrot.lane.b32.xlu1 %v2502_v57, %s7725_s19  ;;  %v2567_v57 = vcombine.low %v2560_v53, %v2564_v18  ;;  %v2354_v22 = vmul.f32 %v2351_v40, %v6981_v19 }
 0x7f1   : > { %v2119_v61 = vpop.permute.xlu1 %2118  ;;  %v2779_v19 = vmul.f32 %v2777_v55, %v7006_v50  ;;  %v2353_v32 = vmul.f32 %v2351_v40, %v6952_v44 }
 0x7f2   : > { %v2122_v39 = vrot.slane %v2119_v61, 4 }
 0x7f4   : > { %2531 = vrot.lane.b32.xlu0 %v2527_v11, %s7729_s16  ;;  %2733 = vrot.lane.b32.xlu1 %v2728_v14, %s7629_s20  ;;  %s5053_s20 = smov 66  }
 0x7f5   : > { %v2121_v31 = vpop.permute.xlu1 %2120 }
 0x7f6   : > { %v2123_v58 = vrot.slane %v2121_v31, 4  ;;  %v2129_v17 = vadd.f32 %v2121_v31, %v2102_v41 }
 0x7f8   : > { %v2124_v38 = vsel %vm620_vm2, %v2122_v39, %v2123_v58  ;;  %2757 = vrot.lane.b32.xlu0 %v2753_v24, %s7725_s19  ;;  %2316 = vrot.lane.b32.xlu1 %v2315_v9, %s5053_s20  ;;  %s4455_s20 = sshll.u32 %s5143_s25, 8  ;;  %s4874_s25 = scalar_lea.vmem %s7387_s18, 256 }
 0x7f9   : > { %v2125_v47 = vsel %vm622_vm3, %v2119_v61, %v2124_v38  ;;  %v2148_v60 = vpop.permute.xlu1 %2147  ;;  %v2780_v61 = vmul.f32 %v2777_v55, %v7064_v59  ;;  %p4875_p11 = scmp.ne.s32.totalorder %s7387_s18, %s4874_s25 }
 0x7fa   : > { %v2150_v46 = vrot.slane %v2148_v60, 4  ;;  %v7130_v5 = vadd.f32 %v2148_v60, %v2129_v17  ;;  %v2128_v63 = vadd.f32 %v2125_v47, %v2101_v7 }
 0x7fb   : > { %p4876_p12 = pnand %p4875_p11, %p5160_p5 }
 0x7fc   : > { %v2151_v42 = vsel %vm620_vm2, %v2149_v30, %v2150_v46  ;;  %2533 = vrot.lane.b32.xlu0 %v2528_v2, %s7729_s16  ;;  %2759 = vrot.lane.b32.xlu1 %v2754_v8, %s7725_s19 }
 0x7fd   : > { %v2373_v14 = vpop.permute.xlu1 %2372  ;;  %v2152_v1 = vsel %vm650_vm4, %v2146_v36, %v2151_v42  ;;  %v2173_v36 = vpop.permute.xlu0 %2172  ;;  %p4877_p13 = pneg %p4876_p12 }
 0x7fe   : > { %v2375_v45 = vrot.slane %v2373_v14, 4  ;;  %v7144_v51 = vadd.f32 %v2373_v14, %v2354_v22  ;;  %v7146_v54 = vadd.f32 %v2152_v1, %v2128_v63 }
 0x800   : > { %v2376_v43 = vsel %vm620_vm2, %v2374_v21, %v2375_v45  ;;  %2783 = vrot.lane.b32.xlu0 %v2779_v19, %s7729_s16  ;;  %2568 = vrot.lane.b32.xlu1 %v2567_v57, %s5054_s17  ;;  %v2176_v21 = vrot.slane %v2173_v36, 4  ;;  %s7385_s17 = scalar_lea.hbm %s7439_s12, %s4455_s20 }
 0x801   : > { %v2377_v15 = vsel %vm622_vm3, %v2371_v3, %v2376_v43  ;;  %v2398_v9 = vpop.permute.xlu0 %2397  ;;  %v2175_v31 = vpop.permute.xlu1 %2174 }
 0x802   : > { %v7153_v11 = vadd.f32 %v2377_v15, %v2353_v32  ;;  %v2177_v20 = vrot.slane %v2175_v31, 4  ;;  %v2603_v32 = vrot.slane %v7034_v34, %v5388_v25  ;;  %v2401_v43 = vrot.slane %v2398_v9, 4 }
 0x804   : > { %2785 = vrot.lane.b32.xlu0 %v2780_v61, %s7729_s16  ;;  %2820 = vrot.lane.b32.xlu1 %v2819_v37, %s5055_s23  ;;  %v2178_v1 = vsel %vm620_vm2, %v2176_v21, %v2177_v20  ;;  %v2605_v13 = vmul.f32 %v2603_v32, %v6952_v44  ;;  %v2606_v0 = vmul.f32 %v2603_v32, %v6989_v49 }
 0x805   : > { %v2623_v24 = vpop.permute.xlu0 %2622  ;;  %v2400_v41 = vpop.permute.xlu1 %2399  ;;  %v2179_v28 = vsel %vm678_vm5, %v2173_v36, %v2178_v1 }
 0x806   : > { %v2402_v14 = vrot.slane %v2400_v41, 4  ;;  %v2626_v56 = vrot.slane %v2623_v24, 4  ;;  %v2408_v1 = vadd.f32 %v2400_v41, %v7144_v51 }
 0x808   : > { %v2403_v6 = vsel %vm620_vm2, %v2401_v43, %v2402_v14  ;;  %v2183_v14 = vadd.f32 %v2175_v31, %v7130_v5 }
 0x809   : > { %v2625_v8 = vpop.permute.xlu1 %2624  ;;  %v2404_v36 = vsel %vm650_vm4, %v2398_v9, %v2403_v6 }
 0x80a   : > { %v2627_v19 = vrot.slane %v2625_v8, 4  ;;  %v2633_v6 = vadd.f32 %v2625_v8, %v2606_v0  ;;  %v2407_v51 = vadd.f32 %v2404_v36, %v7153_v11 }
 0x80c   : > { %v2628_v29 = vsel %vm620_vm2, %v2626_v56, %v2627_v19 }
 0x80d   : > { %v2629_v19 = vsel %vm622_vm3, %v2623_v24, %v2628_v29 }
 0x80e   : > { %v2632_v31 = vadd.f32 %v2629_v19, %v2605_v13 }
 0x832   : > { %v2425_v39 = vpop.permute.xlu0 %2424  ;;  %v2427_v23 = vpop.permute.xlu1 %2426 }
 0x833   : > { %v2428_v45 = vrot.slane %v2425_v39, 4  ;;  %v2429_v37 = vrot.slane %v2427_v23, 4 }
 0x835   : > { %v2430_v27 = vsel %vm620_vm2, %v2428_v45, %v2429_v37  ;;  %v2182_v45 = vadd.f32 %v2179_v28, %v7146_v54  ;;  %v2435_v54 = vadd.f32 %v2427_v23, %v2408_v1 }
 0x836   : > { %v7157_v58 = vpop.permute.xlu0 %2649  ;;  %v7161_v40 = vpop.permute.xlu1 %2651  ;;  %v2431_v37 = vsel %vm678_vm5, %v2425_v39, %v2430_v27 }
 0x837   : > { %v2653_v20 = vrot.slane %v7157_v58, 4  ;;  %v2654_v21 = vrot.slane %v7161_v40, 4 }
 0x839   : > { %v2655_v44 = vsel %vm620_vm2, %v2653_v20, %v2654_v21 }
 0x83a   : > { %v2202_v2 = vpop.permute.xlu0 %2201  ;;  %v2656_v32 = vsel %vm650_vm4, %v7157_v58, %v2655_v44  ;;  %v2660_v58 = vadd.f32 %v7161_v40, %v2633_v6 }
 0x83b   : > { %v2205_v34 = vrot.slane %v2202_v2, 4 }
 0x83d   : > { %v2206_v9 = vsel %vm706_vm6, %v2205_v34, %v2202_v2 }
 0x83e   : > { %v7159_v53 = vpop.permute.xlu0 %2676  ;;  %v2210_v0 = vadd.f32 %v2206_v9, %v2182_v45 }
 0x83f   : > { %v2680_v39 = vrot.slane %v7159_v53, 4 }
 0x842   : > { %v2204_v18 = vpop.permute.xlu0 %2203 }
 0x843   : > { %v2207_v43 = vsel %vm706_vm6, %v2205_v34, %v2204_v18  ;;  %v2434_v18 = vadd.f32 %v2431_v37, %v2407_v51  ;;  %v2659_v34 = vadd.f32 %v2656_v32, %v2632_v31 }
 0x844   : > { %v2211_v41 = vadd.f32 %v2207_v43, %v2183_v14 }
 0x846   : > { %v7163_v38 = vpop.permute.xlu0 %2453 }
 0x847   : > { %v7165_v17 = vpop.permute.xlu1 %2291  ;;  %v2457_v33 = vrot.slane %v7163_v38, 4 }
 0x848   : > { %v2299_v23 = vrot.slane %v7165_v17, %v5388_v25 }
 0x849   : > { %v2458_v8 = vsel %vm706_vm6, %v2457_v33, %v7163_v38 }
 0x84a   : > { %v2230_v7 = vpop.permute.xlu0 %2229 }
 0x84b   : > { %v7167_v47 = vpop.permute.xlu1 %2678 }
 0x84c   : > { %v2681_v29 = vrot.slane %v7167_v47, 4  ;;  %v2687_v6 = vadd.f32 %v7167_v47, %v2660_v58 }
 0x84e   : > { %v7169_v60 = vpop.permute.xlu0 %2455  ;;  %v2682_v13 = vsel %vm620_vm2, %v2680_v39, %v2681_v29 }
 0x84f   : > { %v2228_v30 = vpop.permute.xlu1 %2227  ;;  %v2459_v17 = vsel %vm706_vm6, %v2457_v33, %v7169_v60  ;;  %v2683_v1 = vsel %vm678_vm5, %v7159_v53, %v2682_v13  ;;  %v2302_v33 = vmul.f32 %v2299_v23, %v7015_v16 }
 0x850   : > { %v2231_v56 = vrot.slane %v2228_v30, 4  ;;  %v2463_v60 = vadd.f32 %v2459_v17, %v2435_v54 }
 0x852   : > { %v7171_v3 = vpop.permute.xlu0 %2705  ;;  %v2233_v27 = vsel %vm734_vm7, %v2231_v56, %v2230_v7  ;;  %v2232_v11 = vsel %vm734_vm7, %v2231_v56, %v2228_v30 }
 0x853   : > { %v7173_v55 = vpop.permute.xlu1 %2543  ;;  %v2237_v7 = vadd.f32 %v2233_v27, %v2211_v41  ;;  %v2236_v36 = vadd.f32 %v2232_v11, %v2210_v0  ;;  %v2709_v19 = vrot.slane %v7171_v3, 4 }
 0x855   : > { %v2710_v29 = vsel %vm706_vm6, %v2709_v19, %v7171_v3 }
 0x856   : > { %v2256_v46 = vpop.permute.xlu0 %2255 }
 0x857   : > { %v7175_v57 = vpop.permute.xlu1 %2253 }
 0x858   : > { %v2257_v49 = vrot.slane %v7175_v57, 4 }
 0x85a   : > { %v7177_v22 = vpop.permute.xlu0 %2481  ;;  %v2259_v2 = vsel %vm761_vm8, %v2257_v49, %v2256_v46  ;;  %v2258_v38 = vsel %vm761_vm8, %v2257_v49, %v7175_v57  ;;  %v2462_v46 = vadd.f32 %v2458_v8, %v2434_v18  ;;  %v2301_v57 = vmul.f32 %v2299_v23, %v7006_v50 }
 0x85b   : > { %v7179_v42 = vpop.permute.xlu1 %2479  ;;  %v2263_v56 = vadd.f32 %v2259_v2, %v2237_v7  ;;  %v2262_v37 = vadd.f32 %v2258_v38, %v2236_v36 }
 0x85c   : > { %v2483_v20 = vrot.slane %v7179_v42, 4 }
 0x85e   : > { %v7181_v4 = vpop.permute.xlu0 %2707  ;;  %v2485_v44 = vsel %vm734_vm7, %v2483_v20, %v7177_v22  ;;  %v2484_v53 = vsel %vm734_vm7, %v2483_v20, %v7179_v42  ;;  %v2551_v42 = vrot.slane %v7173_v55, %v5388_v25 }
 0x85f   : > { %v7183_v63 = vpop.permute.xlu1 %2795  ;;  %v2711_v22 = vsel %vm706_vm6, %v2709_v19, %v7181_v4  ;;  %v2489_v54 = vadd.f32 %v2485_v44, %v2463_v60  ;;  %v2488_v31 = vadd.f32 %v2484_v53, %v2462_v46 }
 0x860   : > { %v2715_v0 = vadd.f32 %v2711_v22, %v2687_v6  ;;  %v2554_v36 = vmul.f32 %v2551_v42, %v7036_v52  ;;  %v619_v22 = vrot.slane %v5603_v48, 4  ;;  %v7746_v48 = vld [vmem:[#allocation17_spill] sm:$0xff] }
 0x862   : > { %v2282_v61 = vpop.permute.xlu0 %2281 }
 0x863   : > { %v2280_v15 = vpop.permute.xlu1 %2279 }
 0x864   : > { %v2283_v24 = vrot.slane %v2280_v15, 4 }
 0x866   : > { %v7194_v10 = vpop.permute.xlu0 %2531  ;;  %v2285_v30 = vsel %vm788_vm9, %v2283_v24, %v2282_v61  ;;  %v2284_v40 = vsel %vm788_vm9, %v2283_v24, %v2280_v15  ;;  %v2686_v15 = vadd.f32 %v2683_v1, %v2659_v34  ;;  %v2553_v1 = vmul.f32 %v2551_v42, %v7006_v50 }
 0x867   : > { %v7197_v62 = vpop.permute.xlu1 %2505  ;;  %v2289_v61 = vadd.f32 %v2285_v30, %v2263_v56  ;;  %v2288_v9 = vadd.f32 %v2284_v40, %v2262_v37  ;;  %v2535_v47 = vrot.slane %v7194_v10, 4 }
 0x868   : > { %v2509_v45 = vrot.slane %v7197_v62, 4  ;;  %v2714_v4 = vadd.f32 %v2710_v29, %v2686_v15 }
 0x869   : > { %v2304_v24 = vadd.f32 %v2302_v33, %v2289_v61  ;;  %v2536_v58 = vsel %vm788_vm9, %v2535_v47, %v7194_v10 }
 0x86a   : > { %v7210_v5 = vpop.permute.xlu0 %2757  ;;  %v2510_v16 = vsel %vm761_vm8, %v2509_v45, %v7197_v62  ;;  %v2303_v62 = vadd.f32 %v2301_v57, %v2288_v9 }
 0x86b   : > { %v2732_v28 = vpop.permute.xlu1 %2731  ;;  %v2514_v8 = vadd.f32 %v2510_v16, %v2488_v31  ;;  %v2761_v11 = vrot.slane %v7210_v5, 4  ;;  %v7744_v16 = vld [vmem:[#allocation15_spill] sm:$0xff] }
 0x86c   : > { %v2735_v49 = vrot.slane %v2732_v28, 4  ;;  %v4872_v31 = vld [vmem:[#allocation2] sm:$0xff] }
 0x86d   : > { %v2540_v46 = vadd.f32 %v2536_v58, %v2514_v8  ;;  %v2762_v56 = vsel %vm761_vm8, %v2761_v11, %v7210_v5  ;;  %v7747_v8 = vld [vmem:[#allocation20_spill] sm:$0xff] }
 0x86e   : > { %v2534_v14 = vpop.permute.xlu0 %2533  ;;  %v2736_v41 = vsel %vm734_vm7, %v2735_v49, %v2732_v28 }
 0x86f   : > { %v2508_v21 = vpop.permute.xlu1 %2507  ;;  %v2740_v13 = vadd.f32 %v2736_v41, %v2714_v4  ;;  %v2537_v7 = vsel %vm788_vm9, %v2535_v47, %v2534_v14  ;;  %v2803_v14 = vrot.slane %v7183_v63, %v5388_v25  ;;  %v2555_v44 = vadd.f32 %v2553_v1, %v2540_v46 }
 0x870   : > { %v2511_v51 = vsel %vm761_vm8, %v2509_v45, %v2508_v21  ;;  %v597_v47 = vmul.f32 %v4872_v31, %v7045_v26  ;;  %v675_v4 = vrot.slane %v7746_v48, 4  ;;  %v7764_v31 = vld [vmem:[#allocation28_spill] sm:$0xff] }
 0x871   : > { %v2515_v18 = vadd.f32 %v2511_v51, %v2489_v54  ;;  %v2766_v19 = vadd.f32 %v2762_v56, %v2740_v13  ;;  %v2806_v25 = vmul.f32 %v2803_v14, %v7064_v59  ;;  %v2805_v60 = vmul.f32 %v2803_v14, %v7006_v50  ;;  %v7285_v50 = vld [vmem:[%s7435_s8] sm:$0xff] }
 0x872   : > { %v2784_v27 = vpop.permute.xlu0 %2783  ;;  %v618_v54 = vrot.slane %v7744_v16, 4 }
 0x873   : > { %v2734_v43 = vpop.permute.xlu1 %2733  ;;  %v2787_v2 = vrot.slane %v2784_v27, 4  ;;  %v2541_v34 = vadd.f32 %v2537_v7, %v2515_v18 }
 0x874   : > { %v2737_v3 = vsel %vm734_vm7, %v2735_v49, %v2734_v43  ;;  %v621_v42 = vsel %vm620_vm2, %v618_v54, %v619_v22  ;;  %v7763_v54 = vld [vmem:[#allocation27_spill] sm:$0xff] }
 0x875   : > { %v2741_v20 = vadd.f32 %v2737_v3, %v2715_v0  ;;  %v2788_v10 = vsel %vm788_vm9, %v2787_v2, %v2784_v27  ;;  %v2556_v37 = vadd.f32 %v2554_v36, %v2541_v34  ;;  %v648_v27 = vrot.slane %v5616_v12, 4  ;;  %v7751_v34 = vld [vmem:[#allocation22_spill] sm:$0xff] }
 0x876   : > { %v2786_v38 = vpop.permute.xlu0 %2785  ;;  %v2792_v52 = vadd.f32 %v2788_v10, %v2766_v19  ;;  %v623_v41 = vsel %vm622_vm3, %v7744_v16, %v621_v42  ;;  %v676_v3 = vrot.slane %v7728_v35, 4  ;;  %v7755_v10 = vld [vmem:[#allocation11_spill] sm:$0xff]  ;;  %vm824_vm3 = vcmask 490496  }
 0x877   : > { %v2317_v39 = vpop.permute.xlu1 %2316  ;;  %v2789_v40 = vsel %vm788_vm9, %v2787_v2, %v2786_v38  ;;  %v7752_v38 = vrot.slane %v7751_v34, 4  ;;  %v823_v1 = vrot.slane %v7755_v10, 4  ;;  %v4873_v19 = vld [vmem:[#allocation2 + $0x4] sm:$0xff] }
 0x878   : > { %v2318_v32 = vrot.slane %v2317_v39, 4  ;;  %v2807_v9 = vadd.f32 %v2805_v60, %v2792_v52  ;;  %v677_v0 = vsel %vm620_vm2, %v675_v4, %v676_v3  ;;  %v7760_v60 = vld [vmem:[#allocation30_spill] sm:$0xff] }
 0x87a   : > { %v2320_v55 = vsel %vm2319_vm14, %v2318_v32, %v2317_v39  ;;  %v2324_v23 = vmul.f32 %v2318_v32, %v2304_v24  ;;  %vm2571_vm14 = vcmask 547840   ;;  %v7745_v24 = vld [vmem:[#allocation16_spill] sm:$0xff]  ;;  %v626_v32 = vadd.f32 %v623_v41, %v597_v47 }
 0x87b   : > { %v2323_v21 = vmul.f32 %v2320_v55, %v2303_v62  ;;  %v2760_v28 = vpop.permute.xlu1 %2759  ;;  %v647_v39 = vrot.slane %v7745_v24, 4  ;;  %v704_v62 = vrot.slane %v7747_v8, 4  ;;  %v679_v55 = vsel %vm678_vm5, %v7746_v48, %v677_v0  ;;  %v7766_v0 = vld [vmem:[#allocation35_spill] sm:$0xff] }
 0x87c   : > { %v2763_v30 = vsel %vm761_vm8, %v2761_v11, %v2760_v28  ;;  %2329 = vrot.lane.b32.xlu1 %v2324_v23, %s7742_s0  ;;  %v7748_v11 = vld [vmem:[#allocation19_spill] sm:$0xff]  ;;  %v1828_v47 = vrot.slane %v7764_v31, 4  ;;  %v2080_v8 = vrot.slane %v7766_v0, 4  ;;  %vm7769_vm5 = vcmask 990208  }
 0x87d   : > { %v2767_v17 = vadd.f32 %v2763_v30, %v2741_v20  ;;  %2327 = vrot.lane.b32.xlu0 %v2323_v21, %s7742_s0  ;;  %v649_v18 = vsel %vm620_vm2, %v647_v39, %v648_v27  ;;  %v703_v2 = vrot.slane %v7748_v11, 4  ;;  %v7749_v20 = vld [vmem:[#allocation21_spill] sm:$0xff]  ;;  %v762_v30 = vsel %vm761_vm8, %v7752_v38, %v7751_v34  ;;  %s5056_s0 = smov [#allocation4]  }
 0x87e   : > { %v651_v12 = vsel %vm650_vm4, %v7745_v24, %v649_v18  ;;  %v7750_v21 = vrot.slane %v7749_v20, 4  ;;  %v1581_v27 = vrot.slane %v7763_v54, 4  ;;  %v7765_v24 = vld [vmem:[#allocation32_spill] sm:$0xff]  ;;  %vm7768_vm4 = vcmask 998400  }
 0x87f   : > { %v2569_v45 = vpop.permute.xlu1 %2568  ;;  %v2793_v57 = vadd.f32 %v2789_v40, %v2767_v17  ;;  %v654_v26 = vadd.f32 %v651_v12, %v626_v32  ;;  %v705_v23 = vsel %vm620_vm2, %v703_v2, %v704_v62  ;;  %v7753_v17 = vld [vmem:[#allocation23_spill] sm:$0xff]  ;;  %v7756_v40 = vld [vmem:[#allocation18_spill] sm:$0xff]  ;;  %v1827_v39 = vrot.slane %v7765_v24, 4 }
 0x880   : > { %v2570_v61 = vrot.slane %v2569_v45, 4  ;;  %v707_v35 = vsel %vm706_vm6, %v7748_v11, %v705_v23  ;;  %v735_v28 = vsel %vm734_vm7, %v7750_v21, %v7749_v20  ;;  %v7754_v36 = vrot.slane %v7753_v17, 4 }
 0x881   : > { %v4157_v43 = vpop.f32.mrb[4].mxu1  ;;  %v2808_v6 = vadd.f32 %v2806_v25, %v2793_v57  ;;  %v682_v13 = vadd.f32 %v679_v55, %v654_v26  ;;  %v7757_v57 = vld [vmem:[#allocation10_spill] sm:$0xff]  ;;  %v1829_v12 = vsel %vm620_vm2, %v1827_v39, %v1828_v47  ;;  %v7767_v26 = vld [vmem:[#allocation33_spill] sm:$0xff]  ;;  %vm4166_vm6 = vcmask 15360  }
 0x882   : > { %v2572_v63 = vsel %vm2571_vm14, %v2570_v61, %v2569_v45  ;;  %v2576_v5 = vmul.f32 %v2570_v61, %v2556_v37  ;;  %v4159_v33 = vpop.f32.mrb[5].mxu1  ;;  %v789_v14 = vsel %vm788_vm9, %v7754_v36, %v7753_v17  ;;  %v806_v45 = vmul.f32 %v4873_v19, %v7756_v40  ;;  %v7758_v61 = vld [vmem:[#allocation29_spill] sm:$0xff] }
 0x883   : > { %v2575_v53 = vmul.f32 %v2572_v63, %v2555_v44  ;;  %4443 = vmatprep.subr.msk.mxu1 %vm4169_vm15, %v4159_v33  ;;  %v2821_v49 = vpop.permute.xlu1 %2820  ;;  %v710_v7 = vadd.f32 %v707_v35, %v682_v13  ;;  %v829_v37 = vmul.f32 %v823_v1, %v7757_v57  ;;  %v1074_v52 = vrot.slane %v7758_v61, 4 }
 0x884   : > { %v2822_v15 = vrot.slane %v2821_v49, 4  ;;  %4444 = vmatpush1.msk.msra.mxu1 %vm4169_vm15, %v4157_v43  ;;  %2581 = vrot.lane.b32.xlu1 %v2576_v5, %s7743_s4  ;;  %v7759_v43 = vld [vmem:[#allocation25_spill] sm:$0xff]  ;;  %v825_v63 = vsel %vm824_vm3, %v823_v1, %v7755_v10  ;;  %v2079_v11 = vrot.slane %v7767_v26, 4  ;;  %v1831_v13 = vsel %vm1830_vm10, %v7765_v24, %v1829_v12 }
 0x885   : > { %2579 = vrot.lane.b32.xlu0 %v2575_v53, %s7743_s4  ;;  %v739_v58 = vadd.f32 %v735_v28, %v710_v7  ;;  %v1075_v25 = vrot.slane %v7759_v43, 4  ;;  %v1082_v5 = vadd.f32 %v7759_v43, %v829_v37  ;;  %v1327_v53 = vrot.slane %v7760_v60, 4  ;;  %s4878_s4 = sshll.u32 %s5056_s0, 4  ;;  %s4879_s4 = int_to_ptr.vmem [resolvable:$false] %s4878_s4 }
 0x886   : > { %v2824_v59 = vsel %vm2823_vm12, %v2822_v15, %v2821_v49  ;;  %v2828_v51 = vmul.f32 %v2822_v15, %v2808_v6  ;;  %v7761_v6 = vld [vmem:[#allocation26_spill] sm:$0xff]  ;;  %v2081_v7 = vsel %vm620_vm2, %v2079_v11, %v2080_v8  ;;  %vm7770_vm7 = vcmask 982016   ;;  %s4880_s19 = scalar_lea.vmem %s4879_s4, 512  ;;  %p4881_p0 = scmp.lt.s32.totalorder %s7387_s18, %s4879_s4 }
 0x887   : > { %v2827_v29 = vmul.f32 %v2824_v59, %v2807_v9  ;;  %v766_v46 = vadd.f32 %v762_v30, %v739_v58  ;;  %v1076_v33 = vsel %vm620_vm2, %v1074_v52, %v1075_v25  ;;  %v1328_v15 = vrot.slane %v7761_v6, 4  ;;  %p4882_p1 = scmp.lt.s32.totalorder %s4880_s19, %s4874_s25 }
 0x888   : > { %2833 = vrot.lane.b32.xlu1 %v2828_v51, %s7694_s10  ;;  %v1078_v9 = vsel %vm1077_vm0, %v7758_v61, %v1076_v33  ;;  %v1335_v59 = vadd.f32 %v7761_v6, %v1082_v5  ;;  %v4336_v6 = vld [vmem:[%s7436_s9] sm:$0xff] }
 0x889   : > { %2831 = vrot.lane.b32.xlu0 %v2827_v29, %s7694_s10  ;;  %v793_v56 = vadd.f32 %v789_v14, %v766_v46  ;;  %v1329_v51 = vsel %vm620_vm2, %v1327_v53, %v1328_v15  ;;  %v7762_v29 = vld [vmem:[#allocation31_spill] sm:$0xff]  ;;  %v2083_v46 = vsel %vm2082_vm11, %v7767_v26, %v2081_v7  ;;  %p4883_p2 = por %p4882_p1, %p4881_p0 }
 0x88a   : > { %v1580_v22 = vrot.slane %v7762_v29, 4  ;;  %v1331_v42 = vsel %vm1330_vm1, %v7760_v60, %v1329_v51  ;;  %v1588_v41 = vadd.f32 %v7763_v54, %v1335_v59  ;;  %v7771_v60 = vmov 0.0   ;;  %v7772_v59 = vld [vmem:[#allocation24_spill] sm:$0xff] }
 0x88b   : > { %v808_v44 = vadd.f32 %v806_v45, %v793_v56  ;;  %v493_v51 = vmul.f32 0.00390625, %v7772_v59  ;;  %p4884_p3 = pnand %p4883_p2, %p4877_p13 }
 0x88c   : > { %v1582_v18 = vsel %vm620_vm2, %v1580_v22, %v1581_v27  ;;  %v1835_v62 = vadd.f32 %v7764_v31, %v1588_v41 }
 0x88d   : > { %4164 = vrot.lane.b32.xlu0 %v7285_v50, %s7622_s15  ;;  %v828_v49 = vmul.f32 %v825_v63, %v808_v44  ;;  %v1584_v4 = vsel %vm1583_vm13, %v7762_v29, %v1582_v18  ;;  %v494_v29 = vld [vmem:[%s7438_s11] sm:$0xff] }
 0x88e   : > { %v2087_v35 = vadd.f32 %v7766_v0, %v1835_v62  ;;  %v495_v22 = vadd.f32 %v494_v29, %v493_v51 }
 0x88f   : > { %v1081_v16 = vadd.f32 %v1078_v9, %v828_v49 }
 0x891   : > { %v1334_v3 = vadd.f32 %v1331_v42, %v1081_v16 }
 0x893   : > { %v1587_v55 = vadd.f32 %v1584_v4, %v1334_v3 }
 0x895   : > { %v1834_v20 = vadd.f32 %v1831_v13, %v1587_v55 }
 0x897   : > { %v2086_v14 = vadd.f32 %v2083_v46, %v1834_v20 }
 0x8ee   : > { %v2330_v32 = vpop.permute.xlu1 %2329 }
 0x8ef   : > { %v2328_v48 = vpop.permute.xlu0 %2327  ;;  %v2332_v2 = vrot.slane %v2330_v32, 4  ;;  %v2339_v58 = vadd.f32 %v2330_v32, %v2087_v35 }
 0x8f0   : > { %v2331_v23 = vrot.slane %v2328_v48, 4 }
 0x8f2   : > { %v2333_v21 = vsel %vm620_vm2, %v2331_v23, %v2332_v2 }
 0x8f3   : > { %v2335_v17 = vsel %vm7768_vm4, %v2328_v48, %v2333_v21 }
 0x8f4   : > { %v2338_v57 = vadd.f32 %v2335_v17, %v2086_v14 }
 0x8f6   : > { %v2582_v28 = vpop.permute.xlu1 %2581 }
 0x8f7   : > { %v2584_v34 = vrot.slane %v2582_v28, 4  ;;  %v2580_v38 = vpop.permute.xlu0 %2579  ;;  %v2591_v36 = vadd.f32 %v2582_v28, %v2339_v58 }
 0x8f8   : > { %v2583_v30 = vrot.slane %v2580_v38, 4 }
 0x8fa   : > { %v2585_v56 = vsel %vm620_vm2, %v2583_v30, %v2584_v34  ;;  %v2834_v10 = vpop.permute.xlu1 %2833 }
 0x8fb   : > { %v2587_v1 = vsel %vm7769_vm5, %v2580_v38, %v2585_v56  ;;  %v2836_v19 = vrot.slane %v2834_v10, 4  ;;  %v2843_v40 = vadd.f32 %v2834_v10, %v2591_v36  ;;  %v2832_v45 = vpop.permute.xlu0 %2831 }
 0x8fc   : > { %v2835_v37 = vrot.slane %v2832_v45, 4  ;;  %v2590_v52 = vadd.f32 %v2587_v1, %v2338_v57 }
 0x8fd   : > { %v4439_v61 = vrot.slane %v2843_v40, 10 }
 0x8fe   : > { %v2837_v44 = vsel %vm620_vm2, %v2835_v37, %v2836_v19 }
 0x8ff   : > { %v2853_v43 = vmul.f32 %v4439_v61, %v2843_v40  ;;  %v2839_v25 = vsel %vm7770_vm7, %v2832_v45, %v2837_v44  ;;  %v4165_v63 = vpop.permute.xlu0 %4164 }
 0x900   : > { %v2842_v5 = vadd.f32 %v2839_v25, %v2590_v52  ;;  %4445 = vmatmul.mubr.msk.f32.vlgmr.msra.gmra.mrb[6].mxu1 %vm4166_vm6, %v4165_v63 }
 0x901   : > { %v2855_v33 = vmul.f32 1.4142135, %v2853_v43  ;;  %4329 = vmatprep.mubr.f32.mxu1 %v7771_v60 }
 0x902   : > { %v4438_v53 = vrot.slane %v2842_v5, 10 }
 0x903   : > { %4254 = vrot.lane.b32.xlu0 %v2855_v33, %s5055_s23 }
 0x904   : > { %v2852_v49 = vmul.f32 %v4438_v53, %v2842_v5 }
 0x906   : > { %v2854_v15 = vmul.f32 1.4142135, %v2852_v49 }
 0x907   : > { %4339 = vperm.xlu0 %4856, %v4336_v6  }
 0x908   : > { %v4249_v9 = vcombine.high %v2854_v15, %v2854_v15 }
 0x90a   : > { %4252 = vrot.lane.b32.xlu1 %v4249_v9, %s5055_s23 }
 0x90e   : > { %4250 = vrot.lane.b32.xlu1 %v2854_v15, %s5055_s23  ;;  %s4354_s23 = scalar_lea.sflag [#allocation5], %s404_s1 }
 0x912   : > { %4346 = vperm.xlu1 %4860, %v495_v22  }
 0x975   : > { %v4255_v16 = vpop.permute.xlu0 %4254 }
 0x97c   : > { %v4253_v54 = vpop.permute.xlu1 %4252 }
 0x97d   : > { %v4257_v27 = vsel %vm2823_vm12, %v4253_v54, %v4255_v16 }
 0x97e   : > { %4446 = vmatprep.subr.msk.mxu1 %vm4169_vm15, %v4257_v27 }
 0x980   : > { %v4251_v42 = vpop.permute.xlu1 %4250 }
 0x981   : > { %v4256_v31 = vsel %vm2823_vm12, %v4251_v42, %v4253_v54 }
 0x982   : > { %4447 = vmatpush1.msk.msra.mxu1 %vm4169_vm15, %v4256_v31 }
 0x983   : > { %4448 = vmatmul.mubr.msk.f32.vlgmr.msra.gmra.mrb[6].mxu1 %vm4166_vm6, %v7285_v50 }
 0x986   : > { %v4340_v47 = vpop.permute.xlu0 %4339 }
 0x991   : > { %v4347_v18 = vpop.permute.xlu1 %4346 }
 0xa56   : > { %v4331_v24 = vpop.f32.mrb[6].mxu1 }
 0xa57   : > { %v4342_v39 = vadd.f32 %v4340_v47, %v4331_v24  ;;  %v4333_v41 = vpop.f32.mrb[7].mxu1 }
 0xa58   : > { %v4343_v3 = vadd.f32 %v4340_v47, %v4333_v41 }
 0xa59   : > { %v4349_v32 = vadd.f32 %v4347_v18, %v4342_v39 }
 0xa5a   : > { %v4350_v48 = vadd.f32 %v4347_v18, %v4343_v3 }
 0xa5b   : > { %4351 = vst [vmem:[%s406_s26] sm:$0xff] %v4349_v32 }
 0xa5c   : > { %4352 = vst [vmem:[%s406_s26 + $0x8] sm:$0xff] %v4350_v48 }
 0xa5d   : > { %4887 = shalt.err (!%p4884_p3)
}
 0xa5e   : > { %s4888_s16 = scalar_lea.hbm %s7385_s17, 256  ;;  %s4892_s28 = scalar_lea.hbm %s7439_s12, 512 }
 0xa5f   : > { %p4889_p4 = scmp.ne.s32.totalorder %s7385_s17, %s4888_s16  ;;  %p4893_p9 = scmp.lt.u32.totalorder %s7385_s17, %s7439_s12 }
 0xa60   : > { %p4894_p10 = scmp.lt.u32.totalorder %s4892_s28, %s4888_s16  ;;  %p4896_p12 = scmp.lt.u32.totalorder %s4888_s16, %s7385_s17 }
 0xa61   : > { %p4890_p7 = pnand %p4889_p4, %p5160_p5 }
 0xa62   : > { %p4895_p11 = por %p4894_p10, %p4893_p9 }
 0xa63   : > { %p4891_p8 = pneg %p4890_p7 }
 0xa64   : > { %p4897_p13 = por %p4896_p12, %p4895_p11 }
 0xa66   : > { %p4898_p0 = pnand %p4897_p13, %p4891_p8 }
 0xa68   : > { %4901 = shalt.err (!%p4898_p0)
}
 0xa69   : > { %4541 = dma.vmem_to_hbm [thread:$0]  (%p5160_p5), %s7387_s18, 256, %s7385_s17, %s4354_s23  }
 0xa6a PF: > { %p4547_p1 = scmp.ge.s32.totalorder %s4936_s24, 2  ;;  %s4380_s30 = sand.u32 1, %s4924_s21  }
 0xa6b   : > { %s4381_s20 = scalar_lea.sflag [#allocation5], %s4380_s30 }
 0xa6c   : > { %p4544_p2 = pnand %p4547_p1, %p5164_p6 }
 0xa6e   : > { %4919 = dma.done.wait (!%p4544_p2), %s4381_s20, 256  }
 0xa6f   : > { %4921 = vsyncadd (!%p4544_p2), %s4381_s20, 4294967040  ;;  %s7773_s24 = sld [smem:[#allocation8_spill]]  ;;  %s7774_s26 = sld [smem:[#allocation7_spill]] }
 0xa70   : > { %s7775_s23 = sld [smem:[#allocation9_spill]]  ;;  %s7776_s21 = smov %s4928_s22 }
 0xa75   : > { %p22_p3 = scmp.ge.s32.totalorder %s7773_s24, 4   ;;  %s7777_s22 = smov %s7774_s26 }
 0xa77   :  { %24 = sbr.rel (!%p22_p3) target bundleno = 9 (0x9), region = 103 }
 0xa7e   :  { %4386 = vsyncpa [#allocation5], 1 }
 0xa7f   :  { %4388 = vsyncpa [#allocation5 + $0x1], 1 }

</bundles_post_ra>
